<compile_context>
chip_gen: v7x
topology: tpu7x:2x2x1
jax: 0.10.0
libtpu: 0.0.40
codegen_flags: <defaults>
</compile_context>

<pallas_src>
import jax
import jax.numpy as jnp
from jax import lax
from jax.experimental import pallas as pl
from jax.experimental.pallas import tpu as pltpu

C = 19           # number of semantic classes (self.C == 19 in the reference code)
NUM_CORE_SPLITS = 2   # leading "parallel" grid axis (v7x dual TensorCore)


def confusion_kernel(valid_ref, logits_ref, labels_ref, conf_ref):
    """Accumulate a CxC confusion matrix over point tiles.

    valid_ref:  [1, C]   int32        valid_labels (class id for each slot)
    logits_ref: [TM, C]  native dtype logits / softmax outputs for TM points
    labels_ref: [TM, 1]  int32        raw ground-truth labels
    conf_ref:   [C, C]   float32      per-core accumulator (resident across the
                                      inner reduction axis)
    """
    @pl.when(pl.program_id(1) == 0)
    def _init():
        conf_ref[...] = jnp.zeros_like(conf_ref)

    # In-vreg upcast only (cheap); HBM traffic stays in the native dtype.
    logits = logits_ref[...].astype(jnp.float32)      # [TM, C]
    labels = labels_ref[...]                          # [TM, 1] i32
    valid = valid_ref[...]                            # [1, C]  i32

    # preds = argmax over classes (matches torch.argmax(outputs, dim=1))
    preds = jnp.argmax(logits, axis=1, keepdims=True)            # [TM, 1] i32
    class_ids = lax.broadcasted_iota(jnp.int32, (1, C), 1)        # [1, C]

    # One-hot of predictions and of mapped targets.  A label not present in
    # valid_labels maps to target == -1 in the torch code; here it simply
    # produces an all-zero row (never counted) -- equivalent, and it also makes
    # label-0 padding rows free.  One-hots are exact in bf16 -> MXU-native.
    preds_oh = (preds == class_ids).astype(jnp.bfloat16)          # [TM, C]
    target_oh = (labels == valid).astype(jnp.bfloat16)            # [TM, C]

    # conf[p, t] += sum_m preds_oh[m, p] * target_oh[m, t]   (MXU, f32 acc)
    conf_ref[...] += lax.dot_general(
        preds_oh, target_oh,
        dimension_numbers=(((0,), (0,)), ((), ())),
        preferred_element_type=jnp.float32)


def semantic_seg_confusion(outputs, labels, valid_labels, tile_m=2048):
    """Pallas-computed confusion matrix for semantic_seg_metric / accuracy.

    outputs: [B, N, C] any float dtype (kept native -- no f32 upcast here)
    labels:  [B, N, 1] integer labels
    """
    B, N, Cc = outputs.shape
    assert Cc == C
    M = B * N

    logits = outputs.reshape(M, Cc)                       # native dtype
    labels_flat = labels.reshape(M, 1).astype(jnp.int32)

    # Pad the point axis up to a multiple of NUM_CORE_SPLITS * tile_m with
    # label 0 (not in valid_labels) -> padded rows contribute nothing.
    chunk = NUM_CORE_SPLITS * tile_m
    M_pad = ((M + chunk - 1) // chunk) * chunk
    if M_pad != M:
        logits = jnp.pad(logits, ((0, M_pad - M), (0, 0)))
        labels_flat = jnp.pad(labels_flat, ((0, M_pad - M), (0, 0)))
    tiles_per_core = M_pad // chunk

    valid2d = jnp.asarray(valid_labels, jnp.int32).reshape(1, Cc)

    conf_parts = pl.pallas_call(
        confusion_kernel,
        out_shape=jax.ShapeDtypeStruct((NUM_CORE_SPLITS, Cc, Cc), jnp.float32),
        grid_spec=pltpu.PrefetchScalarGridSpec(
            num_scalar_prefetch=0,
            grid=(NUM_CORE_SPLITS, tiles_per_core),
            in_specs=[
                # valid_labels: constant block index -> never re-DMA'd
                pl.BlockSpec((1, Cc), lambda c, i: (0, 0)),
                # logits tile for this (core, step)
                pl.BlockSpec((tile_m, Cc),
                             lambda c, i: (c * tiles_per_core + i, 0)),
                # labels tile for this (core, step)
                pl.BlockSpec((tile_m, 1),
                             lambda c, i: (c * tiles_per_core + i, 0)),
            ],
            # per-core partial confusion matrix; resident across the inner axis
            out_specs=pl.BlockSpec((None, Cc, Cc), lambda c, i: (c, 0, 0)),
        ),
        compiler_params=pltpu.CompilerParams(
            dimension_semantics=("parallel", "arbitrary"),
            vmem_limit_bytes=32 * 1024 * 1024),
    )(valid2d, logits, labels_flat)

    # TODO(synk): f32 accumulation is exact only up to 2^24 counts per bin;
    # for >16.7M points in one bin, split the reduction or flush periodically.
    return conf_parts.sum(axis=0)


def semantic_seg_metric(outputs, labels, valid_labels, tile_m=2048):
    """Mirrors BaseModel.semantic_seg_metric: per-class IoU + meanIoU."""
    conf = semantic_seg_confusion(outputs, labels, valid_labels, tile_m=tile_m)
    intersection = jnp.diag(conf)
    union = conf.sum(0) + conf.sum(1) - intersection
    scores = intersection / (union + 1e-10)
    mask = union < 0.001
    counts = jnp.sum(1 - mask.astype(jnp.int32))
    mean_iou = scores.sum() / counts
    return conf.astype(jnp.int32), scores, mean_iou


def accuracy_from_conf(conf, total):
    """Mirrors BaseModel.accuracy: (predicted == target).sum() / total.

    target == -1 never equals a prediction in [0, C), so correct == trace(conf).
    """
    return jnp.trace(conf.astype(jnp.float32)) / total


# ----------------------------- pure-JAX reference ----------------------------
def _reference_metrics(outputs, labels, valid_labels, total):
    logits = outputs.reshape(-1, C).astype(jnp.float32)
    lab = labels.reshape(-1)
    target = -jnp.ones_like(lab)
    for i in range(C):
        target = jnp.where(lab == valid_labels[i], i, target)
    preds = jnp.argmax(logits, axis=1)
    ph = (preds[:, None] == jnp.arange(C)[None, :]).astype(jnp.float32)
    th = (target[:, None] == jnp.arange(C)[None, :]).astype(jnp.float32)
    conf = ph.T @ th
    inter = jnp.diag(conf)
    union = conf.sum(0) + conf.sum(1) - inter
    scores = inter / (union + 1e-10)
    counts = jnp.sum((union >= 0.001).astype(jnp.int32))
    mean_iou = scores.sum() / counts
    acc = (preds == target).sum() / total
    return conf.astype(jnp.int32), scores, mean_iou, acc


if __name__ == "__main__":
    key = jax.random.PRNGKey(0)
    B, N = 2, 512
    M = B * N

    # valid_labels: 19 semantic classes, raw label value 0 is "ignored"
    valid_labels = jnp.arange(1, C + 1, dtype=jnp.int32)

    k_out, k_lab, k_cls = jax.random.split(key, 3)
    labels = jax.random.randint(k_lab, (B, N, 1), 0, C + 1, dtype=jnp.int32)

    # ---- float32 logits path ----
    outputs_f32 = jax.random.normal(k_out, (B, N, C), dtype=jnp.float32)
    conf, scores, mean_iou = semantic_seg_metric(outputs_f32, labels, valid_labels)
    acc = accuracy_from_conf(conf, M)
    jax.block_until_ready((conf, scores, mean_iou, acc))

    conf_r, scores_r, miou_r, acc_r = _reference_metrics(
        outputs_f32, labels, valid_labels, M)
    assert jnp.array_equal(conf, conf_r), "confusion matrix mismatch (f32)"
    assert jnp.allclose(scores, scores_r, atol=1e-6), "IoU mismatch (f32)"
    assert jnp.allclose(mean_iou, miou_r, atol=1e-6), "meanIoU mismatch (f32)"
    assert jnp.allclose(acc, acc_r, atol=1e-6), "accuracy mismatch (f32)"

    # ---- bfloat16 logits path (native dtype, no wrapper upcast) ----
    # Spiked construction keeps the per-row argmax unambiguous after bf16
    # rounding, so the integer confusion matrix is exactly comparable.
    spike = jax.random.randint(k_cls, (B, N), 0, C, dtype=jnp.int32)
    outputs_bf16 = (0.01 * jax.random.normal(k_out, (B, N, C))
                    + 10.0 * jax.nn.one_hot(spike, C)).astype(jnp.bfloat16)
    conf_b, scores_b, miou_b = semantic_seg_metric(outputs_bf16, labels, valid_labels)
    acc_b = accuracy_from_conf(conf_b, M)
    jax.block_until_ready((conf_b, scores_b, miou_b, acc_b))

    conf_br, scores_br, miou_br, acc_br = _reference_metrics(
        outputs_bf16, labels, valid_labels, M)
    assert jnp.array_equal(conf_b, conf_br), "confusion matrix mismatch (bf16)"
    assert jnp.allclose(scores_b, scores_br, atol=1e-6), "IoU mismatch (bf16)"
    assert jnp.allclose(miou_b, miou_br, atol=1e-6), "meanIoU mismatch (bf16)"
    assert jnp.allclose(acc_b, acc_br, atol=1e-6), "accuracy mismatch (bf16)"

    print("KERNEL_OK")
</pallas_src>

<mosaic_0001>
module attributes {stable_mosaic.version = 11 : i64} {
  func.func @confusion_kernel(%arg0: i32, %arg1: i32, %arg2: memref<1x19xi32, #tpu.memory_space<vmem>>, %arg3: memref<2048x19xf32, #tpu.memory_space<vmem>>, %arg4: memref<2048x1xi32, #tpu.memory_space<vmem>>, %arg5: memref<1x19x19xf32, #tpu.memory_space<vmem>>) attributes {dimension_semantics = [#tpu.dimension_semantics<parallel>, #tpu.dimension_semantics<arbitrary>], iteration_bounds = array<i64: 2, 1>, scalar_prefetch = 0 : i64, scratch_operands = 0 : i64, tpu.core_type = #tpu.core_type<tc>, window_params = [{pipeline_mode = #tpu.pipeline_mode<synchronous>, transform_indices = @transform_0, window_bounds = array<i64: 1, 19>}, {transform_indices = @transform_1, window_bounds = array<i64: 2048, 19>}, {transform_indices = @transform_2, window_bounds = array<i64: 2048, 1>}, {transform_indices = @transform_3, window_bounds = array<i64: 1, 19, 19>}]} {
    %c0_i32 = arith.constant 0 : i32
    %0 = arith.cmpi eq, %arg1, %c0_i32 : i32
    %1 = arith.extui %0 : i1 to i32
    %c0_i32_0 = arith.constant 0 : i32
    %2 = arith.cmpi ne, %1, %c0_i32_0 : i32
    scf.if %2 {
      %cst_12 = arith.constant 0.000000e+00 : f32
      %28 = vector.broadcast %cst_12 : f32 to vector<19x19xf32>
      %c0_13 = arith.constant 0 : index
      %c0_14 = arith.constant 0 : index
      %c0_15 = arith.constant 0 : index
      %29 = vector.load %arg5[%c0_13, %c0_14, %c0_15] : memref<1x19x19xf32, #tpu.memory_space<vmem>>, vector<1x19x19xf32>
      %30 = vector.shape_cast %29 : vector<1x19x19xf32> to vector<19x19xf32>
      %31 = vector.shape_cast %28 : vector<19x19xf32> to vector<1x19x19xf32>
      tpu.vector_store %arg5[%c0_13, %c0_14, %c0_15], %31 {strides = array<i32>} : memref<1x19x19xf32, #tpu.memory_space<vmem>>, vector<1x19x19xf32>,
    } else {
    }
    %c0 = arith.constant 0 : index
    %c0_1 = arith.constant 0 : index
    %3 = vector.load %arg3[%c0, %c0_1] : memref<2048x19xf32, #tpu.memory_space<vmem>>, vector<2048x19xf32>
    %c0_2 = arith.constant 0 : index
    %c0_3 = arith.constant 0 : index
    %4 = vector.load %arg4[%c0_2, %c0_3] : memref<2048x1xi32, #tpu.memory_space<vmem>>, vector<2048x1xi32>
    %c0_4 = arith.constant 0 : index
    %c0_5 = arith.constant 0 : index
    %5 = vector.load %arg2[%c0_4, %c0_5] : memref<1x19xi32, #tpu.memory_space<vmem>>, vector<1x19xi32>
    %6 = tpu.reduce_index %3 {axis = 1 : i32, kind = #tpu.reduction_kind<arg_max>} : vector<2048x19xf32> -> vector<2048xi32>
    %7 = vector.shape_cast %6 : vector<2048xi32> to vector<2048x1xi32>
    %8 = tpu.iota {dimensions = array<i32: 1>} : vector<1x19xi32>
    %9 = vector.broadcast %7 : vector<2048x1xi32> to vector<2048x19xi32>
    %10 = vector.broadcast %8 : vector<1x19xi32> to vector<2048x19xi32>
    %11 = arith.cmpi eq, %9, %10 : vector<2048x19xi32>
    %12 = arith.extui %11 : vector<2048x19xi1> to vector<2048x19xi32>
    %13 = arith.sitofp %12 : vector<2048x19xi32> to vector<2048x19xf32>
    %14 = arith.truncf %13 : vector<2048x19xf32> to vector<2048x19xbf16>
    %15 = vector.broadcast %4 : vector<2048x1xi32> to vector<2048x19xi32>
    %16 = vector.broadcast %5 : vector<1x19xi32> to vector<2048x19xi32>
    %17 = arith.cmpi eq, %15, %16 : vector<2048x19xi32>
    %18 = arith.extui %17 : vector<2048x19xi1> to vector<2048x19xi32>
    %19 = arith.sitofp %18 : vector<2048x19xi32> to vector<2048x19xf32>
    %20 = arith.truncf %19 : vector<2048x19xf32> to vector<2048x19xbf16>
    %c0_6 = arith.constant 0 : index
    %c0_7 = arith.constant 0 : index
    %c0_8 = arith.constant 0 : index
    %21 = vector.load %arg5[%c0_6, %c0_7, %c0_8] : memref<1x19x19xf32, #tpu.memory_space<vmem>>, vector<1x19x19xf32>
    %22 = vector.shape_cast %21 : vector<1x19x19xf32> to vector<19x19xf32>
    %cst = arith.constant dense<0.000000e+00> : vector<19x19xf32>
    %23 = tpu.matmul %14, %20, %cst {dimension_numbers = #tpu.dot_dimension_numbers<[0], [0], [1], [1], [0, 1, 1, 1], [], []>} : vector<2048x19xbf16>, vector<2048x19xbf16>, vector<19x19xf32> -> vector<19x19xf32>
    %24 = arith.addf %22, %23 : vector<19x19xf32>
    %c0_9 = arith.constant 0 : index
    %c0_10 = arith.constant 0 : index
    %c0_11 = arith.constant 0 : index
    %25 = vector.load %arg5[%c0_9, %c0_10, %c0_11] : memref<1x19x19xf32, #tpu.memory_space<vmem>>, vector<1x19x19xf32>
    %26 = vector.shape_cast %25 : vector<1x19x19xf32> to vector<19x19xf32>
    %27 = vector.shape_cast %24 : vector<19x19xf32> to vector<1x19x19xf32>
    tpu.vector_store %arg5[%c0_9, %c0_10, %c0_11], %27 {strides = array<i32>} : memref<1x19x19xf32, #tpu.memory_space<vmem>>, vector<1x19x19xf32>,
    return
  }
  func.func @transform_0(%arg0: i32, %arg1: i32) -> (i32, i32) {
    %c0_i32 = arith.constant 0 : i32
    %c0_i32_0 = arith.constant 0 : i32
    %c0_i32_1 = arith.constant 0 : i32
    return %c0_i32, %c0_i32_0 : i32, i32
  }
  func.func @transform_1(%arg0: i32, %arg1: i32) -> (i32, i32) {
    %c1_i32 = arith.constant 1 : i32
    %0 = arith.muli %arg0, %c1_i32 : i32
    %1 = arith.addi %0, %arg1 : i32
    %c0_i32 = arith.constant 0 : i32
    %c0_i32_0 = arith.constant 0 : i32
    return %1, %c0_i32 : i32, i32
  }
  func.func @transform_2(%arg0: i32, %arg1: i32) -> (i32, i32) {
    %c1_i32 = arith.constant 1 : i32
    %0 = arith.muli %arg0, %c1_i32 : i32
    %1 = arith.addi %0, %arg1 : i32
    %c0_i32 = arith.constant 0 : i32
    %c0_i32_0 = arith.constant 0 : i32
    return %1, %c0_i32 : i32, i32
  }
  func.func @transform_3(%arg0: i32, %arg1: i32) -> (i32, i32, i32) {
    %c0_i32 = arith.constant 0 : i32
    %c0_i32_0 = arith.constant 0 : i32
    %c0_i32_1 = arith.constant 0 : i32
    return %arg0, %c0_i32, %c0_i32_0 : i32, i32, i32
  }
}

</mosaic_0001>

<bundles_post_ra>
// kernel: tpu_custom_call.1
= control target key start
LH: loop header
LB: loop body
LE: loop exit
PB: predicated region body
PF: predicated region fallthrough
CT: control target
= control target key end

     0   :  { %s5888_s12 = smov 0   ;;  %s5890_s13 = smov 0   ;;  %s9611_s0 = inlined_call_operand.vmem [shape: s32[1,19], index: 0, kind: input, shape index: {}]   ;;  %s9612_s1 = inlined_call_operand.vmem [shape: f32[4096,19], index: 1, kind: input, shape index: {}]   ;;  %s9613_s2 = inlined_call_operand.vmem [shape: s32[4096,1], index: 2, kind: input, shape index: {}]   ;;  %s9614_s3 = inlined_call_operand.vmem [shape: f32[2,19,19], index: 3, kind: output, shape index: {}]  }
   0x1   :  { %s5892_s14 = smov 0  }
   0x2 LB: > { %s25_s15 = sadd.s32 1, %s5859_s13  ;;  %p4808_p0 = scmp.ge.s32.totalorder %s5863_s14, 1  ;;  %s5863_s14 = sphi %s5892_s14, %s13_s14   ;;  %s5859_s13 = sphi %s5890_s13, %s10497_s13   ;;  %s5855_s12 = sphi %s5888_s12, %s10496_s12  }
   0x3   : > { %p27_p1 = scmp.ge.s32.totalorder %s25_s15, 2  ;;  %p169_p2 = scmp.lt.s32.totalorder %s5863_s14, 3 }
   0x5   : > { %s10499_s15 = smov (%p27_p1, %s25_s15), 0  ;;  %p170_p3 = pnand %p4808_p0, %p169_p2 }
   0x7   : > { %173 = sbr.rel (%p170_p3) target bundleno = 1665 (0x681), region = 32 }
   0xe   : > { %s4809_s16 = sshll.u32 %s5855_s12, 8  ;;  %vm9785_vm0 = vcmask 154624   ;;  %p216_p5 = scmp.lt.s32.totalorder %s5855_s12, 1 }
   0xf   : > { %p202_p4 = scmp.lt.s32.totalorder %s4809_s16, 511 }
  0x10   : > { %s10503_s12 = smov (!%p216_p5, %s5855_s12), 1 }
  0x11   : > { %s10501_s16 = smov (!%p202_p4, %s4809_s16), 511  ;;  %s5809_s30 = smul.u32 24, %s10503_s12 }
  0x12   : > { %s4810_s17 = sshll.u32 %s10501_s16, 3 }
  0x13   : > { %s5917_s20 = scalar_lea.vmem %s9612_s1, %s4810_s17  ;;  %s7275_s23 = scalar_lea.vmem %s9613_s2, %s4810_s17 }
  0x14   : > { %v233_v0 = vld [vmem:[%s5917_s20 + $0x10] sm:$0xff]  ;;  %v231_v1 = vld [vmem:[%s5917_s20] sm:$0xff]  ;;  %v234_v2 = vld [vmem:[%s5917_s20 + $0x18] sm:$0xff]  ;;  %s9582_s6 = scalar_lea.vmem %s9614_s3, %s5809_s30 }
  0x15   : > { %v751_v3 = vsel %vm9785_vm0, %v233_v0, -inf  ;;  %v745_v4 = vsel %vm9785_vm0, %v231_v1, -inf  ;;  %v232_v5 = vld [vmem:[%s5917_s20 + $0x8] sm:$0xff]  ;;  %v754_v6 = vsel %vm9785_vm0, %v234_v2, -inf  ;;  %v235_v9 = vld [vmem:[%s5917_s20 + $0x20] sm:$0xff]  ;;  %v238_v12 = vld [vmem:[%s5917_s20 + $0x38] sm:$0xff] }
  0x16   : > { %752 = vmax.index.xlane.f32.xlu1 %v751_v3  ;;  %746 = vmax.index.xlane.f32.xlu0 %v745_v4  ;;  %v748_v7 = vsel %vm9785_vm0, %v232_v5, -inf  ;;  %v236_v8 = vld [vmem:[%s5917_s20 + $0x28] sm:$0xff]  ;;  %v757_v11 = vsel %vm9785_vm0, %v235_v9, -inf  ;;  %v237_v13 = vld [vmem:[%s5917_s20 + $0x30] sm:$0xff]  ;;  %v766_v14 = vsel %vm9785_vm0, %v238_v12, -inf  ;;  %v239_v17 = vld [vmem:[%s5917_s20 + $0x40] sm:$0xff] }
  0x17   : > { %v760_v10 = vsel %vm9785_vm0, %v236_v8, -inf  ;;  %v763_v15 = vsel %vm9785_vm0, %v237_v13, -inf  ;;  %v240_v16 = vld [vmem:[%s5917_s20 + $0x48] sm:$0xff]  ;;  %v769_v19 = vsel %vm9785_vm0, %v239_v17, -inf  ;;  %v242_v20 = vld [vmem:[%s5917_s20 + $0x58] sm:$0xff]  ;;  %v241_v21 = vld [vmem:[%s5917_s20 + $0x50] sm:$0xff] }
  0x18   : > { %v772_v18 = vsel %vm9785_vm0, %v240_v16, -inf  ;;  %v778_v22 = vsel %vm9785_vm0, %v242_v20, -inf  ;;  %v775_v23 = vsel %vm9785_vm0, %v241_v21, -inf  ;;  %v244_v24 = vld [vmem:[%s5917_s20 + $0x68] sm:$0xff]  ;;  %v243_v25 = vld [vmem:[%s5917_s20 + $0x60] sm:$0xff]  ;;  %v246_v28 = vld [vmem:[%s5917_s20 + $0x78] sm:$0xff] }
  0x19   : > { %v784_v26 = vsel %vm9785_vm0, %v244_v24, -inf  ;;  %v781_v27 = vsel %vm9785_vm0, %v243_v25, -inf  ;;  %v245_v29 = vld [vmem:[%s5917_s20 + $0x70] sm:$0xff]  ;;  %v790_v30 = vsel %vm9785_vm0, %v246_v28, -inf  ;;  %v248_v32 = vld [vmem:[%s5917_s20 + $0x88] sm:$0xff]  ;;  %v247_v33 = vld [vmem:[%s5917_s20 + $0x80] sm:$0xff] }
  0x1a   : > { %755 = vmax.index.xlane.f32.xlu1 %v754_v6  ;;  %749 = vmax.index.xlane.f32.xlu0 %v748_v7  ;;  %v787_v31 = vsel %vm9785_vm0, %v245_v29, -inf  ;;  %v796_v34 = vsel %vm9785_vm0, %v248_v32, -inf  ;;  %v793_v35 = vsel %vm9785_vm0, %v247_v33, -inf  ;;  %v250_v36 = vld [vmem:[%s5917_s20 + $0x98] sm:$0xff]  ;;  %v249_v37 = vld [vmem:[%s5917_s20 + $0x90] sm:$0xff]  ;;  %v252_v40 = vld [vmem:[%s5917_s20 + $0xa8] sm:$0xff] }
  0x1b   : > { %v802_v38 = vsel %vm9785_vm0, %v250_v36, -inf  ;;  %v799_v39 = vsel %vm9785_vm0, %v249_v37, -inf  ;;  %v251_v41 = vld [vmem:[%s5917_s20 + $0xa0] sm:$0xff]  ;;  %v808_v42 = vsel %vm9785_vm0, %v252_v40, -inf  ;;  %v254_v44 = vld [vmem:[%s5917_s20 + $0xb8] sm:$0xff]  ;;  %v253_v45 = vld [vmem:[%s5917_s20 + $0xb0] sm:$0xff] }
  0x1c   : > { %v805_v43 = vsel %vm9785_vm0, %v251_v41, -inf  ;;  %v814_v46 = vsel %vm9785_vm0, %v254_v44, -inf  ;;  %v811_v47 = vsel %vm9785_vm0, %v253_v45, -inf  ;;  %v256_v48 = vld [vmem:[%s5917_s20 + $0xc8] sm:$0xff]  ;;  %v255_v49 = vld [vmem:[%s5917_s20 + $0xc0] sm:$0xff]  ;;  %v258_v52 = vld [vmem:[%s5917_s20 + $0xd8] sm:$0xff] }
  0x1d   : > { %v820_v50 = vsel %vm9785_vm0, %v256_v48, -inf  ;;  %v817_v51 = vsel %vm9785_vm0, %v255_v49, -inf  ;;  %v257_v53 = vld [vmem:[%s5917_s20 + $0xd0] sm:$0xff]  ;;  %v826_v54 = vsel %vm9785_vm0, %v258_v52, -inf  ;;  %v260_v56 = vld [vmem:[%s5917_s20 + $0xe8] sm:$0xff]  ;;  %v259_v57 = vld [vmem:[%s5917_s20 + $0xe0] sm:$0xff] }
  0x1e   : > { %761 = vmax.index.xlane.f32.xlu1 %v760_v10  ;;  %758 = vmax.index.xlane.f32.xlu0 %v757_v11  ;;  %v823_v55 = vsel %vm9785_vm0, %v257_v53, -inf  ;;  %v832_v58 = vsel %vm9785_vm0, %v260_v56, -inf  ;;  %v829_v59 = vsel %vm9785_vm0, %v259_v57, -inf  ;;  %v262_v60 = vld [vmem:[%s5917_s20 + $0xf8] sm:$0xff]  ;;  %v261_v61 = vld [vmem:[%s5917_s20 + $0xf0] sm:$0xff]  ;;  %v264_v0 = vld [vmem:[%s5917_s20 + $0x108] sm:$0xff] }
  0x1f   : > { %v838_v62 = vsel %vm9785_vm0, %v262_v60, -inf  ;;  %v835_v63 = vsel %vm9785_vm0, %v261_v61, -inf  ;;  %v263_v1 = vld [vmem:[%s5917_s20 + $0x100] sm:$0xff]  ;;  %v844_v2 = vsel %vm9785_vm0, %v264_v0, -inf  ;;  %v266_v4 = vld [vmem:[%s5917_s20 + $0x118] sm:$0xff]  ;;  %v265_v5 = vld [vmem:[%s5917_s20 + $0x110] sm:$0xff] }
  0x20   : > { %v841_v3 = vsel %vm9785_vm0, %v263_v1, -inf  ;;  %v850_v6 = vsel %vm9785_vm0, %v266_v4, -inf  ;;  %v847_v7 = vsel %vm9785_vm0, %v265_v5, -inf  ;;  %v268_v8 = vld [vmem:[%s5917_s20 + $0x128] sm:$0xff]  ;;  %v267_v9 = vld [vmem:[%s5917_s20 + $0x120] sm:$0xff]  ;;  %v270_v12 = vld [vmem:[%s5917_s20 + $0x138] sm:$0xff] }
  0x21   : > { %v856_v10 = vsel %vm9785_vm0, %v268_v8, -inf  ;;  %v853_v11 = vsel %vm9785_vm0, %v267_v9, -inf  ;;  %v269_v13 = vld [vmem:[%s5917_s20 + $0x130] sm:$0xff]  ;;  %v272_v16 = vld [vmem:[%s5917_s20 + $0x148] sm:$0xff]  ;;  %v271_v17 = vld [vmem:[%s5917_s20 + $0x140] sm:$0xff] }
  0x22   : > { %767 = vmax.index.xlane.f32.xlu1 %v766_v14  ;;  %764 = vmax.index.xlane.f32.xlu0 %v763_v15  ;;  %v862_v14 = vsel %vm9785_vm0, %v270_v12, -inf  ;;  %v859_v15 = vsel %vm9785_vm0, %v269_v13, -inf  ;;  %v274_v20 = vld [vmem:[%s5917_s20 + $0x158] sm:$0xff]  ;;  %v273_v21 = vld [vmem:[%s5917_s20 + $0x150] sm:$0xff]  ;;  %v276_v24 = vld [vmem:[%s5917_s20 + $0x168] sm:$0xff] }
  0x23   : > { %v275_v25 = vld [vmem:[%s5917_s20 + $0x160] sm:$0xff]  ;;  %v278_v28 = vld [vmem:[%s5917_s20 + $0x178] sm:$0xff]  ;;  %v277_v29 = vld [vmem:[%s5917_s20 + $0x170] sm:$0xff] }
  0x24   : > { %v280_v32 = vld [vmem:[%s5917_s20 + $0x188] sm:$0xff]  ;;  %v279_v33 = vld [vmem:[%s5917_s20 + $0x180] sm:$0xff]  ;;  %v282_v36 = vld [vmem:[%s5917_s20 + $0x198] sm:$0xff] }
  0x25   : > { %v281_v37 = vld [vmem:[%s5917_s20 + $0x190] sm:$0xff]  ;;  %v284_v40 = vld [vmem:[%s5917_s20 + $0x1a8] sm:$0xff]  ;;  %v283_v41 = vld [vmem:[%s5917_s20 + $0x1a0] sm:$0xff] }
  0x26   : > { %773 = vmax.index.xlane.f32.xlu1 %v772_v18  ;;  %770 = vmax.index.xlane.f32.xlu0 %v769_v19  ;;  %v868_v18 = vsel %vm9785_vm0, %v272_v16, -inf  ;;  %v865_v19 = vsel %vm9785_vm0, %v271_v17, -inf  ;;  %v286_v44 = vld [vmem:[%s5917_s20 + $0x1b8] sm:$0xff]  ;;  %v285_v45 = vld [vmem:[%s5917_s20 + $0x1b0] sm:$0xff]  ;;  %v288_v48 = vld [vmem:[%s5917_s20 + $0x1c8] sm:$0xff] }
  0x27   : > { %v287_v49 = vld [vmem:[%s5917_s20 + $0x1c0] sm:$0xff]  ;;  %v290_v52 = vld [vmem:[%s5917_s20 + $0x1d8] sm:$0xff]  ;;  %v289_v53 = vld [vmem:[%s5917_s20 + $0x1d0] sm:$0xff] }
  0x28   : > { %v292_v56 = vld [vmem:[%s5917_s20 + $0x1e8] sm:$0xff]  ;;  %v291_v57 = vld [vmem:[%s5917_s20 + $0x1e0] sm:$0xff]  ;;  %v294_v60 = vld [vmem:[%s5917_s20 + $0x1f8] sm:$0xff] }
  0x29   : > { %v293_v61 = vld [vmem:[%s5917_s20 + $0x1f0] sm:$0xff]  ;;  %v296_v0 = vld [vmem:[%s5917_s20 + $0x208] sm:$0xff]  ;;  %v295_v1 = vld [vmem:[%s5917_s20 + $0x200] sm:$0xff] }
  0x2a   : > { %779 = vmax.index.xlane.f32.xlu1 %v778_v22  ;;  %776 = vmax.index.xlane.f32.xlu0 %v775_v23  ;;  %v874_v22 = vsel %vm9785_vm0, %v274_v20, -inf  ;;  %v871_v23 = vsel %vm9785_vm0, %v273_v21, -inf  ;;  %v298_v4 = vld [vmem:[%s5917_s20 + $0x218] sm:$0xff]  ;;  %v297_v5 = vld [vmem:[%s5917_s20 + $0x210] sm:$0xff]  ;;  %v300_v8 = vld [vmem:[%s5917_s20 + $0x228] sm:$0xff] }
  0x2b   : > { %v299_v9 = vld [vmem:[%s5917_s20 + $0x220] sm:$0xff]  ;;  %v302_v12 = vld [vmem:[%s5917_s20 + $0x238] sm:$0xff]  ;;  %v301_v13 = vld [vmem:[%s5917_s20 + $0x230] sm:$0xff] }
  0x2c   : > { %v955_v16 = vsel %vm9785_vm0, %v301_v13, -inf  ;;  %v304_v17 = vld [vmem:[%s5917_s20 + $0x248] sm:$0xff] }
  0x2e   : > { %785 = vmax.index.xlane.f32.xlu1 %v784_v26  ;;  %782 = vmax.index.xlane.f32.xlu0 %v781_v27  ;;  %v880_v26 = vsel %vm9785_vm0, %v276_v24, -inf  ;;  %v877_v27 = vsel %vm9785_vm0, %v275_v25, -inf  ;;  %v306_v24 = vld [vmem:[%s5917_s20 + $0x258] sm:$0xff]  ;;  %v305_v25 = vld [vmem:[%s5917_s20 + $0x250] sm:$0xff] }
  0x32   : > { %791 = vmax.index.xlane.f32.xlu1 %v790_v30  ;;  %788 = vmax.index.xlane.f32.xlu0 %v787_v31  ;;  %v886_v30 = vsel %vm9785_vm0, %v278_v28, -inf  ;;  %v883_v31 = vsel %vm9785_vm0, %v277_v29, -inf }
  0x36   : > { %797 = vmax.index.xlane.f32.xlu1 %v796_v34  ;;  %794 = vmax.index.xlane.f32.xlu0 %v793_v35  ;;  %v892_v34 = vsel %vm9785_vm0, %v280_v32, -inf  ;;  %v889_v35 = vsel %vm9785_vm0, %v279_v33, -inf  ;;  %v308_v32 = vld [vmem:[%s5917_s20 + $0x268] sm:$0xff]  ;;  %v307_v33 = vld [vmem:[%s5917_s20 + $0x260] sm:$0xff] }
  0x3a   : > { %803 = vmax.index.xlane.f32.xlu1 %v802_v38  ;;  %800 = vmax.index.xlane.f32.xlu0 %v799_v39  ;;  %v898_v38 = vsel %vm9785_vm0, %v282_v36, -inf  ;;  %v895_v39 = vsel %vm9785_vm0, %v281_v37, -inf  ;;  %v355_v37 = vld [vmem:[%s5917_s20 + $0x3e0] sm:$0xff] }
  0x3e   : > { %809 = vmax.index.xlane.f32.xlu1 %v808_v42  ;;  %806 = vmax.index.xlane.f32.xlu0 %v805_v43  ;;  %v904_v42 = vsel %vm9785_vm0, %v284_v40, -inf  ;;  %v901_v43 = vsel %vm9785_vm0, %v283_v41, -inf  ;;  %v976_v41 = vsel %vm9785_vm0, %v308_v32, -inf }
  0x42   : > { %815 = vmax.index.xlane.f32.xlu1 %v814_v46  ;;  %812 = vmax.index.xlane.f32.xlu0 %v811_v47  ;;  %v910_v46 = vsel %vm9785_vm0, %v286_v44, -inf  ;;  %v907_v47 = vsel %vm9785_vm0, %v285_v45, -inf  ;;  %v309_v44 = vld [vmem:[%s5917_s20 + $0x270] sm:$0xff] }
  0x46   : > { %821 = vmax.index.xlane.f32.xlu1 %v820_v50  ;;  %818 = vmax.index.xlane.f32.xlu0 %v817_v51  ;;  %v916_v50 = vsel %vm9785_vm0, %v288_v48, -inf  ;;  %v913_v51 = vsel %vm9785_vm0, %v287_v49, -inf }
  0x4a   : > { %827 = vmax.index.xlane.f32.xlu1 %v826_v54  ;;  %824 = vmax.index.xlane.f32.xlu0 %v823_v55  ;;  %v922_v54 = vsel %vm9785_vm0, %v290_v52, -inf  ;;  %v919_v55 = vsel %vm9785_vm0, %v289_v53, -inf  ;;  %v312_v52 = vld [vmem:[%s5917_s20 + $0x288] sm:$0xff]  ;;  %v311_v53 = vld [vmem:[%s5917_s20 + $0x280] sm:$0xff] }
  0x4e   : > { %833 = vmax.index.xlane.f32.xlu1 %v832_v58  ;;  %830 = vmax.index.xlane.f32.xlu0 %v829_v59  ;;  %v928_v58 = vsel %vm9785_vm0, %v292_v56, -inf  ;;  %v925_v59 = vsel %vm9785_vm0, %v291_v57, -inf  ;;  %v353_v56 = vld [vmem:[%s5917_s20 + $0x3d0] sm:$0xff] }
  0x52   : > { %839 = vmax.index.xlane.f32.xlu1 %v838_v62  ;;  %836 = vmax.index.xlane.f32.xlu0 %v835_v63  ;;  %v934_v62 = vsel %vm9785_vm0, %v294_v60, -inf  ;;  %v931_v63 = vsel %vm9785_vm0, %v293_v61, -inf  ;;  %v985_v60 = vsel %vm9785_vm0, %v311_v53, -inf  ;;  %v314_v61 = vld [vmem:[%s5917_s20 + $0x298] sm:$0xff]  ;;  %v324_v53 = vld [vmem:[%s5917_s20 + $0x2e8] sm:$0xff] }
  0x56   : > { %845 = vmax.index.xlane.f32.xlu1 %v844_v2  ;;  %842 = vmax.index.xlane.f32.xlu0 %v841_v3  ;;  %v940_v2 = vsel %vm9785_vm0, %v296_v0, -inf  ;;  %v937_v3 = vsel %vm9785_vm0, %v295_v1, -inf }
  0x5a   : > { %851 = vmax.index.xlane.f32.xlu1 %v850_v6  ;;  %848 = vmax.index.xlane.f32.xlu0 %v847_v7  ;;  %v946_v6 = vsel %vm9785_vm0, %v298_v4, -inf  ;;  %v943_v7 = vsel %vm9785_vm0, %v297_v5, -inf  ;;  %v994_v4 = vsel %vm9785_vm0, %v314_v61, -inf }
  0x5e   : > { %857 = vmax.index.xlane.f32.xlu1 %v856_v10  ;;  %854 = vmax.index.xlane.f32.xlu0 %v853_v11  ;;  %v952_v10 = vsel %vm9785_vm0, %v300_v8, -inf  ;;  %v949_v11 = vsel %vm9785_vm0, %v299_v9, -inf }
  0x62   : > { %863 = vmax.index.xlane.f32.xlu1 %v862_v14  ;;  %860 = vmax.index.xlane.f32.xlu0 %v859_v15  ;;  %v1513_v14 = vlaneseq  ;;  %v958_v15 = vsel %vm9785_vm0, %v302_v12, -inf }
  0x66   : > { %869 = vmax.index.xlane.f32.xlu1 %v868_v18  ;;  %866 = vmax.index.xlane.f32.xlu0 %v865_v19  ;;  %v303_v18 = vld [vmem:[%s5917_s20 + $0x240] sm:$0xff]  ;;  %v6065_v19 = vand.u32 127, %v1513_v14 }
  0x68   : > { %9786 = vst [vmem:[#allocation2_spill] sm:$0xff] %v6065_v19 }
  0x6a   : > { %875 = vmax.index.xlane.f32.xlu1 %v874_v22  ;;  %872 = vmax.index.xlane.f32.xlu0 %v871_v23  ;;  %v964_v22 = vsel %vm9785_vm0, %v304_v17, -inf  ;;  %v961_v23 = vsel %vm9785_vm0, %v303_v18, -inf }
  0x6e   : > { %881 = vmax.index.xlane.f32.xlu1 %v880_v26  ;;  %878 = vmax.index.xlane.f32.xlu0 %v877_v27  ;;  %v9615_v26 = vmov 0.0  }
  0x72   : > { %887 = vmax.index.xlane.f32.xlu1 %v886_v30  ;;  %884 = vmax.index.xlane.f32.xlu0 %v883_v31  ;;  %v970_v30 = vsel %vm9785_vm0, %v306_v24, -inf  ;;  %v967_v31 = vsel %vm9785_vm0, %v305_v25, -inf  ;;  %v320_v25 = vld [vmem:[%s5917_s20 + $0x2c8] sm:$0xff] }
  0x76   : > { %893 = vmax.index.xlane.f32.xlu1 %v892_v34  ;;  %890 = vmax.index.xlane.f32.xlu0 %v889_v35 }
  0x7a   : > { %899 = vmax.index.xlane.f32.xlu1 %v898_v38  ;;  %896 = vmax.index.xlane.f32.xlu0 %v895_v39 }
  0x7e   : > { %905 = vmax.index.xlane.f32.xlu1 %v904_v42  ;;  %902 = vmax.index.xlane.f32.xlu0 %v901_v43  ;;  %v973_v42 = vsel %vm9785_vm0, %v307_v33, -inf  ;;  %v310_v43 = vld [vmem:[%s5917_s20 + $0x278] sm:$0xff] }
  0x82   : > { %911 = vmax.index.xlane.f32.xlu1 %v910_v46  ;;  %908 = vmax.index.xlane.f32.xlu0 %v907_v47 }
  0x86   : > { %917 = vmax.index.xlane.f32.xlu1 %v916_v50  ;;  %914 = vmax.index.xlane.f32.xlu0 %v913_v51  ;;  %v982_v50 = vsel %vm9785_vm0, %v310_v43, -inf  ;;  %v979_v51 = vsel %vm9785_vm0, %v309_v44, -inf }
  0x8a   : > { %923 = vmax.index.xlane.f32.xlu1 %v922_v54  ;;  %920 = vmax.index.xlane.f32.xlu0 %v919_v55 }
  0x8e   : > { %929 = vmax.index.xlane.f32.xlu1 %v928_v58  ;;  %926 = vmax.index.xlane.f32.xlu0 %v925_v59  ;;  %v988_v59 = vsel %vm9785_vm0, %v312_v52, -inf }
  0x92   : > { %935 = vmax.index.xlane.f32.xlu1 %v934_v62  ;;  %932 = vmax.index.xlane.f32.xlu0 %v931_v63  ;;  %v313_v62 = vld [vmem:[%s5917_s20 + $0x290] sm:$0xff] }
  0x93   : > { %v991_v5 = vsel %vm9785_vm0, %v313_v62, -inf }
  0x96   : > { %941 = vmax.index.xlane.f32.xlu1 %v940_v2  ;;  %938 = vmax.index.xlane.f32.xlu0 %v937_v3 }
  0x9a   : > { %947 = vmax.index.xlane.f32.xlu1 %v946_v6  ;;  %944 = vmax.index.xlane.f32.xlu0 %v943_v7  ;;  %v316_v6 = vld [vmem:[%s5917_s20 + $0x2a8] sm:$0xff]  ;;  %v315_v7 = vld [vmem:[%s5917_s20 + $0x2a0] sm:$0xff] }
  0x9b   : > { %v1000_v13 = vsel %vm9785_vm0, %v316_v6, -inf  ;;  %v997_v14 = vsel %vm9785_vm0, %v315_v7, -inf }
  0x9e   : > { %953 = vmax.index.xlane.f32.xlu1 %v952_v10  ;;  %950 = vmax.index.xlane.f32.xlu0 %v949_v11  ;;  %v351_v10 = vld [vmem:[%s5917_s20 + $0x3c0] sm:$0xff] }
  0xa2   : > { %959 = vmax.index.xlane.f32.xlu1 %v958_v15  ;;  %956 = vmax.index.xlane.f32.xlu0 %v955_v16  ;;  %v318_v15 = vld [vmem:[%s5917_s20 + $0x2b8] sm:$0xff]  ;;  %v317_v16 = vld [vmem:[%s5917_s20 + $0x2b0] sm:$0xff] }
  0xa3   : > { %v753_v20 = vpop.xlane.xlu1 %752  ;;  %v747_v21 = vpop.xlane.xlu0 %746  ;;  %v1003_v24 = vsel %vm9785_vm0, %v317_v16, -inf  ;;  %v328_v16 = vld [vmem:[%s5917_s20 + $0x308] sm:$0xff] }
  0xa4   : > { %vm1517_vm1 = vcmp.eq.s32.totalorder %v753_v20, %v6065_v19  ;;  %vm1515_vm2 = vcmp.eq.s32.totalorder %v747_v21, %v6065_v19 }
  0xa5   : > { %v6074_v27 = vsel %vm1517_vm1, 1.0, %v9615_v26  ;;  %v6083_v34 = vsel %vm1515_vm2, 1.0, %v9615_v26 }
  0xa6   : > { %965 = vmax.index.xlane.f32.xlu1 %v964_v22  ;;  %962 = vmax.index.xlane.f32.xlu0 %v961_v23  ;;  %v1006_v23 = vsel %vm9785_vm0, %v318_v15, -inf }
  0xa7   : > { %v756_v28 = vpop.xlane.xlu1 %755  ;;  %v750_v29 = vpop.xlane.xlu0 %749 }
  0xa8   : > { %vm1518_vm3 = vcmp.eq.s32.totalorder %v756_v28, %v6065_v19  ;;  %vm1516_vm4 = vcmp.eq.s32.totalorder %v750_v29, %v6065_v19  ;;  %v319_v28 = vld [vmem:[%s5917_s20 + $0x2c0] sm:$0xff] }
  0xa9   : > { %v6086_v35 = vsel %vm1518_vm3, 1.0, %v9615_v26  ;;  %v6089_v36 = vsel %vm1516_vm4, 1.0, %v9615_v26 }
  0xaa   : > { %971 = vmax.index.xlane.f32.xlu1 %v970_v30  ;;  %968 = vmax.index.xlane.f32.xlu0 %v967_v31  ;;  %v349_v31 = vld [vmem:[%s5917_s20 + $0x3b0] sm:$0xff] }
  0xab   : > { %v762_v39 = vpop.xlane.xlu1 %761  ;;  %v759_v40 = vpop.xlane.xlu0 %758 }
  0xac   : > { %vm1520_vm5 = vcmp.eq.s32.totalorder %v762_v39, %v6065_v19  ;;  %vm1519_vm6 = vcmp.eq.s32.totalorder %v759_v40, %v6065_v19  ;;  %v1012_v39 = vsel %vm9785_vm0, %v320_v25, -inf  ;;  %v1009_v40 = vsel %vm9785_vm0, %v319_v28, -inf }
  0xad   : > { %v6102_v45 = vsel %vm1520_vm5, 1.0, %v9615_v26  ;;  %v6105_v46 = vsel %vm1519_vm6, 1.0, %v9615_v26 }
  0xae   : > { %977 = vmax.index.xlane.f32.xlu1 %v976_v41  ;;  %974 = vmax.index.xlane.f32.xlu0 %v973_v42  ;;  %v322_v41 = vld [vmem:[%s5917_s20 + $0x2d8] sm:$0xff]  ;;  %v321_v42 = vld [vmem:[%s5917_s20 + $0x2d0] sm:$0xff] }
  0xaf   : > { %v768_v48 = vpop.xlane.xlu1 %767  ;;  %v765_v49 = vpop.xlane.xlu0 %764  ;;  %v1015_v52 = vsel %vm9785_vm0, %v321_v42, -inf }
  0xb0   : > { %vm1522_vm7 = vcmp.eq.s32.totalorder %v768_v48, %v6065_v19  ;;  %vm1521_vm8 = vcmp.eq.s32.totalorder %v765_v49, %v6065_v19  ;;  %v345_v48 = vld [vmem:[%s5917_s20 + $0x390] sm:$0xff] }
  0xb1   : > { %v6116_v54 = vsel %vm1522_vm7, 1.0, %v9615_v26  ;;  %v6119_v55 = vsel %vm1521_vm8, 1.0, %v9615_v26 }
  0xb2   : > { %983 = vmax.index.xlane.f32.xlu1 %v982_v50  ;;  %980 = vmax.index.xlane.f32.xlu0 %v979_v51  ;;  %v1018_v51 = vsel %vm9785_vm0, %v322_v41, -inf }
  0xb3   : > { %v774_v57 = vpop.xlane.xlu1 %773  ;;  %v771_v58 = vpop.xlane.xlu0 %770 }
  0xb4   : > { %vm1524_vm9 = vcmp.eq.s32.totalorder %v774_v57, %v6065_v19  ;;  %vm1523_vm10 = vcmp.eq.s32.totalorder %v771_v58, %v6065_v19  ;;  %v323_v57 = vld [vmem:[%s5917_s20 + $0x2e0] sm:$0xff] }
  0xb5   : > { %v6130_v63 = vsel %vm1524_vm9, 1.0, %v9615_v26  ;;  %v6133_v0 = vsel %vm1523_vm10, 1.0, %v9615_v26 }
  0xb6   : > { %989 = vmax.index.xlane.f32.xlu1 %v988_v59  ;;  %986 = vmax.index.xlane.f32.xlu0 %v985_v60 }
  0xb7   : > { %v780_v2 = vpop.xlane.xlu1 %779  ;;  %v777_v3 = vpop.xlane.xlu0 %776 }
  0xb8   : > { %vm1526_vm11 = vcmp.eq.s32.totalorder %v780_v2, %v6065_v19  ;;  %vm1525_vm12 = vcmp.eq.s32.totalorder %v777_v3, %v6065_v19  ;;  %v1024_v2 = vsel %vm9785_vm0, %v324_v53, -inf  ;;  %v1021_v3 = vsel %vm9785_vm0, %v323_v57, -inf  ;;  %v332_v57 = vld [vmem:[%s5917_s20 + $0x328] sm:$0xff] }
  0xb9   : > { %v6144_v8 = vsel %vm1526_vm11, 1.0, %v9615_v26  ;;  %v6147_v9 = vsel %vm1525_vm12, 1.0, %v9615_v26 }
  0xba   : > { %995 = vmax.index.xlane.f32.xlu1 %v994_v4  ;;  %992 = vmax.index.xlane.f32.xlu0 %v991_v5  ;;  %v326_v4 = vld [vmem:[%s5917_s20 + $0x2f8] sm:$0xff]  ;;  %v325_v5 = vld [vmem:[%s5917_s20 + $0x2f0] sm:$0xff] }
  0xbb   : > { %v786_v11 = vpop.xlane.xlu1 %785  ;;  %v783_v12 = vpop.xlane.xlu0 %782  ;;  %v1027_v15 = vsel %vm9785_vm0, %v325_v5, -inf }
  0xbc   : > { %vm1528_vm13 = vcmp.eq.s32.totalorder %v786_v11, %v6065_v19  ;;  %vm1527_vm14 = vcmp.eq.s32.totalorder %v783_v12, %v6065_v19 }
  0xbd   : > { %v6158_v17 = vsel %vm1528_vm13, 1.0, %v9615_v26  ;;  %v6161_v18 = vsel %vm1527_vm14, 1.0, %v9615_v26 }
  0xbe   : > { %1001 = vmax.index.xlane.f32.xlu1 %v1000_v13  ;;  %998 = vmax.index.xlane.f32.xlu0 %v997_v14  ;;  %v1030_v14 = vsel %vm9785_vm0, %v326_v4, -inf }
  0xbf   : > { %v792_v21 = vpop.xlane.xlu1 %791  ;;  %v789_v22 = vpop.xlane.xlu0 %788 }
  0xc0   : > { %vm1530_vm15 = vcmp.eq.s32.totalorder %v792_v21, %v6065_v19  ;;  %vm1529_vm1 = vcmp.eq.s32.totalorder %v789_v22, %v6065_v19  ;;  %v327_v21 = vld [vmem:[%s5917_s20 + $0x300] sm:$0xff] }
  0xc1   : > { %v6172_v29 = vsel %vm1530_vm15, 1.0, %v9615_v26  ;;  %v6175_v30 = vsel %vm1529_vm1, 1.0, %v9615_v26 }
  0xc2   : > { %1007 = vmax.index.xlane.f32.xlu1 %v1006_v23  ;;  %1004 = vmax.index.xlane.f32.xlu0 %v1003_v24  ;;  %v343_v24 = vld [vmem:[%s5917_s20 + $0x380] sm:$0xff] }
  0xc3   : > { %v798_v32 = vpop.xlane.xlu1 %797  ;;  %v795_v33 = vpop.xlane.xlu0 %794  ;;  %v1081_v60 = vsel %vm9785_vm0, %v343_v24, -inf }
  0xc4   : > { %vm1532_vm2 = vcmp.eq.s32.totalorder %v798_v32, %v6065_v19  ;;  %vm1531_vm3 = vcmp.eq.s32.totalorder %v795_v33, %v6065_v19  ;;  %v1036_v32 = vsel %vm9785_vm0, %v328_v16, -inf  ;;  %v1033_v33 = vsel %vm9785_vm0, %v327_v21, -inf }
  0xc5   : > { %v6186_v43 = vsel %vm1532_vm2, 1.0, %v9615_v26  ;;  %v6189_v44 = vsel %vm1531_vm3, 1.0, %v9615_v26 }
  0xc6   : > { %9787 = vst [vmem:[#allocation3_spill] sm:$0xff] %v6186_v43  ;;  %9788 = vst [vmem:[#allocation4_spill] sm:$0xff] %v6189_v44  ;;  %1013 = vmax.index.xlane.f32.xlu1 %v1012_v39  ;;  %1010 = vmax.index.xlane.f32.xlu0 %v1009_v40  ;;  %v330_v39 = vld [vmem:[%s5917_s20 + $0x318] sm:$0xff]  ;;  %v329_v40 = vld [vmem:[%s5917_s20 + $0x310] sm:$0xff] }
  0xc7   : > { %v804_v49 = vpop.xlane.xlu1 %803  ;;  %v801_v50 = vpop.xlane.xlu0 %800  ;;  %v1039_v53 = vsel %vm9785_vm0, %v329_v40, -inf  ;;  %v336_v40 = vld [vmem:[%s5917_s20 + $0x348] sm:$0xff]  ;;  %v387_v44 = vld [vmem:[%s5917_s20 + $0x4e0] sm:$0xff] }
  0xc8   : > { %vm1534_vm4 = vcmp.eq.s32.totalorder %v804_v49, %v6065_v19  ;;  %vm1533_vm5 = vcmp.eq.s32.totalorder %v801_v50, %v6065_v19 }
  0xc9   : > { %v6200_v58 = vsel %vm1534_vm4, 1.0, %v9615_v26  ;;  %v6203_v59 = vsel %vm1533_vm5, 1.0, %v9615_v26 }
  0xca   : > { %9789 = vst [vmem:[#allocation5_spill] sm:$0xff] %v6200_v58  ;;  %9790 = vst [vmem:[#allocation6_spill] sm:$0xff] %v6203_v59  ;;  %1019 = vmax.index.xlane.f32.xlu1 %v1018_v51  ;;  %1016 = vmax.index.xlane.f32.xlu0 %v1015_v52  ;;  %v1042_v52 = vsel %vm9785_vm0, %v330_v39, -inf  ;;  %v385_v59 = vld [vmem:[%s5917_s20 + $0x4d0] sm:$0xff] }
  0xcb   : > { %v810_v61 = vpop.xlane.xlu1 %809  ;;  %v807_v62 = vpop.xlane.xlu0 %806 }
  0xcc   : > { %vm1536_vm6 = vcmp.eq.s32.totalorder %v810_v61, %v6065_v19  ;;  %vm1535_vm7 = vcmp.eq.s32.totalorder %v807_v62, %v6065_v19  ;;  %v331_v61 = vld [vmem:[%s5917_s20 + $0x320] sm:$0xff] }
  0xcd   : > { %v6214_v6 = vsel %vm1536_vm6, 1.0, %v9615_v26  ;;  %v6217_v7 = vsel %vm1535_vm7, 1.0, %v9615_v26 }
  0xce   : > { %9791 = vst [vmem:[#allocation7_spill] sm:$0xff] %v6214_v6  ;;  %9792 = vst [vmem:[#allocation8_spill] sm:$0xff] %v6217_v7  ;;  %1025 = vmax.index.xlane.f32.xlu1 %v1024_v2  ;;  %1022 = vmax.index.xlane.f32.xlu0 %v1021_v3  ;;  %v383_v7 = vld [vmem:[%s5917_s20 + $0x4c0] sm:$0xff] }
  0xcf   : > { %v816_v12 = vpop.xlane.xlu1 %815  ;;  %v813_v13 = vpop.xlane.xlu0 %812 }
  0xd0   : > { %vm1538_vm8 = vcmp.eq.s32.totalorder %v816_v12, %v6065_v19  ;;  %vm1537_vm9 = vcmp.eq.s32.totalorder %v813_v13, %v6065_v19  ;;  %v1048_v12 = vsel %vm9785_vm0, %v332_v57, -inf  ;;  %v1045_v13 = vsel %vm9785_vm0, %v331_v61, -inf }
  0xd1   : > { %v6228_v22 = vsel %vm1538_vm8, 1.0, %v9615_v26  ;;  %v6231_v23 = vsel %vm1537_vm9, 1.0, %v9615_v26 }
  0xd2   : > { %9793 = vst [vmem:[#allocation9_spill] sm:$0xff] %v6228_v22  ;;  %9794 = vst [vmem:[#allocation10_spill] sm:$0xff] %v6231_v23  ;;  %1031 = vmax.index.xlane.f32.xlu1 %v1030_v14  ;;  %1028 = vmax.index.xlane.f32.xlu0 %v1027_v15  ;;  %v334_v14 = vld [vmem:[%s5917_s20 + $0x338] sm:$0xff]  ;;  %v333_v15 = vld [vmem:[%s5917_s20 + $0x330] sm:$0xff] }
  0xd3   : > { %v822_v25 = vpop.xlane.xlu1 %821  ;;  %v819_v28 = vpop.xlane.xlu0 %818  ;;  %v1051_v39 = vsel %vm9785_vm0, %v333_v15, -inf  ;;  %v381_v23 = vld [vmem:[%s5917_s20 + $0x4b0] sm:$0xff] }
  0xd4   : > { %vm1540_vm10 = vcmp.eq.s32.totalorder %v822_v25, %v6065_v19  ;;  %vm1539_vm11 = vcmp.eq.s32.totalorder %v819_v28, %v6065_v19  ;;  %v341_v25 = vld [vmem:[%s5917_s20 + $0x370] sm:$0xff] }
  0xd5   : > { %v6242_v41 = vsel %vm1540_vm10, 1.0, %v9615_v26  ;;  %v6245_v42 = vsel %vm1539_vm11, 1.0, %v9615_v26  ;;  %v1075_v49 = vsel %vm9785_vm0, %v341_v25, -inf }
  0xd6   : > { %9795 = vst [vmem:[#allocation11_spill] sm:$0xff] %v6242_v41  ;;  %9796 = vst [vmem:[#allocation12_spill] sm:$0xff] %v6245_v42  ;;  %1037 = vmax.index.xlane.f32.xlu1 %v1036_v32  ;;  %1034 = vmax.index.xlane.f32.xlu0 %v1033_v33  ;;  %v1054_v33 = vsel %vm9785_vm0, %v334_v14, -inf  ;;  %v379_v42 = vld [vmem:[%s5917_s20 + $0x4a0] sm:$0xff] }
  0xd7   : > { %v828_v50 = vpop.xlane.xlu1 %827  ;;  %v825_v51 = vpop.xlane.xlu0 %824 }
  0xd8   : > { %vm1542_vm12 = vcmp.eq.s32.totalorder %v828_v50, %v6065_v19  ;;  %vm1541_vm13 = vcmp.eq.s32.totalorder %v825_v51, %v6065_v19  ;;  %v335_v50 = vld [vmem:[%s5917_s20 + $0x340] sm:$0xff] }
  0xd9   : > { %v6256_v62 = vsel %vm1542_vm12, 1.0, %v9615_v26  ;;  %v6259_v2 = vsel %vm1541_vm13, 1.0, %v9615_v26 }
  0xda   : > { %9797 = vst [vmem:[#allocation13_spill] sm:$0xff] %v6256_v62  ;;  %9798 = vst [vmem:[#allocation14_spill] sm:$0xff] %v6259_v2  ;;  %1043 = vmax.index.xlane.f32.xlu1 %v1042_v52  ;;  %1040 = vmax.index.xlane.f32.xlu0 %v1039_v53  ;;  %v377_v2 = vld [vmem:[%s5917_s20 + $0x490] sm:$0xff] }
  0xdb   : > { %v834_v4 = vpop.xlane.xlu1 %833  ;;  %v831_v5 = vpop.xlane.xlu0 %830 }
  0xdc   : > { %vm1544_vm14 = vcmp.eq.s32.totalorder %v834_v4, %v6065_v19  ;;  %vm1543_vm15 = vcmp.eq.s32.totalorder %v831_v5, %v6065_v19  ;;  %v1060_v4 = vsel %vm9785_vm0, %v336_v40, -inf  ;;  %v1057_v5 = vsel %vm9785_vm0, %v335_v50, -inf  ;;  %v340_v50 = vld [vmem:[%s5917_s20 + $0x368] sm:$0xff] }
  0xdd   : > { %v6270_v16 = vsel %vm1544_vm14, 1.0, %v9615_v26  ;;  %v6273_v21 = vsel %vm1543_vm15, 1.0, %v9615_v26 }
  0xde   : > { %9799 = vst [vmem:[#allocation15_spill] sm:$0xff] %v6270_v16  ;;  %9800 = vst [vmem:[#allocation16_spill] sm:$0xff] %v6273_v21  ;;  %1049 = vmax.index.xlane.f32.xlu1 %v1048_v12  ;;  %1046 = vmax.index.xlane.f32.xlu0 %v1045_v13  ;;  %v338_v12 = vld [vmem:[%s5917_s20 + $0x358] sm:$0xff]  ;;  %v337_v13 = vld [vmem:[%s5917_s20 + $0x350] sm:$0xff] }
  0xdf   : > { %v840_v28 = vpop.xlane.xlu1 %839  ;;  %v837_v32 = vpop.xlane.xlu0 %836  ;;  %v1063_v40 = vsel %vm9785_vm0, %v337_v13, -inf  ;;  %v375_v21 = vld [vmem:[%s5917_s20 + $0x480] sm:$0xff] }
  0xe0   : > { %vm1546_vm1 = vcmp.eq.s32.totalorder %v840_v28, %v6065_v19  ;;  %vm1545_vm2 = vcmp.eq.s32.totalorder %v837_v32, %v6065_v19 }
  0xe1   : > { %v6284_v51 = vsel %vm1546_vm1, 1.0, %v9615_v26  ;;  %v6287_v52 = vsel %vm1545_vm2, 1.0, %v9615_v26 }
  0xe2   : > { %9801 = vst [vmem:[#allocation17_spill] sm:$0xff] %v6284_v51  ;;  %9802 = vst [vmem:[#allocation18_spill] sm:$0xff] %v6287_v52  ;;  %1055 = vmax.index.xlane.f32.xlu1 %v1054_v33  ;;  %1052 = vmax.index.xlane.f32.xlu0 %v1051_v39  ;;  %v1066_v39 = vsel %vm9785_vm0, %v338_v12, -inf  ;;  %v373_v52 = vld [vmem:[%s5917_s20 + $0x470] sm:$0xff] }
  0xe3   : > { %v846_v57 = vpop.xlane.xlu1 %845  ;;  %v843_v61 = vpop.xlane.xlu0 %842 }
  0xe4   : > { %vm1548_vm3 = vcmp.eq.s32.totalorder %v846_v57, %v6065_v19  ;;  %vm1547_vm4 = vcmp.eq.s32.totalorder %v843_v61, %v6065_v19  ;;  %v339_v57 = vld [vmem:[%s5917_s20 + $0x360] sm:$0xff] }
  0xe5   : > { %v6298_v14 = vsel %vm1548_vm3, 1.0, %v9615_v26  ;;  %v6301_v15 = vsel %vm1547_vm4, 1.0, %v9615_v26  ;;  %v1069_v53 = vsel %vm9785_vm0, %v339_v57, -inf }
  0xe6   : > { %1061 = vmax.index.xlane.f32.xlu1 %v1060_v4  ;;  %1058 = vmax.index.xlane.f32.xlu0 %v1057_v5  ;;  %v347_v5 = vld [vmem:[%s5917_s20 + $0x3a0] sm:$0xff] }
  0xe7   : > { %v852_v32 = vpop.xlane.xlu1 %851  ;;  %v849_v33 = vpop.xlane.xlu0 %848 }
  0xe8   : > { %vm1550_vm5 = vcmp.eq.s32.totalorder %v852_v32, %v6065_v19  ;;  %vm1549_vm6 = vcmp.eq.s32.totalorder %v849_v33, %v6065_v19  ;;  %v1072_v32 = vsel %vm9785_vm0, %v340_v50, -inf  ;;  %v342_v33 = vld [vmem:[%s5917_s20 + $0x378] sm:$0xff] }
  0xe9   : > { %v6312_v61 = vsel %vm1550_vm5, 1.0, %v9615_v26  ;;  %v6315_v4 = vsel %vm1549_vm6, 1.0, %v9615_v26 }
  0xea   : > { %1067 = vmax.index.xlane.f32.xlu1 %v1066_v39  ;;  %1064 = vmax.index.xlane.f32.xlu0 %v1063_v40 }
  0xeb   : > { %v858_v12 = vpop.xlane.xlu1 %857  ;;  %v855_v13 = vpop.xlane.xlu0 %854 }
  0xec   : > { %vm1552_vm7 = vcmp.eq.s32.totalorder %v858_v12, %v6065_v19  ;;  %vm1551_vm8 = vcmp.eq.s32.totalorder %v855_v13, %v6065_v19  ;;  %v1078_v12 = vsel %vm9785_vm0, %v342_v33, -inf  ;;  %v344_v13 = vld [vmem:[%s5917_s20 + $0x388] sm:$0xff] }
  0xed   : > { %v6326_v3 = vsel %vm1552_vm7, 1.0, %v9615_v26  ;;  %v6329_v39 = vsel %vm1551_vm8, 1.0, %v9615_v26 }
  0xee   : > { %1073 = vmax.index.xlane.f32.xlu1 %v1072_v32  ;;  %1070 = vmax.index.xlane.f32.xlu0 %v1069_v53  ;;  %v1087_v53 = vsel %vm9785_vm0, %v345_v48, -inf }
  0xef   : > { %v864_v50 = vpop.xlane.xlu1 %863  ;;  %v861_v57 = vpop.xlane.xlu0 %860 }
  0xf0   : > { %vm1554_vm9 = vcmp.eq.s32.totalorder %v864_v50, %v6065_v19  ;;  %vm1553_vm10 = vcmp.eq.s32.totalorder %v861_v57, %v6065_v19  ;;  %v1084_v50 = vsel %vm9785_vm0, %v344_v13, -inf  ;;  %v346_v57 = vld [vmem:[%s5917_s20 + $0x398] sm:$0xff] }
  0xf1   : > { %v6340_v11 = vsel %vm1554_vm9, 1.0, %v9615_v26  ;;  %v6343_v32 = vsel %vm1553_vm10, 1.0, %v9615_v26 }
  0xf2   : > { %1079 = vmax.index.xlane.f32.xlu1 %v1078_v12  ;;  %1076 = vmax.index.xlane.f32.xlu0 %v1075_v49  ;;  %v1093_v49 = vsel %vm9785_vm0, %v347_v5, -inf }
  0xf3   : > { %v870_v25 = vpop.xlane.xlu1 %869  ;;  %v867_v33 = vpop.xlane.xlu0 %866 }
  0xf4   : > { %vm1556_vm11 = vcmp.eq.s32.totalorder %v870_v25, %v6065_v19  ;;  %vm1555_vm12 = vcmp.eq.s32.totalorder %v867_v33, %v6065_v19  ;;  %v1090_v25 = vsel %vm9785_vm0, %v346_v57, -inf  ;;  %v348_v33 = vld [vmem:[%s5917_s20 + $0x3a8] sm:$0xff] }
  0xf5   : > { %v6354_v40 = vsel %vm1556_vm11, 1.0, %v9615_v26  ;;  %v6357_v12 = vsel %vm1555_vm12, 1.0, %v9615_v26 }
  0xf6   : > { %1085 = vmax.index.xlane.f32.xlu1 %v1084_v50  ;;  %1082 = vmax.index.xlane.f32.xlu0 %v1081_v60  ;;  %v1099_v60 = vsel %vm9785_vm0, %v349_v31, -inf }
  0xf7   : > { %v876_v24 = vpop.xlane.xlu1 %875  ;;  %v873_v13 = vpop.xlane.xlu0 %872 }
  0xf8   : > { %vm1558_vm13 = vcmp.eq.s32.totalorder %v876_v24, %v6065_v19  ;;  %vm1557_vm14 = vcmp.eq.s32.totalorder %v873_v13, %v6065_v19  ;;  %v1096_v24 = vsel %vm9785_vm0, %v348_v33, -inf  ;;  %v350_v13 = vld [vmem:[%s5917_s20 + $0x3b8] sm:$0xff] }
  0xf9   : > { %v6368_v28 = vsel %vm1558_vm13, 1.0, %v9615_v26  ;;  %v6371_v50 = vsel %vm1557_vm14, 1.0, %v9615_v26 }
  0xfa   : > { %1091 = vmax.index.xlane.f32.xlu1 %v1090_v25  ;;  %1088 = vmax.index.xlane.f32.xlu0 %v1087_v53  ;;  %v1105_v53 = vsel %vm9785_vm0, %v351_v10, -inf }
  0xfb   : > { %v882_v48 = vpop.xlane.xlu1 %881  ;;  %v879_v57 = vpop.xlane.xlu0 %878 }
  0xfc   : > { %vm1560_vm15 = vcmp.eq.s32.totalorder %v882_v48, %v6065_v19  ;;  %vm1559_vm1 = vcmp.eq.s32.totalorder %v879_v57, %v6065_v19  ;;  %v1102_v48 = vsel %vm9785_vm0, %v350_v13, -inf  ;;  %v352_v57 = vld [vmem:[%s5917_s20 + $0x3c8] sm:$0xff] }
  0xfd   : > { %v6382_v20 = vsel %vm1560_vm15, 1.0, %v9615_v26  ;;  %v6385_v25 = vsel %vm1559_vm1, 1.0, %v9615_v26 }
  0xfe   : > { %1097 = vmax.index.xlane.f32.xlu1 %v1096_v24  ;;  %1094 = vmax.index.xlane.f32.xlu0 %v1093_v49  ;;  %v1111_v49 = vsel %vm9785_vm0, %v353_v56, -inf }
  0xff   : > { %v888_v5 = vpop.xlane.xlu1 %887  ;;  %v885_v33 = vpop.xlane.xlu0 %884 }
 0x100   : > { %vm1562_vm2 = vcmp.eq.s32.totalorder %v888_v5, %v6065_v19  ;;  %vm1561_vm3 = vcmp.eq.s32.totalorder %v885_v33, %v6065_v19  ;;  %v1108_v5 = vsel %vm9785_vm0, %v352_v57, -inf  ;;  %v354_v33 = vld [vmem:[%s5917_s20 + $0x3d8] sm:$0xff] }
 0x101   : > { %v6396_v1 = vsel %vm1562_vm2, 1.0, %v9615_v26  ;;  %v6399_v24 = vsel %vm1561_vm3, 1.0, %v9615_v26 }
 0x102   : > { %1103 = vmax.index.xlane.f32.xlu1 %v1102_v48  ;;  %1100 = vmax.index.xlane.f32.xlu0 %v1099_v60  ;;  %v1117_v60 = vsel %vm9785_vm0, %v355_v37, -inf }
 0x103   : > { %v894_v31 = vpop.xlane.xlu1 %893  ;;  %v891_v13 = vpop.xlane.xlu0 %890 }
 0x104   : > { %vm1564_vm4 = vcmp.eq.s32.totalorder %v894_v31, %v6065_v19  ;;  %vm1563_vm5 = vcmp.eq.s32.totalorder %v891_v13, %v6065_v19  ;;  %v1114_v31 = vsel %vm9785_vm0, %v354_v33, -inf  ;;  %v356_v13 = vld [vmem:[%s5917_s20 + $0x3e8] sm:$0xff] }
 0x105   : > { %v6410_v47 = vsel %vm1564_vm4, 1.0, %v9615_v26  ;;  %v6413_v48 = vsel %vm1563_vm5, 1.0, %v9615_v26 }
 0x106   : > { %9803 = vst [vmem:[#allocation19_spill] sm:$0xff] %v6410_v47  ;;  %9804 = vst [vmem:[#allocation20_spill] sm:$0xff] %v6413_v48  ;;  %1109 = vmax.index.xlane.f32.xlu1 %v1108_v5  ;;  %1106 = vmax.index.xlane.f32.xlu0 %v1105_v53  ;;  %v9807_v48 = vmov 0.0  }
 0x107   : > { %v900_v10 = vpop.xlane.xlu1 %899  ;;  %v897_v57 = vpop.xlane.xlu0 %896 }
 0x108   : > { %vm1566_vm6 = vcmp.eq.s32.totalorder %v900_v10, %v6065_v19  ;;  %vm1565_vm7 = vcmp.eq.s32.totalorder %v897_v57, %v6065_v19  ;;  %v1120_v10 = vsel %vm9785_vm0, %v356_v13, -inf  ;;  %v358_v57 = vld [vmem:[%s5917_s20 + $0x3f8] sm:$0xff] }
 0x109   : > { %v6424_v38 = vsel %vm1566_vm6, 1.0, %v9615_v26  ;;  %v6427_v5 = vsel %vm1565_vm7, 1.0, %v9615_v26  ;;  %v357_v26 = vld [vmem:[%s5917_s20 + $0x3f0] sm:$0xff] }
 0x10a   : > { %9805 = vst [vmem:[#allocation21_spill] sm:$0xff] %v6424_v38  ;;  %9806 = vst [vmem:[#allocation22_spill] sm:$0xff] %v6427_v5  ;;  %1115 = vmax.index.xlane.f32.xlu1 %v1114_v31  ;;  %1112 = vmax.index.xlane.f32.xlu0 %v1111_v49  ;;  %v1123_v53 = vsel %vm9785_vm0, %v357_v26, -inf  ;;  %v359_v5 = vld [vmem:[%s5917_s20 + $0x400] sm:$0xff] }
 0x10b   : > { %v906_v56 = vpop.xlane.xlu1 %905  ;;  %v903_v33 = vpop.xlane.xlu0 %902  ;;  %v1129_v49 = vsel %vm9785_vm0, %v359_v5, -inf }
 0x10c   : > { %vm1568_vm8 = vcmp.eq.s32.totalorder %v906_v56, %v6065_v19  ;;  %vm1567_vm9 = vcmp.eq.s32.totalorder %v903_v33, %v6065_v19  ;;  %v1126_v56 = vsel %vm9785_vm0, %v358_v57, -inf  ;;  %v360_v33 = vld [vmem:[%s5917_s20 + $0x408] sm:$0xff] }
 0x10d   : > { %v6438_v47 = vsel %vm1568_vm8, 1.0, %v9807_v48  ;;  %v6441_v31 = vsel %vm1567_vm9, 1.0, %v9807_v48 }
 0x10e   : > { %9808 = vst [vmem:[#allocation23_spill] sm:$0xff] %v6438_v47  ;;  %9809 = vst [vmem:[#allocation24_spill] sm:$0xff] %v6441_v31  ;;  %1121 = vmax.index.xlane.f32.xlu1 %v1120_v10  ;;  %1118 = vmax.index.xlane.f32.xlu0 %v1117_v60  ;;  %v361_v31 = vld [vmem:[%s5917_s20 + $0x410] sm:$0xff] }
 0x10f   : > { %v912_v37 = vpop.xlane.xlu1 %911  ;;  %v909_v13 = vpop.xlane.xlu0 %908  ;;  %v1135_v60 = vsel %vm9785_vm0, %v361_v31, -inf }
 0x110   : > { %vm1570_vm10 = vcmp.eq.s32.totalorder %v912_v37, %v6065_v19  ;;  %vm1569_vm11 = vcmp.eq.s32.totalorder %v909_v13, %v6065_v19  ;;  %v1132_v37 = vsel %vm9785_vm0, %v360_v33, -inf  ;;  %v362_v13 = vld [vmem:[%s5917_s20 + $0x418] sm:$0xff] }
 0x111   : > { %v6452_v38 = vsel %vm1570_vm10, 1.0, %v9807_v48  ;;  %v6455_v10 = vsel %vm1569_vm11, 1.0, %v9807_v48 }
 0x112   : > { %9810 = vst [vmem:[#allocation25_spill] sm:$0xff] %v6452_v38  ;;  %9811 = vst [vmem:[#allocation26_spill] sm:$0xff] %v6455_v10  ;;  %1127 = vmax.index.xlane.f32.xlu1 %v1126_v56  ;;  %1124 = vmax.index.xlane.f32.xlu0 %v1123_v53  ;;  %v363_v10 = vld [vmem:[%s5917_s20 + $0x420] sm:$0xff] }
 0x113   : > { %v918_v26 = vpop.xlane.xlu1 %917  ;;  %v915_v57 = vpop.xlane.xlu0 %914  ;;  %v1141_v53 = vsel %vm9785_vm0, %v363_v10, -inf }
 0x114   : > { %vm1572_vm12 = vcmp.eq.s32.totalorder %v918_v26, %v6065_v19  ;;  %vm1571_vm13 = vcmp.eq.s32.totalorder %v915_v57, %v6065_v19  ;;  %v1138_v26 = vsel %vm9785_vm0, %v362_v13, -inf  ;;  %v364_v57 = vld [vmem:[%s5917_s20 + $0x428] sm:$0xff] }
 0x115   : > { %v6466_v47 = vsel %vm1572_vm12, 1.0, %v9807_v48  ;;  %v6469_v56 = vsel %vm1571_vm13, 1.0, %v9807_v48 }
 0x116   : > { %9812 = vst [vmem:[#allocation27_spill] sm:$0xff] %v6466_v47  ;;  %9813 = vst [vmem:[#allocation28_spill] sm:$0xff] %v6469_v56  ;;  %1133 = vmax.index.xlane.f32.xlu1 %v1132_v37  ;;  %1130 = vmax.index.xlane.f32.xlu0 %v1129_v49  ;;  %v365_v56 = vld [vmem:[%s5917_s20 + $0x430] sm:$0xff] }
 0x117   : > { %v924_v5 = vpop.xlane.xlu1 %923  ;;  %v921_v33 = vpop.xlane.xlu0 %920  ;;  %v1147_v49 = vsel %vm9785_vm0, %v365_v56, -inf }
 0x118   : > { %vm1574_vm14 = vcmp.eq.s32.totalorder %v924_v5, %v6065_v19  ;;  %vm1573_vm15 = vcmp.eq.s32.totalorder %v921_v33, %v6065_v19  ;;  %v1144_v5 = vsel %vm9785_vm0, %v364_v57, -inf  ;;  %v366_v33 = vld [vmem:[%s5917_s20 + $0x438] sm:$0xff] }
 0x119   : > { %v6480_v38 = vsel %vm1574_vm14, 1.0, %v9807_v48  ;;  %v6483_v37 = vsel %vm1573_vm15, 1.0, %v9807_v48 }
 0x11a   : > { %9814 = vst [vmem:[#allocation29_spill] sm:$0xff] %v6480_v38  ;;  %9815 = vst [vmem:[#allocation30_spill] sm:$0xff] %v6483_v37  ;;  %1139 = vmax.index.xlane.f32.xlu1 %v1138_v26  ;;  %1136 = vmax.index.xlane.f32.xlu0 %v1135_v60  ;;  %v367_v37 = vld [vmem:[%s5917_s20 + $0x440] sm:$0xff] }
 0x11b   : > { %v930_v31 = vpop.xlane.xlu1 %929  ;;  %v927_v13 = vpop.xlane.xlu0 %926  ;;  %v1153_v60 = vsel %vm9785_vm0, %v367_v37, -inf }
 0x11c   : > { %vm1576_vm1 = vcmp.eq.s32.totalorder %v930_v31, %v6065_v19  ;;  %vm1575_vm2 = vcmp.eq.s32.totalorder %v927_v13, %v6065_v19  ;;  %v1150_v31 = vsel %vm9785_vm0, %v366_v33, -inf  ;;  %v368_v13 = vld [vmem:[%s5917_s20 + $0x448] sm:$0xff] }
 0x11d   : > { %v6494_v47 = vsel %vm1576_vm1, 1.0, %v9807_v48  ;;  %v6497_v26 = vsel %vm1575_vm2, 1.0, %v9807_v48 }
 0x11e   : > { %9816 = vst [vmem:[#allocation31_spill] sm:$0xff] %v6494_v47  ;;  %9817 = vst [vmem:[#allocation32_spill] sm:$0xff] %v6497_v26  ;;  %1145 = vmax.index.xlane.f32.xlu1 %v1144_v5  ;;  %1142 = vmax.index.xlane.f32.xlu0 %v1141_v53  ;;  %v369_v26 = vld [vmem:[%s5917_s20 + $0x450] sm:$0xff] }
 0x11f   : > { %v936_v10 = vpop.xlane.xlu1 %935  ;;  %v933_v57 = vpop.xlane.xlu0 %932  ;;  %v1159_v53 = vsel %vm9785_vm0, %v369_v26, -inf }
 0x120   : > { %vm1578_vm3 = vcmp.eq.s32.totalorder %v936_v10, %v6065_v19  ;;  %vm1577_vm4 = vcmp.eq.s32.totalorder %v933_v57, %v6065_v19  ;;  %v1156_v10 = vsel %vm9785_vm0, %v368_v13, -inf  ;;  %v370_v57 = vld [vmem:[%s5917_s20 + $0x458] sm:$0xff] }
 0x121   : > { %v6508_v38 = vsel %vm1578_vm3, 1.0, %v9807_v48  ;;  %v6511_v5 = vsel %vm1577_vm4, 1.0, %v9807_v48 }
 0x122   : > { %9818 = vst [vmem:[#allocation33_spill] sm:$0xff] %v6508_v38  ;;  %9819 = vst [vmem:[#allocation34_spill] sm:$0xff] %v6511_v5  ;;  %1151 = vmax.index.xlane.f32.xlu1 %v1150_v31  ;;  %1148 = vmax.index.xlane.f32.xlu0 %v1147_v49  ;;  %v371_v5 = vld [vmem:[%s5917_s20 + $0x460] sm:$0xff] }
 0x123   : > { %v942_v56 = vpop.xlane.xlu1 %941  ;;  %v939_v33 = vpop.xlane.xlu0 %938  ;;  %v1165_v49 = vsel %vm9785_vm0, %v371_v5, -inf }
 0x124   : > { %vm1580_vm5 = vcmp.eq.s32.totalorder %v942_v56, %v6065_v19  ;;  %vm1579_vm6 = vcmp.eq.s32.totalorder %v939_v33, %v6065_v19  ;;  %v1162_v56 = vsel %vm9785_vm0, %v370_v57, -inf  ;;  %v372_v33 = vld [vmem:[%s5917_s20 + $0x468] sm:$0xff] }
 0x125   : > { %v6522_v47 = vsel %vm1580_vm5, 1.0, %v9807_v48  ;;  %v6525_v31 = vsel %vm1579_vm6, 1.0, %v9807_v48 }
 0x126   : > { %1157 = vmax.index.xlane.f32.xlu1 %v1156_v10  ;;  %1154 = vmax.index.xlane.f32.xlu0 %v1153_v60  ;;  %v1171_v60 = vsel %vm9785_vm0, %v373_v52, -inf }
 0x127   : > { %v948_v37 = vpop.xlane.xlu1 %947  ;;  %v945_v13 = vpop.xlane.xlu0 %944 }
 0x128   : > { %vm1582_vm7 = vcmp.eq.s32.totalorder %v948_v37, %v6065_v19  ;;  %vm1581_vm8 = vcmp.eq.s32.totalorder %v945_v13, %v6065_v19  ;;  %v1168_v37 = vsel %vm9785_vm0, %v372_v33, -inf  ;;  %v374_v13 = vld [vmem:[%s5917_s20 + $0x478] sm:$0xff] }
 0x129   : > { %v6536_v38 = vsel %vm1582_vm7, 1.0, %v9807_v48  ;;  %v6539_v10 = vsel %vm1581_vm8, 1.0, %v9807_v48 }
 0x12a   : > { %1163 = vmax.index.xlane.f32.xlu1 %v1162_v56  ;;  %1160 = vmax.index.xlane.f32.xlu0 %v1159_v53  ;;  %v1177_v53 = vsel %vm9785_vm0, %v375_v21, -inf }
 0x12b   : > { %v954_v26 = vpop.xlane.xlu1 %953  ;;  %v951_v57 = vpop.xlane.xlu0 %950 }
 0x12c   : > { %vm1584_vm9 = vcmp.eq.s32.totalorder %v954_v26, %v6065_v19  ;;  %vm1583_vm10 = vcmp.eq.s32.totalorder %v951_v57, %v6065_v19  ;;  %v1174_v26 = vsel %vm9785_vm0, %v374_v13, -inf  ;;  %v376_v57 = vld [vmem:[%s5917_s20 + $0x488] sm:$0xff] }
 0x12d   : > { %v6550_v51 = vsel %vm1584_vm9, 1.0, %v9807_v48  ;;  %v6553_v56 = vsel %vm1583_vm10, 1.0, %v9807_v48 }
 0x12e   : > { %1169 = vmax.index.xlane.f32.xlu1 %v1168_v37  ;;  %1166 = vmax.index.xlane.f32.xlu0 %v1165_v49  ;;  %v1183_v49 = vsel %vm9785_vm0, %v377_v2, -inf }
 0x12f   : > { %v960_v5 = vpop.xlane.xlu1 %959  ;;  %v957_v33 = vpop.xlane.xlu0 %956 }
 0x130   : > { %vm1586_vm11 = vcmp.eq.s32.totalorder %v960_v5, %v6065_v19  ;;  %vm1585_vm12 = vcmp.eq.s32.totalorder %v957_v33, %v6065_v19  ;;  %v1180_v5 = vsel %vm9785_vm0, %v376_v57, -inf  ;;  %v378_v33 = vld [vmem:[%s5917_s20 + $0x498] sm:$0xff] }
 0x131   : > { %v6564_v16 = vsel %vm1586_vm11, 1.0, %v9807_v48  ;;  %v6567_v37 = vsel %vm1585_vm12, 1.0, %v9807_v48 }
 0x132   : > { %1175 = vmax.index.xlane.f32.xlu1 %v1174_v26  ;;  %1172 = vmax.index.xlane.f32.xlu0 %v1171_v60  ;;  %v1189_v60 = vsel %vm9785_vm0, %v379_v42, -inf }
 0x133   : > { %v966_v52 = vpop.xlane.xlu1 %965  ;;  %v963_v13 = vpop.xlane.xlu0 %962 }
 0x134   : > { %vm1588_vm13 = vcmp.eq.s32.totalorder %v966_v52, %v6065_v19  ;;  %vm1587_vm14 = vcmp.eq.s32.totalorder %v963_v13, %v6065_v19  ;;  %v1186_v52 = vsel %vm9785_vm0, %v378_v33, -inf  ;;  %v380_v13 = vld [vmem:[%s5917_s20 + $0x4a8] sm:$0xff] }
 0x135   : > { %v6578_v62 = vsel %vm1588_vm13, 1.0, %v9807_v48  ;;  %v6581_v26 = vsel %vm1587_vm14, 1.0, %v9807_v48 }
 0x136   : > { %1181 = vmax.index.xlane.f32.xlu1 %v1180_v5  ;;  %1178 = vmax.index.xlane.f32.xlu0 %v1177_v53  ;;  %v1195_v53 = vsel %vm9785_vm0, %v381_v23, -inf }
 0x137   : > { %v972_v21 = vpop.xlane.xlu1 %971  ;;  %v969_v57 = vpop.xlane.xlu0 %968 }
 0x138   : > { %vm1590_vm15 = vcmp.eq.s32.totalorder %v972_v21, %v6065_v19  ;;  %vm1589_vm1 = vcmp.eq.s32.totalorder %v969_v57, %v6065_v19  ;;  %v1192_v21 = vsel %vm9785_vm0, %v380_v13, -inf  ;;  %v382_v57 = vld [vmem:[%s5917_s20 + $0x4b8] sm:$0xff] }
 0x139   : > { %v6592_v41 = vsel %vm1590_vm15, 1.0, %v9807_v48  ;;  %v6595_v5 = vsel %vm1589_vm1, 1.0, %v9807_v48 }
 0x13a   : > { %1187 = vmax.index.xlane.f32.xlu1 %v1186_v52  ;;  %1184 = vmax.index.xlane.f32.xlu0 %v1183_v49  ;;  %v1201_v49 = vsel %vm9785_vm0, %v383_v7, -inf }
 0x13b   : > { %v978_v2 = vpop.xlane.xlu1 %977  ;;  %v975_v33 = vpop.xlane.xlu0 %974 }
 0x13c   : > { %vm1592_vm2 = vcmp.eq.s32.totalorder %v978_v2, %v6065_v19  ;;  %vm1591_vm3 = vcmp.eq.s32.totalorder %v975_v33, %v6065_v19  ;;  %v1198_v2 = vsel %vm9785_vm0, %v382_v57, -inf  ;;  %v384_v33 = vld [vmem:[%s5917_s20 + $0x4c8] sm:$0xff] }
 0x13d   : > { %v6606_v22 = vsel %vm1592_vm2, 1.0, %v9807_v48  ;;  %v6609_v52 = vsel %vm1591_vm3, 1.0, %v9807_v48 }
 0x13e   : > { %1193 = vmax.index.xlane.f32.xlu1 %v1192_v21  ;;  %1190 = vmax.index.xlane.f32.xlu0 %v1189_v60  ;;  %v1207_v60 = vsel %vm9785_vm0, %v385_v59, -inf }
 0x13f   : > { %v984_v42 = vpop.xlane.xlu1 %983  ;;  %v981_v13 = vpop.xlane.xlu0 %980 }
 0x140   : > { %vm1594_vm4 = vcmp.eq.s32.totalorder %v984_v42, %v6065_v19  ;;  %vm1593_vm5 = vcmp.eq.s32.totalorder %v981_v13, %v6065_v19  ;;  %v1204_v42 = vsel %vm9785_vm0, %v384_v33, -inf  ;;  %v386_v13 = vld [vmem:[%s5917_s20 + $0x4d8] sm:$0xff] }
 0x141   : > { %v6620_v6 = vsel %vm1594_vm4, 1.0, %v9807_v48  ;;  %v6623_v21 = vsel %vm1593_vm5, 1.0, %v9807_v48 }
 0x142   : > { %1199 = vmax.index.xlane.f32.xlu1 %v1198_v2  ;;  %1196 = vmax.index.xlane.f32.xlu0 %v1195_v53  ;;  %v1213_v53 = vsel %vm9785_vm0, %v387_v44, -inf }
 0x143   : > { %v990_v23 = vpop.xlane.xlu1 %989  ;;  %v987_v57 = vpop.xlane.xlu0 %986 }
 0x144   : > { %vm1596_vm6 = vcmp.eq.s32.totalorder %v990_v23, %v6065_v19  ;;  %vm1595_vm7 = vcmp.eq.s32.totalorder %v987_v57, %v6065_v19  ;;  %v1210_v23 = vsel %vm9785_vm0, %v386_v13, -inf  ;;  %v388_v57 = vld [vmem:[%s5917_s20 + $0x4e8] sm:$0xff] }
 0x145   : > { %v6634_v58 = vsel %vm1596_vm6, 1.0, %v9807_v48  ;;  %v6637_v2 = vsel %vm1595_vm7, 1.0, %v9807_v48 }
 0x146   : > { %9820 = vst [vmem:[#allocation35_spill] sm:$0xff] %v6634_v58  ;;  %9821 = vst [vmem:[#allocation36_spill] sm:$0xff] %v6637_v2  ;;  %1205 = vmax.index.xlane.f32.xlu1 %v1204_v42  ;;  %1202 = vmax.index.xlane.f32.xlu0 %v1201_v49  ;;  %v389_v2 = vld [vmem:[%s5917_s20 + $0x4f0] sm:$0xff] }
 0x147   : > { %v996_v7 = vpop.xlane.xlu1 %995  ;;  %v993_v33 = vpop.xlane.xlu0 %992  ;;  %v1219_v49 = vsel %vm9785_vm0, %v389_v2, -inf }
 0x148   : > { %vm1598_vm8 = vcmp.eq.s32.totalorder %v996_v7, %v6065_v19  ;;  %vm1597_vm9 = vcmp.eq.s32.totalorder %v993_v33, %v6065_v19  ;;  %v1216_v7 = vsel %vm9785_vm0, %v388_v57, -inf  ;;  %v390_v33 = vld [vmem:[%s5917_s20 + $0x4f8] sm:$0xff] }
 0x149   : > { %v6648_v43 = vsel %vm1598_vm8, 1.0, %v9807_v48  ;;  %v6651_v42 = vsel %vm1597_vm9, 1.0, %v9807_v48 }
 0x14a   : > { %9822 = vst [vmem:[#allocation37_spill] sm:$0xff] %v6648_v43  ;;  %9823 = vst [vmem:[#allocation38_spill] sm:$0xff] %v6651_v42  ;;  %1211 = vmax.index.xlane.f32.xlu1 %v1210_v23  ;;  %1208 = vmax.index.xlane.f32.xlu0 %v1207_v60  ;;  %v391_v42 = vld [vmem:[%s5917_s20 + $0x500] sm:$0xff] }
 0x14b   : > { %v1002_v59 = vpop.xlane.xlu1 %1001  ;;  %v999_v13 = vpop.xlane.xlu0 %998  ;;  %v1225_v60 = vsel %vm9785_vm0, %v391_v42, -inf }
 0x14c   : > { %vm1600_vm10 = vcmp.eq.s32.totalorder %v1002_v59, %v6065_v19  ;;  %vm1599_vm11 = vcmp.eq.s32.totalorder %v999_v13, %v6065_v19  ;;  %v1222_v59 = vsel %vm9785_vm0, %v390_v33, -inf  ;;  %v392_v13 = vld [vmem:[%s5917_s20 + $0x508] sm:$0xff] }
 0x14d   : > { %v6662_v58 = vsel %vm1600_vm10, 1.0, %v9807_v48  ;;  %v6665_v23 = vsel %vm1599_vm11, 1.0, %v9807_v48 }
 0x14e   : > { %9824 = vst [vmem:[#allocation39_spill] sm:$0xff] %v6662_v58  ;;  %9825 = vst [vmem:[#allocation40_spill] sm:$0xff] %v6665_v23  ;;  %1217 = vmax.index.xlane.f32.xlu1 %v1216_v7  ;;  %1214 = vmax.index.xlane.f32.xlu0 %v1213_v53  ;;  %v393_v23 = vld [vmem:[%s5917_s20 + $0x510] sm:$0xff] }
 0x14f   : > { %v1008_v44 = vpop.xlane.xlu1 %1007  ;;  %v1005_v57 = vpop.xlane.xlu0 %1004  ;;  %v1231_v53 = vsel %vm9785_vm0, %v393_v23, -inf }
 0x150   : > { %vm1602_vm12 = vcmp.eq.s32.totalorder %v1008_v44, %v6065_v19  ;;  %vm1601_vm13 = vcmp.eq.s32.totalorder %v1005_v57, %v6065_v19  ;;  %v1228_v44 = vsel %vm9785_vm0, %v392_v13, -inf  ;;  %v394_v57 = vld [vmem:[%s5917_s20 + $0x518] sm:$0xff] }
 0x151   : > { %v6676_v43 = vsel %vm1602_vm12, 1.0, %v9807_v48  ;;  %v6679_v7 = vsel %vm1601_vm13, 1.0, %v9807_v48 }
 0x152   : > { %9826 = vst [vmem:[#allocation41_spill] sm:$0xff] %v6676_v43  ;;  %9827 = vst [vmem:[#allocation42_spill] sm:$0xff] %v6679_v7  ;;  %1223 = vmax.index.xlane.f32.xlu1 %v1222_v59  ;;  %1220 = vmax.index.xlane.f32.xlu0 %v1219_v49  ;;  %v395_v7 = vld [vmem:[%s5917_s20 + $0x520] sm:$0xff] }
 0x153   : > { %v1014_v2 = vpop.xlane.xlu1 %1013  ;;  %v1011_v33 = vpop.xlane.xlu0 %1010  ;;  %v1237_v49 = vsel %vm9785_vm0, %v395_v7, -inf }
 0x154   : > { %vm1604_vm14 = vcmp.eq.s32.totalorder %v1014_v2, %v6065_v19  ;;  %vm1603_vm15 = vcmp.eq.s32.totalorder %v1011_v33, %v6065_v19  ;;  %v1234_v2 = vsel %vm9785_vm0, %v394_v57, -inf  ;;  %v396_v33 = vld [vmem:[%s5917_s20 + $0x528] sm:$0xff] }
 0x155   : > { %v6690_v58 = vsel %vm1604_vm14, 1.0, %v9807_v48  ;;  %v6693_v59 = vsel %vm1603_vm15, 1.0, %v9807_v48 }
 0x156   : > { %9828 = vst [vmem:[#allocation43_spill] sm:$0xff] %v6690_v58  ;;  %9829 = vst [vmem:[#allocation44_spill] sm:$0xff] %v6693_v59  ;;  %1229 = vmax.index.xlane.f32.xlu1 %v1228_v44  ;;  %1226 = vmax.index.xlane.f32.xlu0 %v1225_v60  ;;  %v397_v59 = vld [vmem:[%s5917_s20 + $0x530] sm:$0xff] }
 0x157   : > { %v1020_v42 = vpop.xlane.xlu1 %1019  ;;  %v1017_v13 = vpop.xlane.xlu0 %1016  ;;  %v1243_v60 = vsel %vm9785_vm0, %v397_v59, -inf }
 0x158   : > { %vm1606_vm1 = vcmp.eq.s32.totalorder %v1020_v42, %v6065_v19  ;;  %vm1605_vm2 = vcmp.eq.s32.totalorder %v1017_v13, %v6065_v19  ;;  %v1240_v42 = vsel %vm9785_vm0, %v396_v33, -inf  ;;  %v398_v13 = vld [vmem:[%s5917_s20 + $0x538] sm:$0xff] }
 0x159   : > { %v6704_v43 = vsel %vm1606_vm1, 1.0, %v9807_v48  ;;  %v6707_v44 = vsel %vm1605_vm2, 1.0, %v9807_v48 }
 0x15a   : > { %9830 = vst [vmem:[#allocation45_spill] sm:$0xff] %v6704_v43  ;;  %9831 = vst [vmem:[#allocation46_spill] sm:$0xff] %v6707_v44  ;;  %1235 = vmax.index.xlane.f32.xlu1 %v1234_v2  ;;  %1232 = vmax.index.xlane.f32.xlu0 %v1231_v53  ;;  %v399_v44 = vld [vmem:[%s5917_s20 + $0x540] sm:$0xff] }
 0x15b   : > { %v1026_v23 = vpop.xlane.xlu1 %1025  ;;  %v1023_v57 = vpop.xlane.xlu0 %1022  ;;  %v1249_v53 = vsel %vm9785_vm0, %v399_v44, -inf }
 0x15c   : > { %vm1608_vm3 = vcmp.eq.s32.totalorder %v1026_v23, %v6065_v19  ;;  %vm1607_vm4 = vcmp.eq.s32.totalorder %v1023_v57, %v6065_v19  ;;  %v1246_v23 = vsel %vm9785_vm0, %v398_v13, -inf  ;;  %v400_v57 = vld [vmem:[%s5917_s20 + $0x548] sm:$0xff] }
 0x15d   : > { %v6718_v58 = vsel %vm1608_vm3, 1.0, %v9807_v48  ;;  %v6721_v2 = vsel %vm1607_vm4, 1.0, %v9807_v48 }
 0x15e   : > { %9832 = vst [vmem:[#allocation47_spill] sm:$0xff] %v6718_v58  ;;  %9833 = vst [vmem:[#allocation48_spill] sm:$0xff] %v6721_v2  ;;  %1241 = vmax.index.xlane.f32.xlu1 %v1240_v42  ;;  %1238 = vmax.index.xlane.f32.xlu0 %v1237_v49  ;;  %v401_v2 = vld [vmem:[%s5917_s20 + $0x550] sm:$0xff] }
 0x15f   : > { %v1032_v7 = vpop.xlane.xlu1 %1031  ;;  %v1029_v33 = vpop.xlane.xlu0 %1028  ;;  %v1255_v49 = vsel %vm9785_vm0, %v401_v2, -inf }
 0x160   : > { %vm1610_vm5 = vcmp.eq.s32.totalorder %v1032_v7, %v6065_v19  ;;  %vm1609_vm6 = vcmp.eq.s32.totalorder %v1029_v33, %v6065_v19  ;;  %v1252_v7 = vsel %vm9785_vm0, %v400_v57, -inf  ;;  %v402_v33 = vld [vmem:[%s5917_s20 + $0x558] sm:$0xff] }
 0x161   : > { %v6732_v43 = vsel %vm1610_vm5, 1.0, %v9807_v48  ;;  %v6735_v42 = vsel %vm1609_vm6, 1.0, %v9807_v48 }
 0x162   : > { %9834 = vst [vmem:[#allocation49_spill] sm:$0xff] %v6732_v43  ;;  %9835 = vst [vmem:[#allocation50_spill] sm:$0xff] %v6735_v42  ;;  %1247 = vmax.index.xlane.f32.xlu1 %v1246_v23  ;;  %1244 = vmax.index.xlane.f32.xlu0 %v1243_v60  ;;  %v403_v42 = vld [vmem:[%s5917_s20 + $0x560] sm:$0xff] }
 0x163   : > { %v1038_v59 = vpop.xlane.xlu1 %1037  ;;  %v1035_v13 = vpop.xlane.xlu0 %1034  ;;  %v1261_v60 = vsel %vm9785_vm0, %v403_v42, -inf }
 0x164   : > { %vm1612_vm7 = vcmp.eq.s32.totalorder %v1038_v59, %v6065_v19  ;;  %vm1611_vm8 = vcmp.eq.s32.totalorder %v1035_v13, %v6065_v19  ;;  %v1258_v59 = vsel %vm9785_vm0, %v402_v33, -inf  ;;  %v404_v13 = vld [vmem:[%s5917_s20 + $0x568] sm:$0xff] }
 0x165   : > { %v6746_v58 = vsel %vm1612_vm7, 1.0, %v9807_v48  ;;  %v6749_v23 = vsel %vm1611_vm8, 1.0, %v9807_v48 }
 0x166   : > { %9836 = vst [vmem:[#allocation51_spill] sm:$0xff] %v6746_v58  ;;  %9837 = vst [vmem:[#allocation52_spill] sm:$0xff] %v6749_v23  ;;  %1253 = vmax.index.xlane.f32.xlu1 %v1252_v7  ;;  %1250 = vmax.index.xlane.f32.xlu0 %v1249_v53  ;;  %v405_v23 = vld [vmem:[%s5917_s20 + $0x570] sm:$0xff] }
 0x167   : > { %v1044_v44 = vpop.xlane.xlu1 %1043  ;;  %v1041_v57 = vpop.xlane.xlu0 %1040  ;;  %v1267_v53 = vsel %vm9785_vm0, %v405_v23, -inf }
 0x168   : > { %vm1614_vm9 = vcmp.eq.s32.totalorder %v1044_v44, %v6065_v19  ;;  %vm1613_vm10 = vcmp.eq.s32.totalorder %v1041_v57, %v6065_v19  ;;  %v1264_v44 = vsel %vm9785_vm0, %v404_v13, -inf  ;;  %v406_v57 = vld [vmem:[%s5917_s20 + $0x578] sm:$0xff] }
 0x169   : > { %v6760_v43 = vsel %vm1614_vm9, 1.0, %v9807_v48  ;;  %v6763_v7 = vsel %vm1613_vm10, 1.0, %v9807_v48 }
 0x16a   : > { %9838 = vst [vmem:[#allocation53_spill] sm:$0xff] %v6760_v43  ;;  %9839 = vst [vmem:[#allocation54_spill] sm:$0xff] %v6763_v7  ;;  %1259 = vmax.index.xlane.f32.xlu1 %v1258_v59  ;;  %1256 = vmax.index.xlane.f32.xlu0 %v1255_v49  ;;  %v407_v7 = vld [vmem:[%s5917_s20 + $0x580] sm:$0xff] }
 0x16b   : > { %v1050_v2 = vpop.xlane.xlu1 %1049  ;;  %v1047_v33 = vpop.xlane.xlu0 %1046  ;;  %v1273_v49 = vsel %vm9785_vm0, %v407_v7, -inf }
 0x16c   : > { %vm1616_vm11 = vcmp.eq.s32.totalorder %v1050_v2, %v6065_v19  ;;  %vm1615_vm12 = vcmp.eq.s32.totalorder %v1047_v33, %v6065_v19  ;;  %v1270_v2 = vsel %vm9785_vm0, %v406_v57, -inf  ;;  %v408_v33 = vld [vmem:[%s5917_s20 + $0x588] sm:$0xff] }
 0x16d   : > { %v6774_v58 = vsel %vm1616_vm11, 1.0, %v9807_v48  ;;  %v6777_v59 = vsel %vm1615_vm12, 1.0, %v9807_v48 }
 0x16e   : > { %9840 = vst [vmem:[#allocation55_spill] sm:$0xff] %v6774_v58  ;;  %9841 = vst [vmem:[#allocation56_spill] sm:$0xff] %v6777_v59  ;;  %1265 = vmax.index.xlane.f32.xlu1 %v1264_v44  ;;  %1262 = vmax.index.xlane.f32.xlu0 %v1261_v60  ;;  %v409_v59 = vld [vmem:[%s5917_s20 + $0x590] sm:$0xff] }
 0x16f   : > { %v1056_v42 = vpop.xlane.xlu1 %1055  ;;  %v1053_v13 = vpop.xlane.xlu0 %1052  ;;  %v1279_v60 = vsel %vm9785_vm0, %v409_v59, -inf }
 0x170   : > { %vm1618_vm13 = vcmp.eq.s32.totalorder %v1056_v42, %v6065_v19  ;;  %vm1617_vm14 = vcmp.eq.s32.totalorder %v1053_v13, %v6065_v19  ;;  %v1276_v42 = vsel %vm9785_vm0, %v408_v33, -inf  ;;  %v410_v13 = vld [vmem:[%s5917_s20 + $0x598] sm:$0xff] }
 0x171   : > { %v6788_v43 = vsel %vm1618_vm13, 1.0, %v9807_v48  ;;  %v6791_v44 = vsel %vm1617_vm14, 1.0, %v9807_v48 }
 0x172   : > { %9842 = vst [vmem:[#allocation57_spill] sm:$0xff] %v6788_v43  ;;  %9843 = vst [vmem:[#allocation58_spill] sm:$0xff] %v6791_v44  ;;  %1271 = vmax.index.xlane.f32.xlu1 %v1270_v2  ;;  %1268 = vmax.index.xlane.f32.xlu0 %v1267_v53  ;;  %v411_v44 = vld [vmem:[%s5917_s20 + $0x5a0] sm:$0xff] }
 0x173   : > { %v1062_v23 = vpop.xlane.xlu1 %1061  ;;  %v1059_v57 = vpop.xlane.xlu0 %1058  ;;  %v1285_v53 = vsel %vm9785_vm0, %v411_v44, -inf }
 0x174   : > { %vm1620_vm15 = vcmp.eq.s32.totalorder %v1062_v23, %v6065_v19  ;;  %vm1619_vm1 = vcmp.eq.s32.totalorder %v1059_v57, %v6065_v19  ;;  %v1282_v23 = vsel %vm9785_vm0, %v410_v13, -inf  ;;  %v412_v57 = vld [vmem:[%s5917_s20 + $0x5a8] sm:$0xff] }
 0x175   : > { %v6802_v58 = vsel %vm1620_vm15, 1.0, %v9807_v48  ;;  %v6805_v2 = vsel %vm1619_vm1, 1.0, %v9807_v48 }
 0x176   : > { %9844 = vst [vmem:[#allocation59_spill] sm:$0xff] %v6802_v58  ;;  %9845 = vst [vmem:[#allocation60_spill] sm:$0xff] %v6805_v2  ;;  %1277 = vmax.index.xlane.f32.xlu1 %v1276_v42  ;;  %1274 = vmax.index.xlane.f32.xlu0 %v1273_v49  ;;  %v413_v2 = vld [vmem:[%s5917_s20 + $0x5b0] sm:$0xff] }
 0x177   : > { %v1068_v7 = vpop.xlane.xlu1 %1067  ;;  %v1065_v33 = vpop.xlane.xlu0 %1064  ;;  %v1291_v49 = vsel %vm9785_vm0, %v413_v2, -inf }
 0x178   : > { %vm1622_vm2 = vcmp.eq.s32.totalorder %v1068_v7, %v6065_v19  ;;  %vm1621_vm3 = vcmp.eq.s32.totalorder %v1065_v33, %v6065_v19  ;;  %v1288_v7 = vsel %vm9785_vm0, %v412_v57, -inf  ;;  %v414_v33 = vld [vmem:[%s5917_s20 + $0x5b8] sm:$0xff] }
 0x179   : > { %v6816_v43 = vsel %vm1622_vm2, 1.0, %v9807_v48  ;;  %v6819_v42 = vsel %vm1621_vm3, 1.0, %v9807_v48 }
 0x17a   : > { %9846 = vst [vmem:[#allocation61_spill] sm:$0xff] %v6816_v43  ;;  %9847 = vst [vmem:[#allocation62_spill] sm:$0xff] %v6819_v42  ;;  %1283 = vmax.index.xlane.f32.xlu1 %v1282_v23  ;;  %1280 = vmax.index.xlane.f32.xlu0 %v1279_v60  ;;  %v415_v42 = vld [vmem:[%s5917_s20 + $0x5c0] sm:$0xff] }
 0x17b   : > { %v1074_v59 = vpop.xlane.xlu1 %1073  ;;  %v1071_v13 = vpop.xlane.xlu0 %1070  ;;  %v1297_v60 = vsel %vm9785_vm0, %v415_v42, -inf }
 0x17c   : > { %vm1624_vm4 = vcmp.eq.s32.totalorder %v1074_v59, %v6065_v19  ;;  %vm1623_vm5 = vcmp.eq.s32.totalorder %v1071_v13, %v6065_v19  ;;  %v1294_v59 = vsel %vm9785_vm0, %v414_v33, -inf  ;;  %v416_v13 = vld [vmem:[%s5917_s20 + $0x5c8] sm:$0xff] }
 0x17d   : > { %v6830_v58 = vsel %vm1624_vm4, 1.0, %v9807_v48  ;;  %v6833_v23 = vsel %vm1623_vm5, 1.0, %v9807_v48 }
 0x17e   : > { %9848 = vst [vmem:[#allocation63_spill] sm:$0xff] %v6830_v58  ;;  %9849 = vst [vmem:[#allocation64_spill] sm:$0xff] %v6833_v23  ;;  %1289 = vmax.index.xlane.f32.xlu1 %v1288_v7  ;;  %1286 = vmax.index.xlane.f32.xlu0 %v1285_v53  ;;  %v417_v23 = vld [vmem:[%s5917_s20 + $0x5d0] sm:$0xff] }
 0x17f   : > { %v1080_v44 = vpop.xlane.xlu1 %1079  ;;  %v1077_v57 = vpop.xlane.xlu0 %1076  ;;  %v1303_v53 = vsel %vm9785_vm0, %v417_v23, -inf }
 0x180   : > { %vm1626_vm6 = vcmp.eq.s32.totalorder %v1080_v44, %v6065_v19  ;;  %vm1625_vm7 = vcmp.eq.s32.totalorder %v1077_v57, %v6065_v19  ;;  %v1300_v44 = vsel %vm9785_vm0, %v416_v13, -inf  ;;  %v418_v57 = vld [vmem:[%s5917_s20 + $0x5d8] sm:$0xff] }
 0x181   : > { %v6844_v43 = vsel %vm1626_vm6, 1.0, %v9807_v48  ;;  %v6847_v7 = vsel %vm1625_vm7, 1.0, %v9807_v48 }
 0x182   : > { %9850 = vst [vmem:[#allocation65_spill] sm:$0xff] %v6844_v43  ;;  %9851 = vst [vmem:[#allocation66_spill] sm:$0xff] %v6847_v7  ;;  %1295 = vmax.index.xlane.f32.xlu1 %v1294_v59  ;;  %1292 = vmax.index.xlane.f32.xlu0 %v1291_v49  ;;  %v419_v7 = vld [vmem:[%s5917_s20 + $0x5e0] sm:$0xff] }
 0x183   : > { %v1086_v2 = vpop.xlane.xlu1 %1085  ;;  %v1083_v33 = vpop.xlane.xlu0 %1082  ;;  %v1309_v49 = vsel %vm9785_vm0, %v419_v7, -inf }
 0x184   : > { %vm1628_vm8 = vcmp.eq.s32.totalorder %v1086_v2, %v6065_v19  ;;  %vm1627_vm9 = vcmp.eq.s32.totalorder %v1083_v33, %v6065_v19  ;;  %v1306_v2 = vsel %vm9785_vm0, %v418_v57, -inf  ;;  %v420_v33 = vld [vmem:[%s5917_s20 + $0x5e8] sm:$0xff] }
 0x185   : > { %v6858_v58 = vsel %vm1628_vm8, 1.0, %v9807_v48  ;;  %v6861_v59 = vsel %vm1627_vm9, 1.0, %v9807_v48 }
 0x186   : > { %9852 = vst [vmem:[#allocation67_spill] sm:$0xff] %v6858_v58  ;;  %9853 = vst [vmem:[#allocation68_spill] sm:$0xff] %v6861_v59  ;;  %1301 = vmax.index.xlane.f32.xlu1 %v1300_v44  ;;  %1298 = vmax.index.xlane.f32.xlu0 %v1297_v60  ;;  %v421_v59 = vld [vmem:[%s5917_s20 + $0x5f0] sm:$0xff] }
 0x187   : > { %v1092_v42 = vpop.xlane.xlu1 %1091  ;;  %v1089_v13 = vpop.xlane.xlu0 %1088  ;;  %v1315_v60 = vsel %vm9785_vm0, %v421_v59, -inf }
 0x188   : > { %vm1630_vm10 = vcmp.eq.s32.totalorder %v1092_v42, %v6065_v19  ;;  %vm1629_vm11 = vcmp.eq.s32.totalorder %v1089_v13, %v6065_v19  ;;  %v1312_v42 = vsel %vm9785_vm0, %v420_v33, -inf  ;;  %v422_v13 = vld [vmem:[%s5917_s20 + $0x5f8] sm:$0xff] }
 0x189   : > { %v6872_v43 = vsel %vm1630_vm10, 1.0, %v9807_v48  ;;  %v6875_v44 = vsel %vm1629_vm11, 1.0, %v9807_v48 }
 0x18a   : > { %9854 = vst [vmem:[#allocation69_spill] sm:$0xff] %v6872_v43  ;;  %9855 = vst [vmem:[#allocation70_spill] sm:$0xff] %v6875_v44  ;;  %1307 = vmax.index.xlane.f32.xlu1 %v1306_v2  ;;  %1304 = vmax.index.xlane.f32.xlu0 %v1303_v53  ;;  %v423_v44 = vld [vmem:[%s5917_s20 + $0x600] sm:$0xff] }
 0x18b   : > { %v1098_v23 = vpop.xlane.xlu1 %1097  ;;  %v1095_v57 = vpop.xlane.xlu0 %1094  ;;  %v1321_v53 = vsel %vm9785_vm0, %v423_v44, -inf }
 0x18c   : > { %vm1632_vm12 = vcmp.eq.s32.totalorder %v1098_v23, %v6065_v19  ;;  %vm1631_vm13 = vcmp.eq.s32.totalorder %v1095_v57, %v6065_v19  ;;  %v1318_v23 = vsel %vm9785_vm0, %v422_v13, -inf  ;;  %v424_v57 = vld [vmem:[%s5917_s20 + $0x608] sm:$0xff] }
 0x18d   : > { %v6886_v58 = vsel %vm1632_vm12, 1.0, %v9807_v48  ;;  %v6889_v2 = vsel %vm1631_vm13, 1.0, %v9807_v48 }
 0x18e   : > { %9856 = vst [vmem:[#allocation71_spill] sm:$0xff] %v6886_v58  ;;  %9857 = vst [vmem:[#allocation72_spill] sm:$0xff] %v6889_v2  ;;  %1313 = vmax.index.xlane.f32.xlu1 %v1312_v42  ;;  %1310 = vmax.index.xlane.f32.xlu0 %v1309_v49  ;;  %v425_v2 = vld [vmem:[%s5917_s20 + $0x610] sm:$0xff] }
 0x18f   : > { %v1104_v7 = vpop.xlane.xlu1 %1103  ;;  %v1101_v33 = vpop.xlane.xlu0 %1100  ;;  %v1327_v49 = vsel %vm9785_vm0, %v425_v2, -inf }
 0x190   : > { %vm1634_vm14 = vcmp.eq.s32.totalorder %v1104_v7, %v6065_v19  ;;  %vm1633_vm15 = vcmp.eq.s32.totalorder %v1101_v33, %v6065_v19  ;;  %v1324_v7 = vsel %vm9785_vm0, %v424_v57, -inf  ;;  %v426_v33 = vld [vmem:[%s5917_s20 + $0x618] sm:$0xff] }
 0x191   : > { %v6900_v43 = vsel %vm1634_vm14, 1.0, %v9807_v48  ;;  %v6903_v42 = vsel %vm1633_vm15, 1.0, %v9807_v48 }
 0x192   : > { %9858 = vst [vmem:[#allocation73_spill] sm:$0xff] %v6900_v43  ;;  %9859 = vst [vmem:[#allocation74_spill] sm:$0xff] %v6903_v42  ;;  %1319 = vmax.index.xlane.f32.xlu1 %v1318_v23  ;;  %1316 = vmax.index.xlane.f32.xlu0 %v1315_v60  ;;  %v427_v42 = vld [vmem:[%s5917_s20 + $0x620] sm:$0xff] }
 0x193   : > { %v1110_v59 = vpop.xlane.xlu1 %1109  ;;  %v1107_v13 = vpop.xlane.xlu0 %1106  ;;  %v1333_v60 = vsel %vm9785_vm0, %v427_v42, -inf }
 0x194   : > { %vm1636_vm1 = vcmp.eq.s32.totalorder %v1110_v59, %v6065_v19  ;;  %vm1635_vm2 = vcmp.eq.s32.totalorder %v1107_v13, %v6065_v19  ;;  %v1330_v59 = vsel %vm9785_vm0, %v426_v33, -inf  ;;  %v428_v13 = vld [vmem:[%s5917_s20 + $0x628] sm:$0xff] }
 0x195   : > { %v6914_v58 = vsel %vm1636_vm1, 1.0, %v9807_v48  ;;  %v6917_v23 = vsel %vm1635_vm2, 1.0, %v9807_v48 }
 0x196   : > { %9860 = vst [vmem:[#allocation75_spill] sm:$0xff] %v6914_v58  ;;  %9861 = vst [vmem:[#allocation76_spill] sm:$0xff] %v6917_v23  ;;  %1325 = vmax.index.xlane.f32.xlu1 %v1324_v7  ;;  %1322 = vmax.index.xlane.f32.xlu0 %v1321_v53  ;;  %v429_v23 = vld [vmem:[%s5917_s20 + $0x630] sm:$0xff] }
 0x197   : > { %v1116_v44 = vpop.xlane.xlu1 %1115  ;;  %v1113_v57 = vpop.xlane.xlu0 %1112  ;;  %v1339_v53 = vsel %vm9785_vm0, %v429_v23, -inf }
 0x198   : > { %vm1638_vm3 = vcmp.eq.s32.totalorder %v1116_v44, %v6065_v19  ;;  %vm1637_vm4 = vcmp.eq.s32.totalorder %v1113_v57, %v6065_v19  ;;  %v1336_v44 = vsel %vm9785_vm0, %v428_v13, -inf  ;;  %v430_v57 = vld [vmem:[%s5917_s20 + $0x638] sm:$0xff] }
 0x199   : > { %v6928_v43 = vsel %vm1638_vm3, 1.0, %v9807_v48  ;;  %v6931_v7 = vsel %vm1637_vm4, 1.0, %v9807_v48 }
 0x19a   : > { %9862 = vst [vmem:[#allocation77_spill] sm:$0xff] %v6928_v43  ;;  %9863 = vst [vmem:[#allocation78_spill] sm:$0xff] %v6931_v7  ;;  %1331 = vmax.index.xlane.f32.xlu1 %v1330_v59  ;;  %1328 = vmax.index.xlane.f32.xlu0 %v1327_v49  ;;  %v431_v7 = vld [vmem:[%s5917_s20 + $0x640] sm:$0xff] }
 0x19b   : > { %v1122_v2 = vpop.xlane.xlu1 %1121  ;;  %v1119_v33 = vpop.xlane.xlu0 %1118  ;;  %v1345_v49 = vsel %vm9785_vm0, %v431_v7, -inf }
 0x19c   : > { %vm1640_vm5 = vcmp.eq.s32.totalorder %v1122_v2, %v6065_v19  ;;  %vm1639_vm6 = vcmp.eq.s32.totalorder %v1119_v33, %v6065_v19  ;;  %v1342_v2 = vsel %vm9785_vm0, %v430_v57, -inf  ;;  %v432_v33 = vld [vmem:[%s5917_s20 + $0x648] sm:$0xff] }
 0x19d   : > { %v6942_v58 = vsel %vm1640_vm5, 1.0, %v9807_v48  ;;  %v6945_v59 = vsel %vm1639_vm6, 1.0, %v9807_v48 }
 0x19e   : > { %9864 = vst [vmem:[#allocation79_spill] sm:$0xff] %v6942_v58  ;;  %9865 = vst [vmem:[#allocation80_spill] sm:$0xff] %v6945_v59  ;;  %1337 = vmax.index.xlane.f32.xlu1 %v1336_v44  ;;  %1334 = vmax.index.xlane.f32.xlu0 %v1333_v60  ;;  %v433_v59 = vld [vmem:[%s5917_s20 + $0x650] sm:$0xff]  ;;  %v9697_v60 = vmov 0  }
 0x19f   : > { %v1128_v42 = vpop.xlane.xlu1 %1127  ;;  %v1125_v13 = vpop.xlane.xlu0 %1124  ;;  %5837 = vset.pattern.permute.xlu0 %v9697_v60 }
 0x1a0   : > { %vm1642_vm7 = vcmp.eq.s32.totalorder %v1128_v42, %v6065_v19  ;;  %vm1641_vm8 = vcmp.eq.s32.totalorder %v1125_v13, %v6065_v19  ;;  %v1348_v42 = vsel %vm9785_vm0, %v432_v33, -inf  ;;  %v434_v13 = vld [vmem:[%s5917_s20 + $0x658] sm:$0xff] }
 0x1a1   : > { %v6956_v43 = vsel %vm1642_vm7, 1.0, %v9807_v48  ;;  %v6959_v44 = vsel %vm1641_vm8, 1.0, %v9807_v48 }
 0x1a2   : > { %9866 = vst [vmem:[#allocation81_spill] sm:$0xff] %v6956_v43  ;;  %9867 = vst [vmem:[#allocation82_spill] sm:$0xff] %v6959_v44  ;;  %1343 = vmax.index.xlane.f32.xlu1 %v1342_v2  ;;  %1340 = vmax.index.xlane.f32.xlu0 %v1339_v53  ;;  %v436_v44 = vld [vmem:[%s5917_s20 + $0x668] sm:$0xff]  ;;  %v435_v43 = vld [vmem:[%s5917_s20 + $0x660] sm:$0xff] }
 0x1a3   : > { %v1134_v23 = vpop.xlane.xlu1 %1133  ;;  %v1131_v57 = vpop.xlane.xlu0 %1130  ;;  %v1357_v60 = vsel %vm9785_vm0, %v435_v43, -inf }
 0x1a4   : > { %vm1644_vm9 = vcmp.eq.s32.totalorder %v1134_v23, %v6065_v19  ;;  %vm1643_vm10 = vcmp.eq.s32.totalorder %v1131_v57, %v6065_v19  ;;  %v1354_v23 = vsel %vm9785_vm0, %v434_v13, -inf  ;;  %v1351_v57 = vsel %vm9785_vm0, %v433_v59, -inf }
 0x1a5   : > { %v6970_v58 = vsel %vm1644_vm9, 1.0, %v9807_v48  ;;  %v6973_v2 = vsel %vm1643_vm10, 1.0, %v9807_v48 }
 0x1a6   : > { %9868 = vst [vmem:[#allocation83_spill] sm:$0xff] %v6970_v58  ;;  %9869 = vst [vmem:[#allocation84_spill] sm:$0xff] %v6973_v2  ;;  %1349 = vmax.index.xlane.f32.xlu1 %v1348_v42  ;;  %1346 = vmax.index.xlane.f32.xlu0 %v1345_v49  ;;  %v437_v2 = vld [vmem:[%s5917_s20 + $0x670] sm:$0xff] }
 0x1a7   : > { %v1140_v7 = vpop.xlane.xlu1 %1139  ;;  %v1137_v33 = vpop.xlane.xlu0 %1136  ;;  %v1363_v59 = vsel %vm9785_vm0, %v437_v2, -inf }
 0x1a8   : > { %vm1646_vm11 = vcmp.eq.s32.totalorder %v1140_v7, %v6065_v19  ;;  %vm1645_vm12 = vcmp.eq.s32.totalorder %v1137_v33, %v6065_v19  ;;  %v1360_v7 = vsel %vm9785_vm0, %v436_v44, -inf  ;;  %v438_v33 = vld [vmem:[%s5917_s20 + $0x678] sm:$0xff] }
 0x1a9   : > { %v6985_v42 = vsel %vm1646_vm11, 1.0, %v9807_v48  ;;  %v6988_v49 = vsel %vm1645_vm12, 1.0, %v9807_v48 }
 0x1aa   : > { %9870 = vst [vmem:[#allocation85_spill] sm:$0xff] %v6985_v42  ;;  %9871 = vst [vmem:[#allocation86_spill] sm:$0xff] %v6988_v49  ;;  %1355 = vmax.index.xlane.f32.xlu1 %v1354_v23  ;;  %1352 = vmax.index.xlane.f32.xlu0 %v1351_v57  ;;  %v439_v49 = vld [vmem:[%s5917_s20 + $0x680] sm:$0xff] }
 0x1ab   : > { %v1146_v13 = vpop.xlane.xlu1 %1145  ;;  %v1143_v53 = vpop.xlane.xlu0 %1142  ;;  %v1369_v57 = vsel %vm9785_vm0, %v439_v49, -inf }
 0x1ac   : > { %vm1648_vm13 = vcmp.eq.s32.totalorder %v1146_v13, %v6065_v19  ;;  %vm1647_vm14 = vcmp.eq.s32.totalorder %v1143_v53, %v6065_v19  ;;  %v1366_v13 = vsel %vm9785_vm0, %v438_v33, -inf  ;;  %v440_v53 = vld [vmem:[%s5917_s20 + $0x688] sm:$0xff] }
 0x1ad   : > { %v6999_v58 = vsel %vm1648_vm13, 1.0, %v9807_v48  ;;  %v7002_v23 = vsel %vm1647_vm14, 1.0, %v9807_v48 }
 0x1ae   : > { %9872 = vst [vmem:[#allocation87_spill] sm:$0xff] %v6999_v58  ;;  %9873 = vst [vmem:[#allocation88_spill] sm:$0xff] %v7002_v23  ;;  %1361 = vmax.index.xlane.f32.xlu1 %v1360_v7  ;;  %1358 = vmax.index.xlane.f32.xlu0 %v1357_v60  ;;  %v441_v23 = vld [vmem:[%s5917_s20 + $0x690] sm:$0xff] }
 0x1af   : > { %v1152_v43 = vpop.xlane.xlu1 %1151  ;;  %v1149_v44 = vpop.xlane.xlu0 %1148  ;;  %v1375_v60 = vsel %vm9785_vm0, %v441_v23, -inf }
 0x1b0   : > { %vm1650_vm15 = vcmp.eq.s32.totalorder %v1152_v43, %v6065_v19  ;;  %vm1649_vm1 = vcmp.eq.s32.totalorder %v1149_v44, %v6065_v19  ;;  %v1372_v43 = vsel %vm9785_vm0, %v440_v53, -inf  ;;  %v442_v44 = vld [vmem:[%s5917_s20 + $0x698] sm:$0xff] }
 0x1b1   : > { %v7013_v42 = vsel %vm1650_vm15, 1.0, %v9807_v48  ;;  %v7016_v7 = vsel %vm1649_vm1, 1.0, %v9807_v48 }
 0x1b2   : > { %9874 = vst [vmem:[#allocation89_spill] sm:$0xff] %v7013_v42  ;;  %9875 = vst [vmem:[#allocation90_spill] sm:$0xff] %v7016_v7  ;;  %1367 = vmax.index.xlane.f32.xlu1 %v1366_v13  ;;  %1364 = vmax.index.xlane.f32.xlu0 %v1363_v59  ;;  %v443_v7 = vld [vmem:[%s5917_s20 + $0x6a0] sm:$0xff] }
 0x1b3   : > { %v1158_v2 = vpop.xlane.xlu1 %1157  ;;  %v1155_v33 = vpop.xlane.xlu0 %1154  ;;  %v1381_v59 = vsel %vm9785_vm0, %v443_v7, -inf }
 0x1b4   : > { %vm1652_vm2 = vcmp.eq.s32.totalorder %v1158_v2, %v6065_v19  ;;  %vm1651_vm3 = vcmp.eq.s32.totalorder %v1155_v33, %v6065_v19  ;;  %v1378_v2 = vsel %vm9785_vm0, %v442_v44, -inf  ;;  %v444_v33 = vld [vmem:[%s5917_s20 + $0x6a8] sm:$0xff] }
 0x1b5   : > { %v7027_v58 = vsel %vm1652_vm2, 1.0, %v9807_v48  ;;  %v7030_v13 = vsel %vm1651_vm3, 1.0, %v9807_v48 }
 0x1b6   : > { %9876 = vst [vmem:[#allocation91_spill] sm:$0xff] %v7027_v58  ;;  %9877 = vst [vmem:[#allocation92_spill] sm:$0xff] %v7030_v13  ;;  %1373 = vmax.index.xlane.f32.xlu1 %v1372_v43  ;;  %1370 = vmax.index.xlane.f32.xlu0 %v1369_v57  ;;  %v445_v13 = vld [vmem:[%s5917_s20 + $0x6b0] sm:$0xff] }
 0x1b7   : > { %v1164_v49 = vpop.xlane.xlu1 %1163  ;;  %v1161_v53 = vpop.xlane.xlu0 %1160  ;;  %v1387_v57 = vsel %vm9785_vm0, %v445_v13, -inf }
 0x1b8   : > { %vm1654_vm4 = vcmp.eq.s32.totalorder %v1164_v49, %v6065_v19  ;;  %vm1653_vm5 = vcmp.eq.s32.totalorder %v1161_v53, %v6065_v19  ;;  %v1384_v49 = vsel %vm9785_vm0, %v444_v33, -inf  ;;  %v446_v53 = vld [vmem:[%s5917_s20 + $0x6b8] sm:$0xff] }
 0x1b9   : > { %v7041_v42 = vsel %vm1654_vm4, 1.0, %v9807_v48  ;;  %v7044_v43 = vsel %vm1653_vm5, 1.0, %v9807_v48 }
 0x1ba   : > { %9878 = vst [vmem:[#allocation93_spill] sm:$0xff] %v7041_v42  ;;  %9879 = vst [vmem:[#allocation94_spill] sm:$0xff] %v7044_v43  ;;  %1379 = vmax.index.xlane.f32.xlu1 %v1378_v2  ;;  %1376 = vmax.index.xlane.f32.xlu0 %v1375_v60  ;;  %v447_v43 = vld [vmem:[%s5917_s20 + $0x6c0] sm:$0xff] }
 0x1bb   : > { %v1170_v23 = vpop.xlane.xlu1 %1169  ;;  %v1167_v44 = vpop.xlane.xlu0 %1166  ;;  %v1393_v60 = vsel %vm9785_vm0, %v447_v43, -inf }
 0x1bc   : > { %vm1656_vm6 = vcmp.eq.s32.totalorder %v1170_v23, %v6065_v19  ;;  %vm1655_vm7 = vcmp.eq.s32.totalorder %v1167_v44, %v6065_v19  ;;  %v1390_v23 = vsel %vm9785_vm0, %v446_v53, -inf  ;;  %v448_v44 = vld [vmem:[%s5917_s20 + $0x6c8] sm:$0xff] }
 0x1bd   : > { %v7055_v58 = vsel %vm1656_vm6, 1.0, %v9807_v48  ;;  %v7058_v2 = vsel %vm1655_vm7, 1.0, %v9807_v48 }
 0x1be   : > { %9880 = vst [vmem:[#allocation95_spill] sm:$0xff] %v7055_v58  ;;  %9881 = vst [vmem:[#allocation96_spill] sm:$0xff] %v7058_v2  ;;  %1385 = vmax.index.xlane.f32.xlu1 %v1384_v49  ;;  %1382 = vmax.index.xlane.f32.xlu0 %v1381_v59  ;;  %v449_v2 = vld [vmem:[%s5917_s20 + $0x6d0] sm:$0xff] }
 0x1bf   : > { %v1176_v7 = vpop.xlane.xlu1 %1175  ;;  %v1173_v33 = vpop.xlane.xlu0 %1172  ;;  %v1399_v59 = vsel %vm9785_vm0, %v449_v2, -inf }
 0x1c0   : > { %vm1658_vm8 = vcmp.eq.s32.totalorder %v1176_v7, %v6065_v19  ;;  %vm1657_vm9 = vcmp.eq.s32.totalorder %v1173_v33, %v6065_v19  ;;  %v1396_v7 = vsel %vm9785_vm0, %v448_v44, -inf  ;;  %v450_v33 = vld [vmem:[%s5917_s20 + $0x6d8] sm:$0xff] }
 0x1c1   : > { %v7069_v42 = vsel %vm1658_vm8, 1.0, %v9807_v48  ;;  %v7072_v49 = vsel %vm1657_vm9, 1.0, %v9807_v48 }
 0x1c2   : > { %9882 = vst [vmem:[#allocation97_spill] sm:$0xff] %v7069_v42  ;;  %9883 = vst [vmem:[#allocation98_spill] sm:$0xff] %v7072_v49  ;;  %1391 = vmax.index.xlane.f32.xlu1 %v1390_v23  ;;  %1388 = vmax.index.xlane.f32.xlu0 %v1387_v57  ;;  %v451_v49 = vld [vmem:[%s5917_s20 + $0x6e0] sm:$0xff] }
 0x1c3   : > { %v1182_v13 = vpop.xlane.xlu1 %1181  ;;  %v1179_v53 = vpop.xlane.xlu0 %1178  ;;  %v1405_v57 = vsel %vm9785_vm0, %v451_v49, -inf }
 0x1c4   : > { %vm1660_vm10 = vcmp.eq.s32.totalorder %v1182_v13, %v6065_v19  ;;  %vm1659_vm11 = vcmp.eq.s32.totalorder %v1179_v53, %v6065_v19  ;;  %v1402_v13 = vsel %vm9785_vm0, %v450_v33, -inf  ;;  %v452_v53 = vld [vmem:[%s5917_s20 + $0x6e8] sm:$0xff] }
 0x1c5   : > { %v7083_v58 = vsel %vm1660_vm10, 1.0, %v9807_v48  ;;  %v7086_v23 = vsel %vm1659_vm11, 1.0, %v9807_v48 }
 0x1c6   : > { %9884 = vst [vmem:[#allocation99_spill] sm:$0xff] %v7083_v58  ;;  %9885 = vst [vmem:[#allocation100_spill] sm:$0xff] %v7086_v23  ;;  %1397 = vmax.index.xlane.f32.xlu1 %v1396_v7  ;;  %1394 = vmax.index.xlane.f32.xlu0 %v1393_v60  ;;  %v453_v23 = vld [vmem:[%s5917_s20 + $0x6f0] sm:$0xff] }
 0x1c7   : > { %v1188_v43 = vpop.xlane.xlu1 %1187  ;;  %v1185_v44 = vpop.xlane.xlu0 %1184  ;;  %v1411_v60 = vsel %vm9785_vm0, %v453_v23, -inf }
 0x1c8   : > { %vm1662_vm12 = vcmp.eq.s32.totalorder %v1188_v43, %v6065_v19  ;;  %vm1661_vm13 = vcmp.eq.s32.totalorder %v1185_v44, %v6065_v19  ;;  %v1408_v43 = vsel %vm9785_vm0, %v452_v53, -inf  ;;  %v454_v44 = vld [vmem:[%s5917_s20 + $0x6f8] sm:$0xff] }
 0x1c9   : > { %v7097_v42 = vsel %vm1662_vm12, 1.0, %v9807_v48  ;;  %v7100_v7 = vsel %vm1661_vm13, 1.0, %v9807_v48 }
 0x1ca   : > { %9886 = vst [vmem:[#allocation101_spill] sm:$0xff] %v7097_v42  ;;  %9887 = vst [vmem:[#allocation102_spill] sm:$0xff] %v7100_v7  ;;  %1403 = vmax.index.xlane.f32.xlu1 %v1402_v13  ;;  %1400 = vmax.index.xlane.f32.xlu0 %v1399_v59  ;;  %v455_v7 = vld [vmem:[%s5917_s20 + $0x700] sm:$0xff] }
 0x1cb   : > { %v1194_v2 = vpop.xlane.xlu1 %1193  ;;  %v1191_v33 = vpop.xlane.xlu0 %1190  ;;  %v1417_v59 = vsel %vm9785_vm0, %v455_v7, -inf }
 0x1cc   : > { %vm1664_vm14 = vcmp.eq.s32.totalorder %v1194_v2, %v6065_v19  ;;  %vm1663_vm15 = vcmp.eq.s32.totalorder %v1191_v33, %v6065_v19  ;;  %v1414_v2 = vsel %vm9785_vm0, %v454_v44, -inf  ;;  %v456_v33 = vld [vmem:[%s5917_s20 + $0x708] sm:$0xff] }
 0x1cd   : > { %v7111_v58 = vsel %vm1664_vm14, 1.0, %v9807_v48  ;;  %v7114_v13 = vsel %vm1663_vm15, 1.0, %v9807_v48 }
 0x1ce   : > { %9888 = vst [vmem:[#allocation103_spill] sm:$0xff] %v7111_v58  ;;  %9889 = vst [vmem:[#allocation104_spill] sm:$0xff] %v7114_v13  ;;  %1409 = vmax.index.xlane.f32.xlu1 %v1408_v43  ;;  %1406 = vmax.index.xlane.f32.xlu0 %v1405_v57  ;;  %v457_v13 = vld [vmem:[%s5917_s20 + $0x710] sm:$0xff] }
 0x1cf   : > { %v1200_v49 = vpop.xlane.xlu1 %1199  ;;  %v1197_v53 = vpop.xlane.xlu0 %1196  ;;  %v1423_v57 = vsel %vm9785_vm0, %v457_v13, -inf }
 0x1d0   : > { %vm1666_vm1 = vcmp.eq.s32.totalorder %v1200_v49, %v6065_v19  ;;  %vm1665_vm2 = vcmp.eq.s32.totalorder %v1197_v53, %v6065_v19  ;;  %v1420_v49 = vsel %vm9785_vm0, %v456_v33, -inf  ;;  %v458_v53 = vld [vmem:[%s5917_s20 + $0x718] sm:$0xff] }
 0x1d1   : > { %v7125_v42 = vsel %vm1666_vm1, 1.0, %v9807_v48  ;;  %v7128_v43 = vsel %vm1665_vm2, 1.0, %v9807_v48 }
 0x1d2   : > { %9890 = vst [vmem:[#allocation105_spill] sm:$0xff] %v7125_v42  ;;  %9891 = vst [vmem:[#allocation106_spill] sm:$0xff] %v7128_v43  ;;  %1415 = vmax.index.xlane.f32.xlu1 %v1414_v2  ;;  %1412 = vmax.index.xlane.f32.xlu0 %v1411_v60  ;;  %v459_v43 = vld [vmem:[%s5917_s20 + $0x720] sm:$0xff]  ;;  %v462_v60 = vld [vmem:[%s5917_s20 + $0x738] sm:$0xff] }
 0x1d3   : > { %v1206_v23 = vpop.xlane.xlu1 %1205  ;;  %v1203_v44 = vpop.xlane.xlu0 %1202 }
 0x1d4   : > { %vm1668_vm3 = vcmp.eq.s32.totalorder %v1206_v23, %v6065_v19  ;;  %vm1667_vm4 = vcmp.eq.s32.totalorder %v1203_v44, %v6065_v19  ;;  %v1426_v23 = vsel %vm9785_vm0, %v458_v53, -inf  ;;  %v460_v44 = vld [vmem:[%s5917_s20 + $0x728] sm:$0xff] }
 0x1d5   : > { %v7139_v58 = vsel %vm1668_vm3, 1.0, %v9807_v48  ;;  %v7142_v2 = vsel %vm1667_vm4, 1.0, %v9807_v48 }
 0x1d6   : > { %9892 = vst [vmem:[#allocation107_spill] sm:$0xff] %v7139_v58  ;;  %9893 = vst [vmem:[#allocation108_spill] sm:$0xff] %v7142_v2  ;;  %1421 = vmax.index.xlane.f32.xlu1 %v1420_v49  ;;  %1418 = vmax.index.xlane.f32.xlu0 %v1417_v59  ;;  %v461_v2 = vld [vmem:[%s5917_s20 + $0x730] sm:$0xff]  ;;  %v463_v59 = vld [vmem:[%s5917_s20 + $0x740] sm:$0xff] }
 0x1d7   : > { %v1212_v7 = vpop.xlane.xlu1 %1211  ;;  %v1209_v33 = vpop.xlane.xlu0 %1208 }
 0x1d8   : > { %vm1670_vm5 = vcmp.eq.s32.totalorder %v1212_v7, %v6065_v19  ;;  %vm1669_vm6 = vcmp.eq.s32.totalorder %v1209_v33, %v6065_v19  ;;  %v1432_v7 = vsel %vm9785_vm0, %v460_v44, -inf  ;;  %v1429_v33 = vsel %vm9785_vm0, %v459_v43, -inf }
 0x1d9   : > { %v7153_v42 = vsel %vm1670_vm5, 1.0, %v9807_v48  ;;  %v7156_v49 = vsel %vm1669_vm6, 1.0, %v9807_v48  ;;  %v1438_v44 = vsel %vm9785_vm0, %v462_v60, -inf }
 0x1da   : > { %9894 = vst [vmem:[#allocation109_spill] sm:$0xff] %v7153_v42  ;;  %9895 = vst [vmem:[#allocation110_spill] sm:$0xff] %v7156_v49  ;;  %1427 = vmax.index.xlane.f32.xlu1 %v1426_v23  ;;  %1424 = vmax.index.xlane.f32.xlu0 %v1423_v57  ;;  %v465_v23 = vld [vmem:[%s5917_s20 + $0x750] sm:$0xff] }
 0x1db   : > { %v1218_v13 = vpop.xlane.xlu1 %1217  ;;  %v1215_v53 = vpop.xlane.xlu0 %1214 }
 0x1dc   : > { %vm1672_vm7 = vcmp.eq.s32.totalorder %v1218_v13, %v6065_v19  ;;  %vm1671_vm8 = vcmp.eq.s32.totalorder %v1215_v53, %v6065_v19  ;;  %v1435_v13 = vsel %vm9785_vm0, %v461_v2, -inf  ;;  %v464_v53 = vld [vmem:[%s5917_s20 + $0x748] sm:$0xff] }
 0x1dd   : > { %v7167_v58 = vsel %vm1672_vm7, 1.0, %v9807_v48  ;;  %v7170_v57 = vsel %vm1671_vm8, 1.0, %v9807_v48  ;;  %v1444_v48 = vsel %vm9785_vm0, %v464_v53, -inf }
 0x1de   : > { %9896 = vst [vmem:[#allocation111_spill] sm:$0xff] %v7167_v58  ;;  %9897 = vst [vmem:[#allocation112_spill] sm:$0xff] %v7170_v57  ;;  %1433 = vmax.index.xlane.f32.xlu1 %v1432_v7  ;;  %1430 = vmax.index.xlane.f32.xlu0 %v1429_v33  ;;  %v1441_v7 = vsel %vm9785_vm0, %v463_v59, -inf  ;;  %v466_v33 = vld [vmem:[%s5917_s20 + $0x758] sm:$0xff]  ;;  %v481_v58 = vld [vmem:[%s5917_s20 + $0x7d0] sm:$0xff] }
 0x1df   : > { %v7174_v43 = vpop.xlane.xlu0 %1220  ;;  %v1450_v2 = vsel %vm9785_vm0, %v466_v33, -inf }
 0x1e0   : > { %vm1673_vm10 = vcmp.eq.s32.totalorder %v7174_v43, %v6065_v19 }
 0x1e2   : > { %1439 = vmax.index.xlane.f32.xlu1 %v1438_v44  ;;  %1436 = vmax.index.xlane.f32.xlu0 %v1435_v13  ;;  %v1447_v44 = vsel %vm9785_vm0, %v465_v23, -inf  ;;  %v468_v13 = vld [vmem:[%s5917_s20 + $0x768] sm:$0xff] }
 0x1e3   : > { %v7180_v49 = vpop.xlane.xlu0 %1226  ;;  %v1456_v59 = vsel %vm9785_vm0, %v468_v13, -inf }
 0x1e4   : > { %9898 = vst [vmem:[#allocation113_spill] sm:$0xff] %v7180_v49  ;;  %v467_v49 = vld [vmem:[%s5917_s20 + $0x760] sm:$0xff] }
 0x1e6   : > { %1445 = vmax.index.xlane.f32.xlu1 %v1444_v48  ;;  %1442 = vmax.index.xlane.f32.xlu0 %v1441_v7  ;;  %v1453_v48 = vsel %vm9785_vm0, %v467_v49, -inf  ;;  %v470_v7 = vld [vmem:[%s5917_s20 + $0x778] sm:$0xff] }
 0x1e7   : > { %v7186_v60 = vpop.xlane.xlu0 %1232  ;;  %v1462_v23 = vsel %vm9785_vm0, %v470_v7, -inf }
 0x1e8   : > { %9899 = vst [vmem:[#allocation114_spill] sm:$0xff] %v7186_v60  ;;  %v469_v60 = vld [vmem:[%s5917_s20 + $0x770] sm:$0xff] }
 0x1ea   : > { %1451 = vmax.index.xlane.f32.xlu1 %v1450_v2  ;;  %1448 = vmax.index.xlane.f32.xlu0 %v1447_v44  ;;  %v1459_v2 = vsel %vm9785_vm0, %v469_v60, -inf  ;;  %v472_v44 = vld [vmem:[%s5917_s20 + $0x788] sm:$0xff] }
 0x1eb   : > { %v7192_v53 = vpop.xlane.xlu0 %1238  ;;  %v1468_v49 = vsel %vm9785_vm0, %v472_v44, -inf }
 0x1ec   : > { %9900 = vst [vmem:[#allocation115_spill] sm:$0xff] %v7192_v53  ;;  %v471_v53 = vld [vmem:[%s5917_s20 + $0x780] sm:$0xff] }
 0x1ee   : > { %1457 = vmax.index.xlane.f32.xlu1 %v1456_v59  ;;  %1454 = vmax.index.xlane.f32.xlu0 %v1453_v48  ;;  %v1465_v59 = vsel %vm9785_vm0, %v471_v53, -inf  ;;  %v474_v48 = vld [vmem:[%s5917_s20 + $0x798] sm:$0xff] }
 0x1ef   : > { %v7198_v33 = vpop.xlane.xlu0 %1244  ;;  %v1474_v60 = vsel %vm9785_vm0, %v474_v48, -inf  ;;  %v7222_v48 = vpop.xlane.xlu1 %1223 }
 0x1f0   : > { %9901 = vst [vmem:[#allocation116_spill] sm:$0xff] %v7198_v33  ;;  %v473_v33 = vld [vmem:[%s5917_s20 + $0x790] sm:$0xff]  ;;  %vm1674_vm9 = vcmp.eq.s32.totalorder %v7222_v48, %v6065_v19  ;;  %v10049_v48 = vld [vmem:[#allocation111_spill] sm:$0xff] }
 0x1f1   : > { %v1471_v57 = vsel %vm9785_vm0, %v473_v33, -inf }
 0x1f2   : > { %1463 = vmax.index.xlane.f32.xlu1 %v1462_v23  ;;  %1460 = vmax.index.xlane.f32.xlu0 %v1459_v2  ;;  %v476_v23 = vld [vmem:[%s5917_s20 + $0x7a8] sm:$0xff]  ;;  %v475_v2 = vld [vmem:[%s5917_s20 + $0x7a0] sm:$0xff] }
 0x1f3   : > { %v7204_v13 = vpop.xlane.xlu0 %1250  ;;  %v1480_v53 = vsel %vm9785_vm0, %v476_v23, -inf  ;;  %v479_v23 = vld [vmem:[%s5917_s20 + $0x7c0] sm:$0xff] }
 0x1f4   : > { %9902 = vst [vmem:[#allocation117_spill] sm:$0xff] %v7204_v13  ;;  %v1477_v13 = vsel %vm9785_vm0, %v475_v2, -inf }
 0x1f6   : > { %1469 = vmax.index.xlane.f32.xlu1 %v1468_v49  ;;  %1466 = vmax.index.xlane.f32.xlu0 %v1465_v59  ;;  %v478_v49 = vld [vmem:[%s5917_s20 + $0x7b8] sm:$0xff]  ;;  %v477_v59 = vld [vmem:[%s5917_s20 + $0x7b0] sm:$0xff] }
 0x1f7   : > { %v7210_v7 = vpop.xlane.xlu0 %1256 }
 0x1f8   : > { %9903 = vst [vmem:[#allocation118_spill] sm:$0xff] %v7210_v7  ;;  %v1486_v7 = vsel %vm9785_vm0, %v478_v49, -inf }
 0x1fa   : > { %1475 = vmax.index.xlane.f32.xlu1 %v1474_v60  ;;  %1472 = vmax.index.xlane.f32.xlu0 %v1471_v57  ;;  %v1483_v57 = vsel %vm9785_vm0, %v477_v59, -inf  ;;  %v480_v60 = vld [vmem:[%s5917_s20 + $0x7c8] sm:$0xff] }
 0x1fb   : > { %v7216_v44 = vpop.xlane.xlu0 %1262 }
 0x1fc   : > { %9904 = vst [vmem:[#allocation119_spill] sm:$0xff] %v7216_v44  ;;  %v1492_v44 = vsel %vm9785_vm0, %v480_v60, -inf }
 0x1fe   : > { %1481 = vmax.index.xlane.f32.xlu1 %v1480_v53  ;;  %1478 = vmax.index.xlane.f32.xlu0 %v1477_v13  ;;  %v1489_v13 = vsel %vm9785_vm0, %v479_v23, -inf  ;;  %v482_v53 = vld [vmem:[%s5917_s20 + $0x7d8] sm:$0xff] }
 0x1ff   : > { %v7224_v33 = vpop.xlane.xlu0 %1268  ;;  %v1498_v59 = vsel %vm9785_vm0, %v482_v53, -inf }
 0x200   : > { %9905 = vst [vmem:[#allocation120_spill] sm:$0xff] %v7224_v33  ;;  %v7236_v33 = vpop.xlane.xlu1 %1229 }
 0x201   : > { %9907 = vst [vmem:[#allocation122_spill] sm:$0xff] %v7236_v33 }
 0x202   : > { %1487 = vmax.index.xlane.f32.xlu1 %v1486_v7  ;;  %1484 = vmax.index.xlane.f32.xlu0 %v1483_v57  ;;  %v1495_v7 = vsel %vm9785_vm0, %v481_v58, -inf  ;;  %v484_v57 = vld [vmem:[%s5917_s20 + $0x7e8] sm:$0xff] }
 0x203   : > { %v7230_v2 = vpop.xlane.xlu0 %1274  ;;  %v1504_v42 = vsel %vm9785_vm0, %v484_v57, -inf }
 0x204   : > { %9906 = vst [vmem:[#allocation121_spill] sm:$0xff] %v7230_v2  ;;  %v483_v2 = vld [vmem:[%s5917_s20 + $0x7e0] sm:$0xff]  ;;  %v7244_v60 = vpop.xlane.xlu1 %1235 }
 0x205   : > { %9909 = vst [vmem:[#allocation124_spill] sm:$0xff] %v7244_v60  ;;  %v1501_v33 = vsel %vm9785_vm0, %v483_v2, -inf }
 0x206   : > { %1493 = vmax.index.xlane.f32.xlu1 %v1492_v44  ;;  %1490 = vmax.index.xlane.f32.xlu0 %v1489_v13  ;;  %v486_v44 = vld [vmem:[%s5917_s20 + $0x7f8] sm:$0xff]  ;;  %v485_v13 = vld [vmem:[%s5917_s20 + $0x7f0] sm:$0xff] }
 0x207   : > { %v7238_v49 = vpop.xlane.xlu0 %1280  ;;  %v1510_v58 = vsel %vm9785_vm0, %v486_v44, -inf }
 0x208   : > { %9908 = vst [vmem:[#allocation123_spill] sm:$0xff] %v7238_v49 }
 0x20a   : > { %1499 = vmax.index.xlane.f32.xlu1 %v1498_v59  ;;  %1496 = vmax.index.xlane.f32.xlu0 %v1495_v7  ;;  %v1507_v59 = vsel %vm9785_vm0, %v485_v13, -inf  ;;  %v7256_v7 = vpop.xlane.xlu1 %1241 }
 0x20b   : > { %v7246_v23 = vpop.xlane.xlu0 %1286  ;;  %9912 = vst [vmem:[#allocation127_spill] sm:$0xff] %v7256_v7 }
 0x20c   : > { %9910 = vst [vmem:[#allocation125_spill] sm:$0xff] %v7246_v23 }
 0x20e   : > { %1505 = vmax.index.xlane.f32.xlu1 %v1504_v42  ;;  %1502 = vmax.index.xlane.f32.xlu0 %v1501_v33  ;;  %v7260_v57 = vpop.xlane.xlu1 %1247 }
 0x20f   : > { %v7252_v53 = vpop.xlane.xlu0 %1292  ;;  %9914 = vst [vmem:[#allocation129_spill] sm:$0xff] %v7260_v57  ;;  %v496_v57 = vld [vmem:[%s7275_s23 + $0x48] sm:$0xff] }
 0x210   : > { %9911 = vst [vmem:[#allocation126_spill] sm:$0xff] %v7252_v53  ;;  %v648_v53 = vld [vmem:[%s7275_s23 + $0x508] sm:$0xff] }
 0x212   : > { %1511 = vmax.index.xlane.f32.xlu1 %v1510_v58  ;;  %1508 = vmax.index.xlane.f32.xlu0 %v1507_v59  ;;  %v7266_v42 = vpop.xlane.xlu1 %1253  ;;  %v487_v58 = vld [vmem:[%s7275_s23] sm:$0xff] }
 0x213   : > { %v7258_v60 = vpop.xlane.xlu0 %1298  ;;  %9917 = vst [vmem:[#allocation132_spill] sm:$0xff] %v7266_v42 }
 0x214   : > { %9913 = vst [vmem:[#allocation128_spill] sm:$0xff] %v7258_v60 }
 0x216   : > { %v7277_v44 = vpop.xlane.xlu1 %1259 }
 0x217   : > { %v7262_v2 = vpop.xlane.xlu0 %1304  ;;  %9919 = vst [vmem:[#allocation134_spill] sm:$0xff] %v7277_v44  ;;  %v500_v44 = vld [vmem:[%s7275_s23 + $0x68] sm:$0xff] }
 0x218   : > { %9915 = vst [vmem:[#allocation130_spill] sm:$0xff] %v7262_v2 }
 0x21a   : > { %v7284_v42 = vpop.xlane.xlu1 %1265 }
 0x21b   : > { %v7264_v23 = vpop.xlane.xlu0 %1310  ;;  %9922 = vst [vmem:[#allocation137_spill] sm:$0xff] %v7284_v42 }
 0x21c   : > { %9916 = vst [vmem:[#allocation131_spill] sm:$0xff] %v7264_v23 }
 0x21e   : > { %v7290_v23 = vpop.xlane.xlu1 %1271 }
 0x21f   : > { %v7268_v33 = vpop.xlane.xlu0 %1316  ;;  %9924 = vst [vmem:[#allocation139_spill] sm:$0xff] %v7290_v23  ;;  %v9931_v23 = vpack.c.bf16 %v6089_v36, %v6083_v34  ;;  %v9937_v34 = vpack.c.bf16 %v6102_v45, %v6105_v46  ;;  %v9942_v45 = vpack.c.bf16 %v6130_v63, %v6133_v0  ;;  %v9947_v63 = vpack.c.bf16 %v6158_v17, %v6161_v18 }
 0x220   : > { %9918 = vst [vmem:[#allocation133_spill] sm:$0xff] %v7268_v33  ;;  %v498_v33 = vld [vmem:[%s7275_s23 + $0x58] sm:$0xff]  ;;  %v9953_v17 = vpack.c.bf16 %v6298_v14, %v6301_v15  ;;  %v9958_v14 = vpack.c.bf16 %v6326_v3, %v6329_v39  ;;  %v9963_v3 = vpack.c.bf16 %v6354_v40, %v6357_v12  ;;  %v9969_v40 = vpack.c.bf16 %v6382_v20, %v6385_v25 }
 0x221   : > { %v9974_v20 = vpack.c.bf16 %v6522_v47, %v6525_v31  ;;  %v9979_v47 = vpack.c.bf16 %v6550_v51, %v6553_v56  ;;  %v9985_v51 = vpack.c.bf16 %v6578_v62, %v6581_v26  ;;  %v9990_v62 = vpack.c.bf16 %v6606_v22, %v6609_v52 }
 0x223   : > { %v7279_v13 = vpop.xlane.xlu0 %1322 }
 0x224   : > { %9920 = vst [vmem:[#allocation135_spill] sm:$0xff] %v7279_v13 }
 0x227   : > { %v7282_v59 = vpop.xlane.xlu0 %1328 }
 0x228   : > { %9921 = vst [vmem:[#allocation136_spill] sm:$0xff] %v7282_v59  ;;  %2412 = vperm.xlu0 %5837, %v487_v58   ;;  %v7297_v58 = vpop.xlane.xlu1 %1277  ;;  %v502_v59 = vld [vmem:[%s7275_s23 + $0x78] sm:$0xff] }
 0x229   : > { %9927 = vst [vmem:[#allocation142_spill] sm:$0xff] %v7297_v58 }
 0x22b   : > { %v7287_v7 = vpop.xlane.xlu0 %1334 }
 0x22c   : > { %9923 = vst [vmem:[#allocation138_spill] sm:$0xff] %v7287_v7  ;;  %2439 = vperm.xlu0 %5837, %v496_v57   ;;  %v504_v57 = vld [vmem:[%s7275_s23 + $0x88] sm:$0xff]  ;;  %v7303_v7 = vpop.xlane.xlu1 %1283 }
 0x22d   : > { %9929 = vst [vmem:[#allocation144_spill] sm:$0xff] %v7303_v7 }
 0x22f   : > { %v7292_v2 = vpop.xlane.xlu0 %1340 }
 0x230   : > { %9925 = vst [vmem:[#allocation140_spill] sm:$0xff] %v7292_v2  ;;  %2445 = vperm.xlu0 %5837, %v498_v33   ;;  %v506_v33 = vld [vmem:[%s7275_s23 + $0x98] sm:$0xff] }
 0x233   : > { %v7295_v13 = vpop.xlane.xlu0 %1346 }
 0x234   : > { %9926 = vst [vmem:[#allocation141_spill] sm:$0xff] %v7295_v13  ;;  %2451 = vperm.xlu0 %5837, %v500_v44   ;;  %v7313_v13 = vpop.xlane.xlu1 %1289 }
 0x235   : > { %9933 = vst [vmem:[#allocation147_spill] sm:$0xff] %v7313_v13 }
 0x237   : > { %v7300_v42 = vpop.xlane.xlu0 %1352 }
 0x238   : > { %9928 = vst [vmem:[#allocation143_spill] sm:$0xff] %v7300_v42  ;;  %2457 = vperm.xlu0 %5837, %v502_v59   ;;  %v508_v42 = vld [vmem:[%s7275_s23 + $0xa8] sm:$0xff]  ;;  %v9934_v59 = vpack.c.bf16 %v6086_v35, %v6074_v27  ;;  %v9939_v27 = vpack.c.bf16 %v6116_v54, %v6119_v55  ;;  %v9945_v54 = vpack.c.bf16 %v6144_v8, %v6147_v9 }
 0x239   : > { %v9950_v8 = vpack.c.bf16 %v6172_v29, %v6175_v30  ;;  %v9955_v29 = vpack.c.bf16 %v6312_v61, %v6315_v4  ;;  %v9961_v61 = vpack.c.bf16 %v6340_v11, %v6343_v32  ;;  %v9966_v11 = vpack.c.bf16 %v6368_v28, %v6371_v50 }
 0x23a   : > { %v9971_v28 = vpack.c.bf16 %v6396_v1, %v6399_v24  ;;  %v9977_v1 = vpack.c.bf16 %v6536_v38, %v6539_v10  ;;  %v9982_v38 = vpack.c.bf16 %v6564_v16, %v6567_v37  ;;  %v9987_v16 = vpack.c.bf16 %v6592_v41, %v6595_v5 }
 0x23b   : > { %v7305_v60 = vpop.xlane.xlu0 %1358  ;;  %v9993_v41 = vpack.c.bf16 %v6620_v6, %v6623_v21  ;;  %v558_v21 = vld [vmem:[%s7275_s23 + $0x238] sm:$0xff] }
 0x23c   : > { %9930 = vst [vmem:[#allocation145_spill] sm:$0xff] %v7305_v60  ;;  %2463 = vperm.xlu0 %5837, %v504_v57   ;;  %v510_v57 = vld [vmem:[%s7275_s23 + $0xb8] sm:$0xff]  ;;  %v7322_v60 = vpop.xlane.xlu1 %1295 }
 0x23d   : > { %9936 = vst [vmem:[#allocation149_spill] sm:$0xff] %v7322_v60 }
 0x23f   : > { %4082 = vxpose.xlu1.c.b16.start [1/8] (narrow) %v9931_v23, 32  ;;  %v7311_v44 = vpop.xlane.xlu0 %1364  ;;  %v512_v23 = vld [vmem:[%s7275_s23 + $0xc8] sm:$0xff] }
 0x240   : > { %9932 = vst [vmem:[#allocation146_spill] sm:$0xff] %v7311_v44  ;;  %2469 = vperm.xlu0 %5837, %v506_v33   ;;  %v514_v33 = vld [vmem:[%s7275_s23 + $0xd8] sm:$0xff] }
 0x243   : > { %4083 = vxpose.xlu1.c.b16.cont [2/8] (narrow) %v9934_v59, 32  ;;  %v7319_v2 = vpop.xlane.xlu0 %1370  ;;  %v516_v59 = vld [vmem:[%s7275_s23 + $0xe8] sm:$0xff] }
 0x244   : > { %9935 = vst [vmem:[#allocation148_spill] sm:$0xff] %v7319_v2  ;;  %2475 = vperm.xlu0 %5837, %v508_v42   ;;  %v7335_v42 = vpop.xlane.xlu1 %1301 }
 0x245   : > { %9941 = vst [vmem:[#allocation152_spill] sm:$0xff] %v7335_v42 }
 0x247   : > { %4084 = vxpose.xlu1.c.b16.cont [3/8] (narrow) %v9937_v34, 32  ;;  %v7327_v36 = vpop.xlane.xlu0 %1376  ;;  %v518_v34 = vld [vmem:[%s7275_s23 + $0xf8] sm:$0xff] }
 0x248   : > { %9938 = vst [vmem:[#allocation150_spill] sm:$0xff] %v7327_v36  ;;  %2481 = vperm.xlu0 %5837, %v510_v57   ;;  %v7344_v57 = vpop.xlane.xlu1 %1307 }
 0x249   : > { %9944 = vst [vmem:[#allocation154_spill] sm:$0xff] %v7344_v57 }
 0x24b   : > { %4085 = vxpose.xlu1.c.b16.cont [4/8] (narrow) %v9939_v27, 32  ;;  %v7333_v35 = vpop.xlane.xlu0 %1382  ;;  %v520_v27 = vld [vmem:[%s7275_s23 + $0x108] sm:$0xff] }
 0x24c   : > { %9940 = vst [vmem:[#allocation151_spill] sm:$0xff] %v7333_v35  ;;  %2487 = vperm.xlu0 %5837, %v512_v23   ;;  %v7357_v23 = vpop.xlane.xlu1 %1313 }
 0x24d   : > { %9949 = vst [vmem:[#allocation157_spill] sm:$0xff] %v7357_v23 }
 0x24f   : > { %4086 = vxpose.xlu1.c.b16.cont [5/8] (narrow) %v9942_v45, 32  ;;  %v7341_v46 = vpop.xlane.xlu0 %1388 }
 0x250   : > { %9943 = vst [vmem:[#allocation153_spill] sm:$0xff] %v7341_v46  ;;  %2493 = vperm.xlu0 %5837, %v514_v33   ;;  %v522_v33 = vld [vmem:[%s7275_s23 + $0x118] sm:$0xff]  ;;  %v7366_v45 = vpop.xlane.xlu1 %1319 }
 0x251   : > { %9952 = vst [vmem:[#allocation159_spill] sm:$0xff] %v7366_v45 }
 0x253   : > { %4087 = vxpose.xlu1.c.b16.cont [6/8] (narrow) %v9945_v54, 32  ;;  %v7349_v55 = vpop.xlane.xlu0 %1394 }
 0x254   : > { %9946 = vst [vmem:[#allocation155_spill] sm:$0xff] %v7349_v55  ;;  %2499 = vperm.xlu0 %5837, %v516_v59   ;;  %v524_v59 = vld [vmem:[%s7275_s23 + $0x128] sm:$0xff]  ;;  %v7379_v54 = vpop.xlane.xlu1 %1325 }
 0x255   : > { %9957 = vst [vmem:[#allocation162_spill] sm:$0xff] %v7379_v54 }
 0x257   : > { %4088 = vxpose.xlu1.c.b16.cont [7/8] (narrow) %v9947_v63, 32  ;;  %v7355_v0 = vpop.xlane.xlu0 %1400  ;;  %v528_v63 = vld [vmem:[%s7275_s23 + $0x148] sm:$0xff] }
 0x258   : > { %9948 = vst [vmem:[#allocation156_spill] sm:$0xff] %v7355_v0  ;;  %2505 = vperm.xlu0 %5837, %v518_v34   ;;  %v526_v34 = vld [vmem:[%s7275_s23 + $0x138] sm:$0xff] }
 0x25b   : > { %4089 = vxpose.xlu1.c.b16.end [8/8] (narrow) %v9950_v8, 32  ;;  %v7363_v9 = vpop.xlane.xlu0 %1406  ;;  %v530_v8 = vld [vmem:[%s7275_s23 + $0x158] sm:$0xff] }
 0x25c   : > { %9951 = vst [vmem:[#allocation158_spill] sm:$0xff] %v7363_v9  ;;  %2511 = vperm.xlu0 %5837, %v520_v27   ;;  %v7388_v27 = vpop.xlane.xlu1 %1331 }
 0x25d   : > { %9960 = vst [vmem:[#allocation164_spill] sm:$0xff] %v7388_v27 }
 0x25f   : > { %4114 = vxpose.xlu1.c.b16.start [1/8] (narrow) %v9953_v17, 32  ;;  %v7371_v18 = vpop.xlane.xlu0 %1412  ;;  %v532_v17 = vld [vmem:[%s7275_s23 + $0x168] sm:$0xff] }
 0x260   : > { %9954 = vst [vmem:[#allocation160_spill] sm:$0xff] %v7371_v18  ;;  %2517 = vperm.xlu0 %5837, %v522_v33   ;;  %v7401_v33 = vpop.xlane.xlu1 %1337  ;;  %v616_v18 = vld [vmem:[%s7275_s23 + $0x408] sm:$0xff] }
 0x261   : > { %9965 = vst [vmem:[#allocation167_spill] sm:$0xff] %v7401_v33  ;;  %v610_v33 = vld [vmem:[%s7275_s23 + $0x3d8] sm:$0xff] }
 0x263   : > { %4115 = vxpose.xlu1.c.b16.cont [2/8] (narrow) %v9955_v29, 32  ;;  %v7377_v30 = vpop.xlane.xlu0 %1418 }
 0x264   : > { %9956 = vst [vmem:[#allocation161_spill] sm:$0xff] %v7377_v30  ;;  %2523 = vperm.xlu0 %5837, %v524_v59   ;;  %v534_v59 = vld [vmem:[%s7275_s23 + $0x178] sm:$0xff]  ;;  %v7410_v29 = vpop.xlane.xlu1 %1343 }
 0x265   : > { %9968 = vst [vmem:[#allocation169_spill] sm:$0xff] %v7410_v29 }
 0x267   : > { %4116 = vxpose.xlu1.c.b16.cont [3/8] (narrow) %v9958_v14, 32  ;;  %v7385_v15 = vpop.xlane.xlu0 %1424 }
 0x268   : > { %9959 = vst [vmem:[#allocation163_spill] sm:$0xff] %v7385_v15  ;;  %2529 = vperm.xlu0 %5837, %v526_v34   ;;  %v536_v34 = vld [vmem:[%s7275_s23 + $0x188] sm:$0xff]  ;;  %v7423_v14 = vpop.xlane.xlu1 %1349 }
 0x269   : > { %9973 = vst [vmem:[#allocation172_spill] sm:$0xff] %v7423_v14  ;;  %v10040_v15 = vld [vmem:[#allocation107_spill] sm:$0xff] }
 0x26b   : > { %4117 = vxpose.xlu1.c.b16.cont [4/8] (narrow) %v9961_v61, 32  ;;  %v7393_v4 = vpop.xlane.xlu0 %1430  ;;  %v540_v61 = vld [vmem:[%s7275_s23 + $0x1a8] sm:$0xff] }
 0x26c   : > { %9962 = vst [vmem:[#allocation165_spill] sm:$0xff] %v7393_v4  ;;  %2535 = vperm.xlu0 %5837, %v528_v63   ;;  %v538_v63 = vld [vmem:[%s7275_s23 + $0x198] sm:$0xff]  ;;  %v10034_v4 = vld [vmem:[#allocation104_spill] sm:$0xff] }
 0x26f   : > { %4118 = vxpose.xlu1.c.b16.cont [5/8] (narrow) %v9963_v3, 32  ;;  %v7399_v39 = vpop.xlane.xlu0 %1436  ;;  %v542_v3 = vld [vmem:[%s7275_s23 + $0x1b8] sm:$0xff] }
 0x270   : > { %9964 = vst [vmem:[#allocation166_spill] sm:$0xff] %v7399_v39  ;;  %2541 = vperm.xlu0 %5837, %v530_v8   ;;  %v7432_v8 = vpop.xlane.xlu1 %1355  ;;  %v10030_v39 = vld [vmem:[#allocation102_spill] sm:$0xff] }
 0x271   : > { %9976 = vst [vmem:[#allocation174_spill] sm:$0xff] %v7432_v8  ;;  %v604_v8 = vld [vmem:[%s7275_s23 + $0x3a8] sm:$0xff] }
 0x273   : > { %4119 = vxpose.xlu1.c.b16.cont [6/8] (narrow) %v9966_v11, 32  ;;  %v7407_v32 = vpop.xlane.xlu0 %1442  ;;  %v544_v11 = vld [vmem:[%s7275_s23 + $0x1c8] sm:$0xff] }
 0x274   : > { %9967 = vst [vmem:[#allocation168_spill] sm:$0xff] %v7407_v32  ;;  %2547 = vperm.xlu0 %5837, %v532_v17   ;;  %v7445_v17 = vpop.xlane.xlu1 %1361  ;;  %v10023_v32 = vld [vmem:[#allocation66_spill] sm:$0xff] }
 0x275   : > { %9981 = vst [vmem:[#allocation177_spill] sm:$0xff] %v7445_v17 }
 0x277   : > { %4120 = vxpose.xlu1.c.b16.cont [7/8] (narrow) %v9969_v40, 32  ;;  %v7415_v12 = vpop.xlane.xlu0 %1448 }
 0x278   : > { %9970 = vst [vmem:[#allocation170_spill] sm:$0xff] %v7415_v12  ;;  %2553 = vperm.xlu0 %5837, %v534_v59   ;;  %v546_v59 = vld [vmem:[%s7275_s23 + $0x1d8] sm:$0xff]  ;;  %v7454_v40 = vpop.xlane.xlu1 %1367  ;;  %v10019_v12 = vld [vmem:[#allocation64_spill] sm:$0xff] }
 0x279   : > { %9984 = vst [vmem:[#allocation179_spill] sm:$0xff] %v7454_v40  ;;  %v598_v40 = vld [vmem:[%s7275_s23 + $0x378] sm:$0xff] }
 0x27b   : > { %4121 = vxpose.xlu1.c.b16.end [8/8] (narrow) %v9971_v28, 32  ;;  %v7421_v50 = vpop.xlane.xlu0 %1454 }
 0x27c   : > { %9972 = vst [vmem:[#allocation171_spill] sm:$0xff] %v7421_v50  ;;  %2559 = vperm.xlu0 %5837, %v536_v34   ;;  %v548_v34 = vld [vmem:[%s7275_s23 + $0x1e8] sm:$0xff]  ;;  %v7467_v28 = vpop.xlane.xlu1 %1373 }
 0x27d   : > { %9989 = vst [vmem:[#allocation182_spill] sm:$0xff] %v7467_v28  ;;  %v10018_v50 = vld [vmem:[#allocation63_spill] sm:$0xff] }
 0x27f   : > { %4146 = vxpose.xlu1.c.b16.start [1/8] (narrow) %v9974_v20, 32  ;;  %v7429_v25 = vpop.xlane.xlu0 %1460  ;;  %v552_v20 = vld [vmem:[%s7275_s23 + $0x208] sm:$0xff] }
 0x280   : > { %9975 = vst [vmem:[#allocation173_spill] sm:$0xff] %v7429_v25  ;;  %2565 = vperm.xlu0 %5837, %v538_v63   ;;  %v550_v63 = vld [vmem:[%s7275_s23 + $0x1f8] sm:$0xff] }
 0x281   : > { %v566_v25 = vld [vmem:[%s7275_s23 + $0x278] sm:$0xff] }
 0x283   : > { %4147 = vxpose.xlu1.c.b16.cont [2/8] (narrow) %v9977_v1, 32  ;;  %v7437_v24 = vpop.xlane.xlu0 %1466  ;;  %v554_v1 = vld [vmem:[%s7275_s23 + $0x218] sm:$0xff] }
 0x284   : > { %9978 = vst [vmem:[#allocation175_spill] sm:$0xff] %v7437_v24  ;;  %2571 = vperm.xlu0 %5837, %v540_v61   ;;  %v7476_v61 = vpop.xlane.xlu1 %1379 }
 0x285   : > { %9992 = vst [vmem:[#allocation184_spill] sm:$0xff] %v7476_v61 }
 0x287   : > { %4148 = vxpose.xlu1.c.b16.cont [3/8] (narrow) %v9979_v47, 32  ;;  %v7443_v31 = vpop.xlane.xlu0 %1472  ;;  %v9996_v47 = vld [vmem:[#allocation52_spill] sm:$0xff] }
 0x288   : > { %9980 = vst [vmem:[#allocation176_spill] sm:$0xff] %v7443_v31  ;;  %2577 = vperm.xlu0 %5837, %v542_v3   ;;  %v9995_v3 = vld [vmem:[#allocation51_spill] sm:$0xff]  ;;  %v7487_v52 = vpop.xlane.xlu1 %1385  ;;  %v10053_v31 = vmov 0  }
 0x289   : > { %v9997_v22 = vpack.c.bf16 %v9995_v3, %v9996_v47  ;;  %9998 = vst [vmem:[#allocation51_spill] sm:$0xff] %v7487_v52  ;;  %v10008_v3 = vld [vmem:[#allocation58_spill] sm:$0xff] }
 0x28b   : > { %4149 = vxpose.xlu1.c.b16.cont [4/8] (narrow) %v9982_v38, 32  ;;  %v7451_v10 = vpop.xlane.xlu0 %1478 }
 0x28c   : > { %9983 = vst [vmem:[#allocation178_spill] sm:$0xff] %v7451_v10  ;;  %2583 = vperm.xlu0 %5837, %v544_v11   ;;  %v556_v11 = vld [vmem:[%s7275_s23 + $0x228] sm:$0xff]  ;;  %v10041_v10 = vld [vmem:[#allocation108_spill] sm:$0xff] }
 0x28d   : > { %v10042_v30 = vpack.c.bf16 %v10040_v15, %v10041_v10  ;;  %v10047_v10 = vmov 0.0  }
 0x28f   : > { %4150 = vxpose.xlu1.c.b16.cont [5/8] (narrow) %v9985_v51, 32  ;;  %v7459_v56 = vpop.xlane.xlu0 %1484  ;;  %v10001_v51 = vld [vmem:[#allocation54_spill] sm:$0xff] }
 0x290   : > { %9986 = vst [vmem:[#allocation180_spill] sm:$0xff] %v7459_v56  ;;  %2589 = vperm.xlu0 %5837, %v546_v59   ;;  %v10000_v59 = vld [vmem:[#allocation53_spill] sm:$0xff] }
 0x291   : > { %v10002_v6 = vpack.c.bf16 %v10000_v59, %v10001_v51  ;;  %v562_v59 = vld [vmem:[%s7275_s23 + $0x258] sm:$0xff]  ;;  %v10011_v51 = vld [vmem:[#allocation59_spill] sm:$0xff] }
 0x292   : > { %v578_v56 = vld [vmem:[%s7275_s23 + $0x2d8] sm:$0xff] }
 0x293   : > { %4151 = vxpose.xlu1.c.b16.cont [6/8] (narrow) %v9987_v16, 32  ;;  %v7465_v37 = vpop.xlane.xlu0 %1490  ;;  %v10004_v16 = vld [vmem:[#allocation55_spill] sm:$0xff] }
 0x294   : > { %9988 = vst [vmem:[#allocation181_spill] sm:$0xff] %v7465_v37  ;;  %2595 = vperm.xlu0 %5837, %v548_v34   ;;  %v7496_v34 = vpop.xlane.xlu1 %1391  ;;  %v10033_v37 = vld [vmem:[#allocation103_spill] sm:$0xff] }
 0x295   : > { %10003 = vst [vmem:[#allocation53_spill] sm:$0xff] %v7496_v34 }
 0x297   : > { %4152 = vxpose.xlu1.c.b16.cont [7/8] (narrow) %v9990_v62, 32  ;;  %v7473_v26 = vpop.xlane.xlu0 %1496 }
 0x298   : > { %9991 = vst [vmem:[#allocation183_spill] sm:$0xff] %v7473_v26  ;;  %2601 = vperm.xlu0 %5837, %v550_v63   ;;  %v10005_v63 = vld [vmem:[#allocation56_spill] sm:$0xff]  ;;  %v10029_v26 = vld [vmem:[#allocation101_spill] sm:$0xff] }
 0x299   : > { %v10006_v62 = vpack.c.bf16 %v10004_v16, %v10005_v63 }
 0x29b   : > { %4153 = vxpose.xlu1.c.b16.end [8/8] (narrow) %v9993_v41, 32  ;;  %v7481_v5 = vpop.xlane.xlu0 %1502  ;;  %v560_v41 = vld [vmem:[%s7275_s23 + $0x248] sm:$0xff] }
 0x29c   : > { %2607 = vperm.xlu0 %5837, %v552_v20   ;;  %9994 = vst [vmem:[#allocation185_spill] sm:$0xff] %v7481_v5  ;;  %v572_v5 = vld [vmem:[%s7275_s23 + $0x2a8] sm:$0xff] }
 0x29f   : > { %4178 = vxpose.xlu1.c.b16.start [1/8] (narrow) %v9997_v22, 32  ;;  %v7490_v38 = vpop.xlane.xlu0 %1508 }
 0x2a0   : > { %2613 = vperm.xlu0 %5837, %v554_v1   ;;  %9999 = vst [vmem:[#allocation52_spill] sm:$0xff] %v7490_v38  ;;  %v10007_v1 = vld [vmem:[#allocation57_spill] sm:$0xff] }
 0x2a1   : > { %v10009_v47 = vpack.c.bf16 %v10007_v1, %v10008_v3  ;;  %v10015_v1 = vld [vmem:[#allocation61_spill] sm:$0xff]  ;;  %v10016_v3 = vld [vmem:[#allocation62_spill] sm:$0xff] }
 0x2a2   : > { %v10022_v38 = vld [vmem:[#allocation65_spill] sm:$0xff] }
 0x2a3   : > { %4179 = vxpose.xlu1.c.b16.cont [2/8] (narrow) %v10002_v6, 32  ;;  %v10012_v6 = vld [vmem:[#allocation60_spill] sm:$0xff] }
 0x2a4   : > { %2619 = vperm.xlu0 %5837, %v556_v11   ;;  %v7509_v11 = vpop.xlane.xlu1 %1397  ;;  %v10013_v16 = vpack.c.bf16 %v10011_v51, %v10012_v6  ;;  %v10020_v51 = vpack.c.bf16 %v10018_v50, %v10019_v12  ;;  %v10026_v12 = vld [vmem:[#allocation99_spill] sm:$0xff]  ;;  %v10027_v50 = vld [vmem:[#allocation100_spill] sm:$0xff] }
 0x2a5   : > { %10010 = vst [vmem:[#allocation54_spill] sm:$0xff] %v7509_v11 }
 0x2a7   : > { %4180 = vxpose.xlu1.c.b16.cont [3/8] (narrow) %v10006_v62, 32  ;;  %v7501_v20 = vpop.permute.xlu0 %2412 }
 0x2a8   : > { %2625 = vperm.xlu0 %5837, %v558_v21   ;;  %v564_v21 = vld [vmem:[%s7275_s23 + $0x268] sm:$0xff]  ;;  %v7518_v62 = vpop.xlane.xlu1 %1403 }
 0x2a9   : > { %10014 = vst [vmem:[#allocation55_spill] sm:$0xff] %v7518_v62 }
 0x2ab   : > { %4181 = vxpose.xlu1.c.b16.cont [4/8] (narrow) %v10009_v47, 32  ;;  %v7507_v22 = vpop.permute.xlu0 %2439  ;;  %v10017_v47 = vpack.c.bf16 %v10015_v1, %v10016_v3  ;;  %v10024_v1 = vpack.c.bf16 %v10022_v38, %v10023_v32  ;;  %v10031_v32 = vpack.c.bf16 %v10029_v26, %v10030_v39  ;;  %v10037_v39 = vld [vmem:[#allocation105_spill] sm:$0xff]  ;;  %v10038_v26 = vld [vmem:[#allocation106_spill] sm:$0xff] }
 0x2ac   : > { %2631 = vperm.xlu0 %5837, %v560_v41  }
 0x2af   : > { %4182 = vxpose.xlu1.c.b16.cont [5/8] (narrow) %v10013_v16, 32  ;;  %v7515_v63 = vpop.permute.xlu0 %2445  ;;  %v568_v16 = vld [vmem:[%s7275_s23 + $0x288] sm:$0xff] }
 0x2b0   : > { %2637 = vperm.xlu0 %5837, %v562_v59   ;;  %v7531_v59 = vpop.xlane.xlu1 %1409 }
 0x2b1   : > { %10021 = vst [vmem:[#allocation56_spill] sm:$0xff] %v7531_v59 }
 0x2b3   : > { %4183 = vxpose.xlu1.c.b16.cont [6/8] (narrow) %v10017_v47, 32  ;;  %v7523_v41 = vpop.permute.xlu0 %2451 }
 0x2b4   : > { %2643 = vperm.xlu0 %5837, %v564_v21   ;;  %v570_v21 = vld [vmem:[%s7275_s23 + $0x298] sm:$0xff]  ;;  %v7540_v47 = vpop.xlane.xlu1 %1415 }
 0x2b5   : > { %10025 = vst [vmem:[#allocation57_spill] sm:$0xff] %v7540_v47 }
 0x2b7   : > { %4184 = vxpose.xlu1.c.b16.cont [7/8] (narrow) %v10020_v51, 32  ;;  %v7529_v6 = vpop.permute.xlu0 %2457  ;;  %v10028_v51 = vpack.c.bf16 %v10026_v12, %v10027_v50  ;;  %v10035_v12 = vpack.c.bf16 %v10033_v37, %v10034_v4 }
 0x2b8   : > { %2649 = vperm.xlu0 %5837, %v566_v25  }
 0x2bb   : > { %4185 = vxpose.xlu1.c.b16.end [8/8] (narrow) %v10024_v1, 32  ;;  %v7537_v3 = vpop.permute.xlu0 %2463  ;;  %v574_v1 = vld [vmem:[%s7275_s23 + $0x2b8] sm:$0xff] }
 0x2bc   : > { %2655 = vperm.xlu0 %5837, %v568_v16   ;;  %v7553_v16 = vpop.xlane.xlu1 %1421 }
 0x2bd   : > { %10032 = vst [vmem:[#allocation58_spill] sm:$0xff] %v7553_v16  ;;  %v586_v16 = vld [vmem:[%s7275_s23 + $0x318] sm:$0xff] }
 0x2bf   : > { %4226 = vxpose.xlu1.c.b16.start [1/8] (narrow) %v10028_v51, 32  ;;  %v7545_v25 = vpop.permute.xlu0 %2469 }
 0x2c0   : > { %2661 = vperm.xlu0 %5837, %v570_v21   ;;  %v576_v21 = vld [vmem:[%s7275_s23 + $0x2c8] sm:$0xff]  ;;  %v7562_v51 = vpop.xlane.xlu1 %1427 }
 0x2c1   : > { %10036 = vst [vmem:[#allocation59_spill] sm:$0xff] %v7562_v51 }
 0x2c3   : > { %4227 = vxpose.xlu1.c.b16.cont [2/8] (narrow) %v10031_v32, 32  ;;  %v7551_v38 = vpop.permute.xlu0 %2475  ;;  %v10039_v32 = vpack.c.bf16 %v10037_v39, %v10038_v26  ;;  %v4972_v26 = vsel %vm1673_vm10, 1.0, %v10047_v10 }
 0x2c4   : > { %2667 = vperm.xlu0 %5837, %v572_v5   ;;  %v7575_v37 = vpop.xlane.xlu1 %1433 }
 0x2c5   : > { %10043 = vst [vmem:[#allocation60_spill] sm:$0xff] %v7575_v37  ;;  %v10050_v37 = vld [vmem:[#allocation112_spill] sm:$0xff] }
 0x2c6   : > { %v10051_v51 = vpack.c.bf16 %v10049_v48, %v10050_v37  ;;  %v489_v37 = vld [vmem:[%s7275_s23 + $0x10] sm:$0xff]  ;;  %v490_v48 = vld [vmem:[%s7275_s23 + $0x18] sm:$0xff] }
 0x2c7   : > { %4228 = vxpose.xlu1.c.b16.cont [3/8] (narrow) %v10035_v12, 32  ;;  %v7559_v50 = vpop.permute.xlu0 %2481  ;;  %v10044_v12 = vld [vmem:[#allocation109_spill] sm:$0xff] }
 0x2c8   : > { %2673 = vperm.xlu0 %5837, %v574_v1   ;;  %v580_v1 = vld [vmem:[%s7275_s23 + $0x2e8] sm:$0xff] }
 0x2cb   : > { %4229 = vxpose.xlu1.c.b16.cont [4/8] (narrow) %v10039_v32, 32  ;;  %v7567_v5 = vpop.permute.xlu0 %2487  ;;  %v7590_v32 = vpop.xlane.xlu1 %1439 }
 0x2cc   : > { %2679 = vperm.xlu0 %5837, %v576_v21   ;;  %v10045_v21 = vld [vmem:[#allocation110_spill] sm:$0xff]  ;;  %10048 = vst [vmem:[#allocation61_spill] sm:$0xff] %v7590_v32  ;;  %v488_v32 = vld [vmem:[%s7275_s23 + $0x8] sm:$0xff] }
 0x2cd   : > { %v10046_v39 = vpack.c.bf16 %v10044_v12, %v10045_v21  ;;  %v584_v21 = vld [vmem:[%s7275_s23 + $0x308] sm:$0xff] }
 0x2cf   : > { %4230 = vxpose.xlu1.c.b16.cont [5/8] (narrow) %v10042_v30, 32  ;;  %v7573_v4 = vpop.permute.xlu0 %2493  ;;  %v582_v30 = vld [vmem:[%s7275_s23 + $0x2f8] sm:$0xff] }
 0x2d0   : > { %2685 = vperm.xlu0 %5837, %v578_v56   ;;  %v4973_v56 = vsel %vm1674_vm9, 1.0, %v10047_v10 }
 0x2d1   : > { %v2362_v12 = vpack.c.bf16 %v4973_v56, %v4972_v26 }
 0x2d3   : > { %4231 = vxpose.xlu1.c.b16.cont [6/8] (narrow) %v10046_v39, 32  ;;  %v7585_v15 = vpop.permute.xlu0 %2499  ;;  %v7600_v39 = vpop.xlane.xlu1 %1445 }
 0x2d4   : > { %2691 = vperm.xlu0 %5837, %v580_v1   ;;  %10052 = vst [vmem:[#allocation62_spill] sm:$0xff] %v7600_v39 }
 0x2d7   : > { %4232 = vxpose.xlu1.c.b16.cont [7/8] (narrow) %v10051_v51, 32  ;;  %v7595_v43 = vpop.permute.xlu0 %2505  ;;  %v7609_v56 = vpop.xlane.xlu1 %1451 }
 0x2d8   : > { %2697 = vperm.xlu0 %5837, %v582_v30   ;;  %v588_v30 = vld [vmem:[%s7275_s23 + $0x328] sm:$0xff]  ;;  %10054 = vst [vmem:[#allocation63_spill] sm:$0xff] %v7609_v56 }
 0x2db   : > { %4233 = vxpose.xlu1.c.b16.end [8/8] (narrow) %v2362_v12, 32  ;;  %v7598_v1 = vpop.permute.xlu0 %2511  ;;  %v590_v12 = vld [vmem:[%s7275_s23 + $0x338] sm:$0xff] }
 0x2dc   : > { %2703 = vperm.xlu0 %5837, %v584_v21   ;;  %v592_v21 = vld [vmem:[%s7275_s23 + $0x348] sm:$0xff] }
 0x2df   : > { %5838 = vset.pattern.permute.xlu1 %v10053_v31  ;;  %v7605_v51 = vpop.permute.xlu0 %2517 }
 0x2e0   : > { %2415 = vperm.xlu1 %5838, %v488_v32   ;;  %2709 = vperm.xlu0 %5837, %v586_v16   ;;  %v7617_v32 = vpop.xlane.xlu1 %1457  ;;  %v491_v16 = vld [vmem:[%s7275_s23 + $0x20] sm:$0xff] }
 0x2e1   : > { %10055 = vst [vmem:[#allocation64_spill] sm:$0xff] %v7617_v32 }
 0x2e3   : > { %v7611_v26 = vpop.permute.xlu0 %2523 }
 0x2e4   : > { %2418 = vperm.xlu1 %5838, %v489_v37   ;;  %2715 = vperm.xlu0 %5837, %v588_v30   ;;  %v492_v37 = vld [vmem:[%s7275_s23 + $0x28] sm:$0xff]  ;;  %v594_v30 = vld [vmem:[%s7275_s23 + $0x358] sm:$0xff]  ;;  %v7625_v56 = vpop.xlane.xlu1 %1463 }
 0x2e5   : > { %10056 = vst [vmem:[#allocation65_spill] sm:$0xff] %v7625_v56 }
 0x2e7   : > { %v7615_v31 = vpop.permute.xlu0 %2529 }
 0x2e8   : > { %2421 = vperm.xlu1 %5838, %v490_v48   ;;  %2721 = vperm.xlu0 %5837, %v590_v12   ;;  %v493_v48 = vld [vmem:[%s7275_s23 + $0x30] sm:$0xff]  ;;  %v596_v12 = vld [vmem:[%s7275_s23 + $0x368] sm:$0xff] }
 0x2eb   : > { %v7621_v39 = vpop.permute.xlu0 %2535 }
 0x2ec   : > { %2424 = vperm.xlu1 %5838, %v491_v16   ;;  %2727 = vperm.xlu0 %5837, %v592_v21   ;;  %v7633_v16 = vpop.xlane.xlu1 %1469  ;;  %v494_v21 = vld [vmem:[%s7275_s23 + $0x38] sm:$0xff] }
 0x2ed   : > { %10057 = vst [vmem:[#allocation66_spill] sm:$0xff] %v7633_v16 }
 0x2ef   : > { %v7627_v44 = vpop.permute.xlu0 %2541 }
 0x2f0   : > { %2427 = vperm.xlu1 %5838, %v492_v37   ;;  %2733 = vperm.xlu0 %5837, %v594_v30   ;;  %v495_v37 = vld [vmem:[%s7275_s23 + $0x40] sm:$0xff]  ;;  %v600_v30 = vld [vmem:[%s7275_s23 + $0x388] sm:$0xff]  ;;  %v7641_v56 = vpop.xlane.xlu1 %1475 }
 0x2f1   : > { %10058 = vst [vmem:[#allocation99_spill] sm:$0xff] %v7641_v56 }
 0x2f3   : > { %v7631_v32 = vpop.permute.xlu0 %2547 }
 0x2f4   : > { %2430 = vperm.xlu1 %5838, %v493_v48   ;;  %2739 = vperm.xlu0 %5837, %v596_v12   ;;  %v497_v48 = vld [vmem:[%s7275_s23 + $0x50] sm:$0xff]  ;;  %v602_v12 = vld [vmem:[%s7275_s23 + $0x398] sm:$0xff] }
 0x2f7   : > { %v7637_v24 = vpop.permute.xlu0 %2553 }
 0x2f8   : > { %2433 = vperm.xlu1 %5838, %v494_v21   ;;  %2745 = vperm.xlu0 %5837, %v598_v40   ;;  %v7649_v21 = vpop.xlane.xlu1 %1481  ;;  %v499_v40 = vld [vmem:[%s7275_s23 + $0x60] sm:$0xff] }
 0x2f9   : > { %10059 = vst [vmem:[#allocation100_spill] sm:$0xff] %v7649_v21 }
 0x2fb   : > { %v7643_v17 = vpop.permute.xlu0 %2559 }
 0x2fc   : > { %2436 = vperm.xlu1 %5838, %v495_v37   ;;  %2751 = vperm.xlu0 %5837, %v600_v30   ;;  %v501_v37 = vld [vmem:[%s7275_s23 + $0x70] sm:$0xff]  ;;  %v606_v30 = vld [vmem:[%s7275_s23 + $0x3b8] sm:$0xff]  ;;  %v7657_v56 = vpop.xlane.xlu1 %1487 }
 0x2fd   : > { %10060 = vst [vmem:[#allocation101_spill] sm:$0xff] %v7657_v56 }
 0x2ff   : > { %v7647_v16 = vpop.permute.xlu0 %2565 }
 0x300   : > { %2442 = vperm.xlu1 %5838, %v497_v48   ;;  %2757 = vperm.xlu0 %5837, %v602_v12   ;;  %v503_v48 = vld [vmem:[%s7275_s23 + $0x80] sm:$0xff]  ;;  %v608_v12 = vld [vmem:[%s7275_s23 + $0x3c8] sm:$0xff] }
 0x303   : > { %v7653_v14 = vpop.permute.xlu0 %2571 }
 0x304   : > { %2448 = vperm.xlu1 %5838, %v499_v40   ;;  %2763 = vperm.xlu0 %5837, %v604_v8   ;;  %v7665_v40 = vpop.xlane.xlu1 %1493  ;;  %v505_v8 = vld [vmem:[%s7275_s23 + $0x90] sm:$0xff] }
 0x305   : > { %10061 = vst [vmem:[#allocation102_spill] sm:$0xff] %v7665_v40 }
 0x307   : > { %v7659_v29 = vpop.permute.xlu0 %2577 }
 0x308   : > { %2454 = vperm.xlu1 %5838, %v501_v37   ;;  %2769 = vperm.xlu0 %5837, %v606_v30   ;;  %v507_v37 = vld [vmem:[%s7275_s23 + $0xa0] sm:$0xff]  ;;  %v612_v30 = vld [vmem:[%s7275_s23 + $0x3e8] sm:$0xff]  ;;  %v7673_v56 = vpop.xlane.xlu1 %1499 }
 0x309   : > { %10062 = vst [vmem:[#allocation103_spill] sm:$0xff] %v7673_v56 }
 0x30b   : > { %v7663_v21 = vpop.permute.xlu0 %2583 }
 0x30c   : > { %2460 = vperm.xlu1 %5838, %v503_v48   ;;  %2775 = vperm.xlu0 %5837, %v608_v12   ;;  %v509_v48 = vld [vmem:[%s7275_s23 + $0xb0] sm:$0xff]  ;;  %v614_v12 = vld [vmem:[%s7275_s23 + $0x3f8] sm:$0xff] }
 0x30f   : > { %v7669_v27 = vpop.permute.xlu0 %2589 }
 0x310   : > { %2466 = vperm.xlu1 %5838, %v505_v8   ;;  %2781 = vperm.xlu0 %5837, %v610_v33   ;;  %v7681_v8 = vpop.xlane.xlu1 %1505  ;;  %v511_v33 = vld [vmem:[%s7275_s23 + $0xc0] sm:$0xff] }
 0x311   : > { %10063 = vst [vmem:[#allocation104_spill] sm:$0xff] %v7681_v8 }
 0x313   : > { %v7675_v54 = vpop.permute.xlu0 %2595 }
 0x314   : > { %2472 = vperm.xlu1 %5838, %v507_v37   ;;  %2787 = vperm.xlu0 %5837, %v612_v30   ;;  %v513_v37 = vld [vmem:[%s7275_s23 + $0xd0] sm:$0xff]  ;;  %v618_v30 = vld [vmem:[%s7275_s23 + $0x418] sm:$0xff]  ;;  %v7689_v56 = vpop.xlane.xlu1 %1511 }
 0x315   : > { %10064 = vst [vmem:[#allocation105_spill] sm:$0xff] %v7689_v56 }
 0x317   : > { %v7679_v40 = vpop.permute.xlu0 %2601 }
 0x318   : > { %2478 = vperm.xlu1 %5838, %v509_v48   ;;  %2793 = vperm.xlu0 %5837, %v614_v12   ;;  %v515_v48 = vld [vmem:[%s7275_s23 + $0xe0] sm:$0xff]  ;;  %v620_v12 = vld [vmem:[%s7275_s23 + $0x428] sm:$0xff]  ;;  %v7697_v59 = vpop.trf.xlu1 }
 0x31b   : > { %v7685_v47 = vpop.permute.xlu0 %2607 }
 0x31c   : > { %2484 = vperm.xlu1 %5838, %v511_v33   ;;  %2799 = vperm.xlu0 %5837, %v616_v18   ;;  %v517_v18 = vld [vmem:[%s7275_s23 + $0xf0] sm:$0xff]  ;;  %v622_v33 = vld [vmem:[%s7275_s23 + $0x438] sm:$0xff]  ;;  %v7705_v56 = vpop.trf.xlu1 }
 0x31f   : > { %v7691_v9 = vpop.permute.xlu0 %2613 }
 0x320   : > { %2490 = vperm.xlu1 %5838, %v513_v37   ;;  %2805 = vperm.xlu0 %5837, %v618_v30   ;;  %v519_v37 = vld [vmem:[%s7275_s23 + $0x100] sm:$0xff]  ;;  %v624_v30 = vld [vmem:[%s7275_s23 + $0x448] sm:$0xff]  ;;  %v7713_v11 = vpop.trf.xlu1 }
 0x321   : > { %10065 = vst [vmem:[#allocation106_spill] sm:$0xff] %v7713_v11 }
 0x323   : > { %v7695_v8 = vpop.permute.xlu0 %2619 }
 0x324   : > { %2496 = vperm.xlu1 %5838, %v515_v48   ;;  %2811 = vperm.xlu0 %5837, %v620_v12   ;;  %v521_v48 = vld [vmem:[%s7275_s23 + $0x110] sm:$0xff]  ;;  %v626_v12 = vld [vmem:[%s7275_s23 + $0x458] sm:$0xff]  ;;  %v7721_v34 = vpop.trf.xlu1 }
 0x325   : > { %10067 = vst [vmem:[#allocation108_spill] sm:$0xff] %v7721_v34 }
 0x327   : > { %v7701_v0 = vpop.permute.xlu0 %2625 }
 0x328   : > { %2502 = vperm.xlu1 %5838, %v517_v18   ;;  %2817 = vperm.xlu0 %5837, %v622_v33   ;;  %v523_v18 = vld [vmem:[%s7275_s23 + $0x120] sm:$0xff]  ;;  %v628_v33 = vld [vmem:[%s7275_s23 + $0x468] sm:$0xff]  ;;  %v7729_v36 = vpop.trf.xlu1 }
 0x329   : > { %10069 = vst [vmem:[#allocation110_spill] sm:$0xff] %v7729_v36 }
 0x32b   : > { %v7707_v62 = vpop.permute.xlu0 %2631 }
 0x32c   : > { %2508 = vperm.xlu1 %5838, %v519_v37   ;;  %2823 = vperm.xlu0 %5837, %v624_v30   ;;  %v525_v37 = vld [vmem:[%s7275_s23 + $0x130] sm:$0xff]  ;;  %v630_v30 = vld [vmem:[%s7275_s23 + $0x478] sm:$0xff]  ;;  %v7737_v2 = vpop.trf.xlu1 }
 0x32d   : > { %10070 = vst [vmem:[#allocation111_spill] sm:$0xff] %v7737_v2 }
 0x32f   : > { %v7711_v55 = vpop.permute.xlu0 %2637 }
 0x330   : > { %2514 = vperm.xlu1 %5838, %v521_v48   ;;  %2829 = vperm.xlu0 %5837, %v626_v12   ;;  %v527_v48 = vld [vmem:[%s7275_s23 + $0x140] sm:$0xff]  ;;  %v632_v12 = vld [vmem:[%s7275_s23 + $0x488] sm:$0xff]  ;;  %v7745_v23 = vpop.trf.xlu1 }
 0x331   : > { %10071 = vst [vmem:[#allocation112_spill] sm:$0xff] %v7745_v23 }
 0x333   : > { %v7717_v46 = vpop.permute.xlu0 %2643 }
 0x334   : > { %10066 = vst [vmem:[#allocation107_spill] sm:$0xff] %v7717_v46  ;;  %2520 = vperm.xlu1 %5838, %v523_v18   ;;  %2835 = vperm.xlu0 %5837, %v628_v33   ;;  %v529_v18 = vld [vmem:[%s7275_s23 + $0x150] sm:$0xff]  ;;  %v634_v33 = vld [vmem:[%s7275_s23 + $0x498] sm:$0xff]  ;;  %v7753_v2 = vpop.trf.xlu1 }
 0x335   : > { %10072 = vst [vmem:[#allocation186_spill] sm:$0xff] %v7753_v2 }
 0x337   : > { %v7723_v35 = vpop.permute.xlu0 %2649 }
 0x338   : > { %10068 = vst [vmem:[#allocation109_spill] sm:$0xff] %v7723_v35  ;;  %2526 = vperm.xlu1 %5838, %v525_v37   ;;  %2841 = vperm.xlu0 %5837, %v630_v30   ;;  %v531_v37 = vld [vmem:[%s7275_s23 + $0x160] sm:$0xff]  ;;  %v636_v30 = vld [vmem:[%s7275_s23 + $0x4a8] sm:$0xff]  ;;  %v7761_v42 = vpop.trf.xlu1 }
 0x339   : > { %10074 = vst [vmem:[#allocation188_spill] sm:$0xff] %v7761_v42 }
 0x33b   : > { %v7727_v52 = vpop.permute.xlu0 %2655 }
 0x33c   : > { %2532 = vperm.xlu1 %5838, %v527_v48   ;;  %2847 = vperm.xlu0 %5837, %v632_v12   ;;  %v533_v48 = vld [vmem:[%s7275_s23 + $0x170] sm:$0xff]  ;;  %v638_v12 = vld [vmem:[%s7275_s23 + $0x4b8] sm:$0xff] }
 0x33f   : > { %v7733_v61 = vpop.permute.xlu0 %2661 }
 0x340   : > { %2538 = vperm.xlu1 %5838, %v529_v18   ;;  %2853 = vperm.xlu0 %5837, %v634_v33   ;;  %v535_v18 = vld [vmem:[%s7275_s23 + $0x180] sm:$0xff]  ;;  %v640_v33 = vld [vmem:[%s7275_s23 + $0x4c8] sm:$0xff] }
 0x343   : > { %v7739_v28 = vpop.permute.xlu0 %2667 }
 0x344   : > { %2544 = vperm.xlu1 %5838, %v531_v37   ;;  %2859 = vperm.xlu0 %5837, %v636_v30   ;;  %v537_v37 = vld [vmem:[%s7275_s23 + $0x190] sm:$0xff]  ;;  %v642_v30 = vld [vmem:[%s7275_s23 + $0x4d8] sm:$0xff] }
 0x347   : > { %v7743_v45 = vpop.permute.xlu0 %2673 }
 0x348   : > { %2550 = vperm.xlu1 %5838, %v533_v48   ;;  %2865 = vperm.xlu0 %5837, %v638_v12   ;;  %v539_v48 = vld [vmem:[%s7275_s23 + $0x1a0] sm:$0xff]  ;;  %v644_v12 = vld [vmem:[%s7275_s23 + $0x4e8] sm:$0xff] }
 0x34b   : > { %v7749_v57 = vpop.permute.xlu0 %2679 }
 0x34c   : > { %2556 = vperm.xlu1 %5838, %v535_v18   ;;  %2871 = vperm.xlu0 %5837, %v640_v33   ;;  %v541_v18 = vld [vmem:[%s7275_s23 + $0x1b0] sm:$0xff]  ;;  %v646_v33 = vld [vmem:[%s7275_s23 + $0x4f8] sm:$0xff] }
 0x34f   : > { %v7755_v36 = vpop.permute.xlu0 %2685 }
 0x350   : > { %2562 = vperm.xlu1 %5838, %v537_v37   ;;  %2877 = vperm.xlu0 %5837, %v642_v30   ;;  %v7767_v37 = vpop.trf.xlu1  ;;  %v543_v30 = vld [vmem:[%s7275_s23 + $0x1c0] sm:$0xff] }
 0x351   : > { %10076 = vst [vmem:[#allocation190_spill] sm:$0xff] %v7767_v37 }
 0x353   : > { %v7759_v23 = vpop.permute.xlu0 %2691 }
 0x354   : > { %10073 = vst [vmem:[#allocation187_spill] sm:$0xff] %v7759_v23  ;;  %2568 = vperm.xlu1 %5838, %v539_v48   ;;  %2883 = vperm.xlu0 %5837, %v644_v12   ;;  %v545_v48 = vld [vmem:[%s7275_s23 + $0x1d0] sm:$0xff]  ;;  %v650_v12 = vld [vmem:[%s7275_s23 + $0x518] sm:$0xff] }
 0x357   : > { %v7765_v2 = vpop.permute.xlu0 %2697 }
 0x358   : > { %10075 = vst [vmem:[#allocation189_spill] sm:$0xff] %v7765_v2  ;;  %2574 = vperm.xlu1 %5838, %v541_v18   ;;  %2889 = vperm.xlu0 %5837, %v646_v33   ;;  %v547_v18 = vld [vmem:[%s7275_s23 + $0x1e0] sm:$0xff]  ;;  %v652_v33 = vld [vmem:[%s7275_s23 + $0x528] sm:$0xff] }
 0x35b   : > { %v7771_v60 = vpop.permute.xlu0 %2703 }
 0x35c   : > { %10077 = vst [vmem:[#allocation191_spill] sm:$0xff] %v7771_v60  ;;  %2580 = vperm.xlu1 %5838, %v543_v30   ;;  %2895 = vperm.xlu0 %5837, %v648_v53   ;;  %v549_v53 = vld [vmem:[%s7275_s23 + $0x1f0] sm:$0xff]  ;;  %v654_v30 = vld [vmem:[%s7275_s23 + $0x538] sm:$0xff] }
 0x35f   : > { %v7775_v42 = vpop.permute.xlu1 %2415  ;;  %v7777_v13 = vpop.permute.xlu0 %2709 }
 0x360   : > { %10078 = vst [vmem:[#allocation192_spill] sm:$0xff] %v7777_v13  ;;  %2586 = vperm.xlu1 %5838, %v545_v48   ;;  %2901 = vperm.xlu0 %5837, %v650_v12   ;;  %v551_v48 = vld [vmem:[%s7275_s23 + $0x200] sm:$0xff]  ;;  %v656_v12 = vld [vmem:[%s7275_s23 + $0x548] sm:$0xff] }
 0x363   : > { %v7781_v37 = vpop.permute.xlu1 %2418  ;;  %v7783_v49 = vpop.permute.xlu0 %2715 }
 0x364   : > { %10079 = vst [vmem:[#allocation193_spill] sm:$0xff] %v7783_v49  ;;  %2592 = vperm.xlu1 %5838, %v547_v18   ;;  %2907 = vperm.xlu0 %5837, %v652_v33   ;;  %v553_v18 = vld [vmem:[%s7275_s23 + $0x210] sm:$0xff]  ;;  %v658_v33 = vld [vmem:[%s7275_s23 + $0x558] sm:$0xff] }
 0x367   : > { %v7787_v7 = vpop.permute.xlu1 %2421  ;;  %v7789_v10 = vpop.permute.xlu0 %2721 }
 0x368   : > { %10080 = vst [vmem:[#allocation194_spill] sm:$0xff] %v7789_v10  ;;  %2598 = vperm.xlu1 %5838, %v549_v53   ;;  %2913 = vperm.xlu0 %5837, %v654_v30   ;;  %v555_v53 = vld [vmem:[%s7275_s23 + $0x220] sm:$0xff]  ;;  %v660_v30 = vld [vmem:[%s7275_s23 + $0x568] sm:$0xff] }
 0x36b   : > { %v7793_v58 = vpop.permute.xlu1 %2424  ;;  %v7795_v19 = vpop.permute.xlu0 %2727 }
 0x36c   : > { %10081 = vst [vmem:[#allocation195_spill] sm:$0xff] %v7795_v19  ;;  %2604 = vperm.xlu1 %5838, %v551_v48   ;;  %2919 = vperm.xlu0 %5837, %v656_v12   ;;  %v557_v48 = vld [vmem:[%s7275_s23 + $0x230] sm:$0xff]  ;;  %v662_v12 = vld [vmem:[%s7275_s23 + $0x578] sm:$0xff] }
 0x36f   : > { %v7799_v34 = vpop.permute.xlu1 %2427  ;;  %v7801_v49 = vpop.permute.xlu0 %2733 }
 0x370   : > { %10082 = vst [vmem:[#allocation196_spill] sm:$0xff] %v7801_v49  ;;  %2610 = vperm.xlu1 %5838, %v553_v18   ;;  %2925 = vperm.xlu0 %5837, %v658_v33   ;;  %v559_v18 = vld [vmem:[%s7275_s23 + $0x240] sm:$0xff]  ;;  %v664_v33 = vld [vmem:[%s7275_s23 + $0x588] sm:$0xff] }
 0x373   : > { %v7805_v10 = vpop.permute.xlu1 %2430  ;;  %v7807_v13 = vpop.permute.xlu0 %2739 }
 0x374   : > { %10083 = vst [vmem:[#allocation197_spill] sm:$0xff] %v7807_v13  ;;  %2616 = vperm.xlu1 %5838, %v555_v53   ;;  %2931 = vperm.xlu0 %5837, %v660_v30   ;;  %v561_v53 = vld [vmem:[%s7275_s23 + $0x250] sm:$0xff]  ;;  %v666_v30 = vld [vmem:[%s7275_s23 + $0x598] sm:$0xff] }
 0x377   : > { %v7811_v19 = vpop.permute.xlu1 %2433  ;;  %v7813_v11 = vpop.permute.xlu0 %2745 }
 0x378   : > { %10084 = vst [vmem:[#allocation198_spill] sm:$0xff] %v7813_v11  ;;  %2622 = vperm.xlu1 %5838, %v557_v48   ;;  %2937 = vperm.xlu0 %5837, %v662_v12   ;;  %v563_v48 = vld [vmem:[%s7275_s23 + $0x260] sm:$0xff]  ;;  %v668_v12 = vld [vmem:[%s7275_s23 + $0x5a8] sm:$0xff] }
 0x37b   : > { %v7817_v49 = vpop.permute.xlu1 %2436  ;;  %v7819_v60 = vpop.permute.xlu0 %2751 }
 0x37c   : > { %2628 = vperm.xlu1 %5838, %v559_v18   ;;  %2943 = vperm.xlu0 %5837, %v664_v33   ;;  %v565_v18 = vld [vmem:[%s7275_s23 + $0x270] sm:$0xff]  ;;  %v670_v33 = vld [vmem:[%s7275_s23 + $0x5b8] sm:$0xff] }
 0x37f   : > { %v7823_v13 = vpop.permute.xlu1 %2442  ;;  %v7825_v35 = vpop.permute.xlu0 %2757 }
 0x380   : > { %10085 = vst [vmem:[#allocation199_spill] sm:$0xff] %v7825_v35  ;;  %2634 = vperm.xlu1 %5838, %v561_v53   ;;  %2949 = vperm.xlu0 %5837, %v666_v30   ;;  %v567_v53 = vld [vmem:[%s7275_s23 + $0x280] sm:$0xff]  ;;  %v672_v30 = vld [vmem:[%s7275_s23 + $0x5c8] sm:$0xff] }
 0x381   : > { %v7844_v35 = vld [vmem:[%s9611_s0] ss:$0 sm:$0xff] }
 0x382   : > { %vm3184_vm11 = vcmp.eq.s32.totalorder %v7775_v42, %v7844_v35  ;;  %vm3200_vm13 = vcmp.eq.s32.totalorder %v7537_v3, %v7844_v35  ;;  %vm3183_vm14 = vcmp.eq.s32.totalorder %v7501_v20, %v7844_v35  ;;  %vm3185_vm2 = vcmp.eq.s32.totalorder %v7781_v37, %v7844_v35  ;;  %v571_v20 = vld [vmem:[%s7275_s23 + $0x2a0] sm:$0xff]  ;;  %v676_v37 = vld [vmem:[%s7275_s23 + $0x5e8] sm:$0xff] }
 0x383   : > { %v7829_v11 = vpop.permute.xlu1 %2448  ;;  %v7831_v2 = vpop.permute.xlu0 %2763  ;;  %vm5327_vm1 = vmpackc.low %vm3184_vm11, %vm3183_vm14  ;;  %vm3186_vm3 = vcmp.eq.s32.totalorder %v7787_v7, %v7844_v35  ;;  %vm3202_vm4 = vcmp.eq.s32.totalorder %v7545_v25, %v7844_v35  ;;  %vm3188_vm8 = vcmp.eq.s32.totalorder %v7799_v34, %v7844_v35  ;;  %vm3204_vm9 = vcmp.eq.s32.totalorder %v7551_v38, %v7844_v35  ;;  %v573_v25 = vld [vmem:[%s7275_s23 + $0x2b0] sm:$0xff]  ;;  %v678_v34 = vld [vmem:[%s7275_s23 + $0x5f8] sm:$0xff] }
 0x384   : > { %2640 = vperm.xlu1 %5838, %v563_v48   ;;  %2955 = vperm.xlu0 %5837, %v668_v12   ;;  %vm5329_vm7 = vmpackc.low %vm3186_vm3, %vm3185_vm2  ;;  %vm3187_vm11 = vcmp.eq.s32.totalorder %v7793_v58, %v7844_v35  ;;  %vm3190_vm14 = vcmp.eq.s32.totalorder %v7811_v19, %v7844_v35  ;;  %vm3189_vm2 = vcmp.eq.s32.totalorder %v7805_v10, %v7844_v35  ;;  %v575_v58 = vld [vmem:[%s7275_s23 + $0x2c0] sm:$0xff]  ;;  %v680_v19 = vld [vmem:[%s7275_s23 + $0x608] sm:$0xff] }
 0x385   : > { %v577_v10 = vld [vmem:[%s7275_s23 + $0x2d0] sm:$0xff] }
 0x387   : > { %v7835_v46 = vpop.permute.xlu1 %2454  ;;  %v7837_v23 = vpop.permute.xlu0 %2769 }
 0x388   : > { %10086 = vst [vmem:[#allocation200_spill] sm:$0xff] %v7837_v23  ;;  %2646 = vperm.xlu1 %5838, %v565_v18   ;;  %2961 = vperm.xlu0 %5837, %v670_v33   ;;  %v569_v18 = vld [vmem:[%s7275_s23 + $0x290] sm:$0xff]  ;;  %v674_v33 = vld [vmem:[%s7275_s23 + $0x5d8] sm:$0xff]  ;;  %v9777_v23 = vmov 1.0|1.0  }
 0x38b   : > { %v2461_v48 = vpop.permute.xlu1 %2460  ;;  %v7848_v12 = vpop.permute.xlu0 %2775 }
 0x38c   : > { %2652 = vperm.xlu1 %5838, %v567_v53   ;;  %2967 = vperm.xlu0 %5837, %v672_v30   ;;  %vm3199_vm12 = vcmp.eq.s32.totalorder %v2461_v48, %v7844_v35 }
 0x38d   : > { %vm5343_vm15 = vmpackc.low %vm3200_vm13, %vm3199_vm12 }
 0x38e   : > { %5585 = vmatprep.subr.msk.bf16.mxu0 %vm5343_vm15, %v9777_v23  ;;  %vm5331_vm13 = vmpackc.low %vm3188_vm8, %vm3187_vm11  ;;  %vm3206_vm15 = vcmp.eq.s32.totalorder %v7559_v50, %v7844_v35  ;;  %vm3192_vm8 = vcmp.eq.s32.totalorder %v7507_v22, %v7844_v35  ;;  %vm3193_vm11 = vcmp.eq.s32.totalorder %v7823_v13, %v7844_v35  ;;  %v579_v22 = vld [vmem:[%s7275_s23 + $0x2e0] sm:$0xff]  ;;  %v684_v13 = vld [vmem:[%s7275_s23 + $0x628] sm:$0xff] }
 0x38f   : > { %v2467_v42 = vpop.permute.xlu1 %2466  ;;  %5586 = vmatpush3.bf16.msk.msra.mxu0 %vm5327_vm1, %v9777_v23  ;;  %v7863_v3 = vpop.permute.xlu0 %2781 }
 0x390   : > { %10087 = vst [vmem:[#allocation201_spill] sm:$0xff] %v7863_v3  ;;  %vm3201_vm5 = vcmp.eq.s32.totalorder %v2467_v42, %v7844_v35  ;;  %2658 = vperm.xlu1 %5838, %v569_v18   ;;  %2973 = vperm.xlu0 %5837, %v674_v33   ;;  %v10232_v3 = vld [vmem:[#allocation68_spill] sm:$0xff] }
 0x391   : > { %vm5345_vm6 = vmpackc.low %vm3202_vm4, %vm3201_vm5  ;;  %vm3191_vm5 = vcmp.eq.s32.totalorder %v7817_v49, %v7844_v35  ;;  %v682_v49 = vld [vmem:[%s7275_s23 + $0x618] sm:$0xff] }
 0x392   : > { %5587 = vmatprep.subr.msk.bf16.mxu0 %vm5345_vm6, %v9777_v23  ;;  %vm5333_vm4 = vmpackc.low %vm3190_vm14, %vm3189_vm2  ;;  %vm3208_vm6 = vcmp.eq.s32.totalorder %v7567_v5, %v7844_v35  ;;  %vm3194_vm14 = vcmp.eq.s32.totalorder %v7515_v63, %v7844_v35  ;;  %vm3195_vm2 = vcmp.eq.s32.totalorder %v7829_v11, %v7844_v35  ;;  %v581_v63 = vld [vmem:[%s7275_s23 + $0x2f0] sm:$0xff]  ;;  %v686_v11 = vld [vmem:[%s7275_s23 + $0x638] sm:$0xff] }
 0x393   : > { %v2473_v7 = vpop.permute.xlu1 %2472  ;;  %5588 = vmatpush3.bf16.msk.msra.mxu0 %vm5329_vm7, %v9777_v23  ;;  %v7874_v53 = vpop.permute.xlu0 %2787 }
 0x394   : > { %10088 = vst [vmem:[#allocation202_spill] sm:$0xff] %v7874_v53  ;;  %vm3203_vm10 = vcmp.eq.s32.totalorder %v2473_v7, %v7844_v35  ;;  %2664 = vperm.xlu1 %5838, %v571_v20   ;;  %2979 = vperm.xlu0 %5837, %v676_v37   ;;  %v585_v37 = vld [vmem:[%s7275_s23 + $0x310] sm:$0xff]  ;;  %v690_v7 = vld [vmem:[%s7275_s23 + $0x658] sm:$0xff] }
 0x395   : > { %vm5347_vm12 = vmpackc.low %vm3204_vm9, %vm3203_vm10 }
 0x396   : > { %5589 = vmatprep.subr.msk.bf16.mxu0 %vm5347_vm12, %v9777_v23  ;;  %vm5335_vm10 = vmpackc.low %vm3192_vm8, %vm3191_vm5  ;;  %vm3210_vm12 = vcmp.eq.s32.totalorder %v7573_v4, %v7844_v35  ;;  %vm3196_vm5 = vcmp.eq.s32.totalorder %v7523_v41, %v7844_v35  ;;  %vm3197_vm8 = vcmp.eq.s32.totalorder %v7835_v46, %v7844_v35  ;;  %v583_v46 = vld [vmem:[%s7275_s23 + $0x300] sm:$0xff]  ;;  %v688_v41 = vld [vmem:[%s7275_s23 + $0x648] sm:$0xff] }
 0x397   : > { %v2479_v30 = vpop.permute.xlu1 %2478  ;;  %5590 = vmatpush3.bf16.msk.msra.mxu0 %vm5331_vm13, %v9777_v23  ;;  %v7887_v38 = vpop.permute.xlu0 %2793 }
 0x398   : > { %10089 = vst [vmem:[#allocation203_spill] sm:$0xff] %v7887_v38  ;;  %vm3205_vm1 = vcmp.eq.s32.totalorder %v2479_v30, %v7844_v35  ;;  %2670 = vperm.xlu1 %5838, %v573_v25   ;;  %2985 = vperm.xlu0 %5837, %v678_v34   ;;  %v587_v34 = vld [vmem:[%s7275_s23 + $0x320] sm:$0xff]  ;;  %v692_v30 = vld [vmem:[%s7275_s23 + $0x668] sm:$0xff] }
 0x399   : > { %vm5349_vm3 = vmpackc.low %vm3206_vm15, %vm3205_vm1 }
 0x39a   : > { %5591 = vmatprep.subr.msk.bf16.mxu0 %vm5349_vm3, %v9777_v23  ;;  %vm5337_vm1 = vmpackc.low %vm3194_vm14, %vm3193_vm11  ;;  %vm3212_vm3 = vcmp.eq.s32.totalorder %v7585_v15, %v7844_v35  ;;  %vm3198_vm11 = vcmp.eq.s32.totalorder %v7529_v6, %v7844_v35 }
 0x39b   : > { %v2485_v48 = vpop.permute.xlu1 %2484  ;;  %5592 = vmatpush3.bf16.msk.msra.mxu0 %vm5333_vm4, %v9777_v23  ;;  %v7900_v50 = vpop.permute.xlu0 %2799 }
 0x39c   : > { %10090 = vst [vmem:[#allocation204_spill] sm:$0xff] %v7900_v50  ;;  %vm3207_vm7 = vcmp.eq.s32.totalorder %v2485_v48, %v7844_v35  ;;  %2676 = vperm.xlu1 %5838, %v575_v58   ;;  %2991 = vperm.xlu0 %5837, %v680_v19   ;;  %v589_v48 = vld [vmem:[%s7275_s23 + $0x330] sm:$0xff] }
 0x39d   : > { %vm5351_vm9 = vmpackc.low %vm3208_vm6, %vm3207_vm7 }
 0x39e   : > { %5593 = vmatprep.subr.msk.bf16.mxu0 %vm5351_vm9, %v9777_v23  ;;  %vm5339_vm7 = vmpackc.low %vm3196_vm5, %vm3195_vm2  ;;  %vm3214_vm9 = vcmp.eq.s32.totalorder %v7595_v43, %v7844_v35  ;;  %vm3216_vm2 = vcmp.eq.s32.totalorder %v7598_v1, %v7844_v35  ;;  %v708_v1 = vld [vmem:[%s7275_s23 + $0x6e8] sm:$0xff] }
 0x39f   : > { %v2491_v18 = vpop.permute.xlu1 %2490  ;;  %5594 = vmatpush3.bf16.msk.msra.mxu0 %vm5335_vm10, %v9777_v23  ;;  %v7913_v5 = vpop.permute.xlu0 %2805 }
 0x3a0   : > { %10091 = vst [vmem:[#allocation205_spill] sm:$0xff] %v7913_v5  ;;  %vm3209_vm13 = vcmp.eq.s32.totalorder %v2491_v18, %v7844_v35  ;;  %2682 = vperm.xlu1 %5838, %v577_v10   ;;  %2997 = vperm.xlu0 %5837, %v682_v49   ;;  %v694_v10 = vld [vmem:[%s7275_s23 + $0x678] sm:$0xff]  ;;  %v10142_v5 = vld [vmem:[#allocation11_spill] sm:$0xff] }
 0x3a1   : > { %vm5353_vm15 = vmpackc.low %vm3210_vm12, %vm3209_vm13 }
 0x3a2   : > { %5595 = vmatprep.subr.msk.bf16.mxu0 %vm5353_vm15, %v9777_v23  ;;  %vm5341_vm13 = vmpackc.low %vm3198_vm11, %vm3197_vm8  ;;  %vm3218_vm8 = vcmp.eq.s32.totalorder %v7605_v51, %v7844_v35  ;;  %v605_v51 = vld [vmem:[%s7275_s23 + $0x3b0] sm:$0xff] }
 0x3a3   : > { %v2497_v33 = vpop.permute.xlu1 %2496  ;;  %5596 = vmatpush3.bf16.msk.msra.mxu0 %vm5337_vm1, %v9777_v23  ;;  %v7926_v4 = vpop.permute.xlu0 %2811  ;;  %vm3232_vm1 = vcmp.eq.s32.totalorder %v7643_v17, %v7844_v35  ;;  %v603_v17 = vld [vmem:[%s7275_s23 + $0x3a0] sm:$0xff] }
 0x3a4   : > { %10092 = vst [vmem:[#allocation206_spill] sm:$0xff] %v7926_v4  ;;  %vm3211_vm4 = vcmp.eq.s32.totalorder %v2497_v33, %v7844_v35  ;;  %2688 = vperm.xlu1 %5838, %v579_v22   ;;  %3003 = vperm.xlu0 %5837, %v684_v13   ;;  %v591_v22 = vld [vmem:[%s7275_s23 + $0x340] sm:$0xff]  ;;  %v696_v13 = vld [vmem:[%s7275_s23 + $0x688] sm:$0xff] }
 0x3a5   : > { %vm5355_vm6 = vmpackc.low %vm3212_vm3, %vm3211_vm4 }
 0x3a6   : > { %5597 = vmatprep.subr.msk.bf16.mxu0 %vm5355_vm6, %v9777_v23  ;;  %vm3234_vm6 = vcmp.eq.s32.totalorder %v7647_v16, %v7844_v35 }
 0x3a7   : > { %v2503_v42 = vpop.permute.xlu1 %2502  ;;  %5598 = vmatpush3.bf16.msk.msra.mxu0 %vm5339_vm7, %v9777_v23  ;;  %v7939_v15 = vpop.permute.xlu0 %2817 }
 0x3a8   : > { %10093 = vst [vmem:[#allocation207_spill] sm:$0xff] %v7939_v15  ;;  %vm3213_vm10 = vcmp.eq.s32.totalorder %v2503_v42, %v7844_v35  ;;  %2694 = vperm.xlu1 %5838, %v581_v63   ;;  %3009 = vperm.xlu0 %5837, %v686_v11   ;;  %v593_v11 = vld [vmem:[%s7275_s23 + $0x350] sm:$0xff]  ;;  %v698_v42 = vld [vmem:[%s7275_s23 + $0x698] sm:$0xff] }
 0x3a9   : > { %vm5357_vm12 = vmpackc.low %vm3214_vm9, %vm3213_vm10 }
 0x3aa   : > { %5599 = vmatprep.subr.msk.bf16.mxu0 %vm5357_vm12, %v9777_v23  ;;  %vm3236_vm12 = vcmp.eq.s32.totalorder %v7653_v14, %v7844_v35 }
 0x3ab   : > { %v2509_v20 = vpop.permute.xlu1 %2508  ;;  %5600 = vmatpush3.bf16.msk.msra.mxu0 %vm5341_vm13, %v9777_v23  ;;  %v7950_v43 = vpop.permute.xlu0 %2823 }
 0x3ac   : > { %10094 = vst [vmem:[#allocation208_spill] sm:$0xff] %v7950_v43  ;;  %2700 = vperm.xlu1 %5838, %v583_v46   ;;  %3015 = vperm.xlu0 %5837, %v688_v41   ;;  %vm3215_vm14 = vcmp.eq.s32.totalorder %v2509_v20, %v7844_v35 }
 0x3ad   : > { %vm5359_vm4 = vmpackc.low %vm3216_vm2, %vm3215_vm14  ;;  %vm3220_vm14 = vcmp.eq.s32.totalorder %v7611_v26, %v7844_v35  ;;  %v607_v26 = vld [vmem:[%s7275_s23 + $0x3c0] sm:$0xff] }
 0x3af   : > { %v7954_v6 = vpop.permute.xlu1 %2514  ;;  %v7956_v25 = vpop.permute.xlu0 %2829 }
 0x3b0   : > { %10095 = vst [vmem:[#allocation209_spill] sm:$0xff] %v7956_v25  ;;  %2706 = vperm.xlu1 %5838, %v585_v37   ;;  %3021 = vperm.xlu0 %5837, %v690_v7   ;;  %v595_v37 = vld [vmem:[%s7275_s23 + $0x360] sm:$0xff]  ;;  %v700_v7 = vld [vmem:[%s7275_s23 + $0x6a8] sm:$0xff]  ;;  %vm3217_vm5 = vcmp.eq.s32.totalorder %v7954_v6, %v7844_v35 }
 0x3b1   : > { %vm5361_vm10 = vmpackc.low %vm3218_vm8, %vm3217_vm5  ;;  %vm3222_vm5 = vcmp.eq.s32.totalorder %v7615_v31, %v7844_v35  ;;  %v609_v31 = vld [vmem:[%s7275_s23 + $0x3d0] sm:$0xff] }
 0x3b3   : > { %v7960_v58 = vpop.permute.xlu1 %2520  ;;  %v7962_v19 = vpop.permute.xlu0 %2835 }
 0x3b4   : > { %10096 = vst [vmem:[#allocation210_spill] sm:$0xff] %v7962_v19  ;;  %2712 = vperm.xlu1 %5838, %v587_v34   ;;  %3027 = vperm.xlu0 %5837, %v692_v30   ;;  %vm3219_vm11 = vcmp.eq.s32.totalorder %v7960_v58, %v7844_v35  ;;  %v710_v58 = vld [vmem:[%s7275_s23 + $0x6f8] sm:$0xff] }
 0x3b7   : > { %v7966_v49 = vpop.permute.xlu1 %2526  ;;  %v7968_v18 = vpop.permute.xlu0 %2841 }
 0x3b8   : > { %10097 = vst [vmem:[#allocation211_spill] sm:$0xff] %v7968_v18  ;;  %2718 = vperm.xlu1 %5838, %v589_v48   ;;  %3033 = vperm.xlu0 %5837, %v694_v10   ;;  %v597_v48 = vld [vmem:[%s7275_s23 + $0x370] sm:$0xff]  ;;  %v702_v10 = vld [vmem:[%s7275_s23 + $0x6b8] sm:$0xff]  ;;  %vm3221_vm2 = vcmp.eq.s32.totalorder %v7966_v49, %v7844_v35  ;;  %v712_v49 = vld [vmem:[%s7275_s23 + $0x708] sm:$0xff] }
 0x3bb   : > { %v7972_v33 = vpop.permute.xlu1 %2532  ;;  %v7974_v63 = vpop.permute.xlu0 %2847 }
 0x3bc   : > { %2724 = vperm.xlu1 %5838, %v591_v22   ;;  %3039 = vperm.xlu0 %5837, %v696_v13   ;;  %vm3223_vm8 = vcmp.eq.s32.totalorder %v7972_v33, %v7844_v35  ;;  %v714_v33 = vld [vmem:[%s7275_s23 + $0x718] sm:$0xff] }
 0x3bf   : > { %v7978_v46 = vpop.permute.xlu1 %2538  ;;  %v7980_v41 = vpop.permute.xlu0 %2853 }
 0x3c0   : > { %10098 = vst [vmem:[#allocation212_spill] sm:$0xff] %v7980_v41  ;;  %2730 = vperm.xlu1 %5838, %v593_v11   ;;  %3045 = vperm.xlu0 %5837, %v698_v42   ;;  %v599_v11 = vld [vmem:[%s7275_s23 + $0x380] sm:$0xff]  ;;  %v704_v42 = vld [vmem:[%s7275_s23 + $0x6c8] sm:$0xff] }
 0x3c3   : > { %v7984_v34 = vpop.permute.xlu1 %2544  ;;  %v7986_v30 = vpop.permute.xlu0 %2859 }
 0x3c4   : > { %10099 = vst [vmem:[#allocation213_spill] sm:$0xff] %v7986_v30  ;;  %2736 = vperm.xlu1 %5838, %v595_v37   ;;  %3051 = vperm.xlu0 %5837, %v700_v7   ;;  %v601_v37 = vld [vmem:[%s7275_s23 + $0x390] sm:$0xff]  ;;  %v706_v7 = vld [vmem:[%s7275_s23 + $0x6d8] sm:$0xff] }
 0x3c5   : > { %v10137_v30 = vld [vmem:[#allocation9_spill] sm:$0xff] }
 0x3c7   : > { %v7990_v22 = vpop.permute.xlu1 %2550  ;;  %v7992_v13 = vpop.permute.xlu0 %2865 }
 0x3c8   : > { %10100 = vst [vmem:[#allocation214_spill] sm:$0xff] %v7992_v13  ;;  %2742 = vperm.xlu1 %5838, %v597_v48   ;;  %3057 = vperm.xlu0 %5837, %v702_v10   ;;  %v10102_v48 = vmov 1.0|1.0  }
 0x3cb   : > { %v2557_v23 = vpop.permute.xlu1 %2556  ;;  %v7997_v18 = vpop.permute.xlu0 %2871 }
 0x3cc   : > { %10101 = vst [vmem:[#allocation215_spill] sm:$0xff] %v7997_v18  ;;  %2748 = vperm.xlu1 %5838, %v599_v11   ;;  %3063 = vperm.xlu0 %5837, %v704_v42   ;;  %vm3231_vm15 = vcmp.eq.s32.totalorder %v2557_v23, %v7844_v35  ;;  %v10129_v18 = vld [vmem:[#allocation6_spill] sm:$0xff] }
 0x3cd   : > { %vm5375_vm3 = vmpackc.low %vm3232_vm1, %vm3231_vm15 }
 0x3ce   : > { %5613 = vmatprep.subr.msk.bf16.mxu1 %vm5375_vm3, %v10102_v48  ;;  %vm5363_vm1 = vmpackc.low %vm3220_vm14, %vm3219_vm11  ;;  %vm3238_vm3 = vcmp.eq.s32.totalorder %v7659_v29, %v7844_v35  ;;  %vm3224_vm11 = vcmp.eq.s32.totalorder %v7621_v39, %v7844_v35  ;;  %vm3225_vm14 = vcmp.eq.s32.totalorder %v7978_v46, %v7844_v35  ;;  %v611_v39 = vld [vmem:[%s7275_s23 + $0x3e0] sm:$0xff]  ;;  %v716_v46 = vld [vmem:[%s7275_s23 + $0x728] sm:$0xff] }
 0x3cf   : > { %v2563_v20 = vpop.permute.xlu1 %2562  ;;  %5614 = vmatpush3.bf16.msk.msra.mxu1 %vm5359_vm4, %v10102_v48  ;;  %v8010_v23 = vpop.permute.xlu0 %2877 }
 0x3d0   : > { %10103 = vst [vmem:[#allocation216_spill] sm:$0xff] %v8010_v23  ;;  %vm3233_vm7 = vcmp.eq.s32.totalorder %v2563_v20, %v7844_v35  ;;  %2754 = vperm.xlu1 %5838, %v601_v37   ;;  %3069 = vperm.xlu0 %5837, %v706_v7   ;;  %v10125_v23 = vld [vmem:[#allocation4_spill] sm:$0xff] }
 0x3d1   : > { %vm5377_vm9 = vmpackc.low %vm3234_vm6, %vm3233_vm7 }
 0x3d2   : > { %5615 = vmatprep.subr.msk.bf16.mxu1 %vm5377_vm9, %v10102_v48  ;;  %vm5365_vm7 = vmpackc.low %vm3222_vm5, %vm3221_vm2  ;;  %vm3240_vm9 = vcmp.eq.s32.totalorder %v7663_v21, %v7844_v35  ;;  %vm3226_vm2 = vcmp.eq.s32.totalorder %v7627_v44, %v7844_v35  ;;  %vm3227_vm5 = vcmp.eq.s32.totalorder %v7984_v34, %v7844_v35  ;;  %v613_v44 = vld [vmem:[%s7275_s23 + $0x3f0] sm:$0xff]  ;;  %v718_v34 = vld [vmem:[%s7275_s23 + $0x738] sm:$0xff] }
 0x3d3   : > { %v2569_v6 = vpop.permute.xlu1 %2568  ;;  %5616 = vmatpush3.bf16.msk.msra.mxu1 %vm5361_vm10, %v10102_v48  ;;  %v8023_v16 = vpop.permute.xlu0 %2883 }
 0x3d4   : > { %10104 = vst [vmem:[#allocation217_spill] sm:$0xff] %v8023_v16  ;;  %vm3235_vm13 = vcmp.eq.s32.totalorder %v2569_v6, %v7844_v35  ;;  %2760 = vperm.xlu1 %5838, %v603_v17   ;;  %3075 = vperm.xlu0 %5837, %v708_v1   ;;  %v617_v17 = vld [vmem:[%s7275_s23 + $0x410] sm:$0xff] }
 0x3d5   : > { %vm5379_vm15 = vmpackc.low %vm3236_vm12, %vm3235_vm13 }
 0x3d6   : > { %5617 = vmatprep.subr.msk.bf16.mxu1 %vm5379_vm15, %v10102_v48  ;;  %vm5367_vm13 = vmpackc.low %vm3224_vm11, %vm3223_vm8  ;;  %vm3242_vm15 = vcmp.eq.s32.totalorder %v7669_v27, %v7844_v35  ;;  %vm3228_vm8 = vcmp.eq.s32.totalorder %v7631_v32, %v7844_v35  ;;  %vm3229_vm11 = vcmp.eq.s32.totalorder %v7990_v22, %v7844_v35  ;;  %v615_v32 = vld [vmem:[%s7275_s23 + $0x400] sm:$0xff] }
 0x3d7   : > { %v2575_v10 = vpop.permute.xlu1 %2574  ;;  %5618 = vmatpush3.bf16.msk.msra.mxu1 %vm5363_vm1, %v10102_v48  ;;  %v8036_v14 = vpop.permute.xlu0 %2889  ;;  %v727_v22 = vld [vmem:[%s7275_s23 + $0x780] sm:$0xff] }
 0x3d8   : > { %vm3237_vm4 = vcmp.eq.s32.totalorder %v2575_v10, %v7844_v35  ;;  %2766 = vperm.xlu1 %5838, %v605_v51   ;;  %3081 = vperm.xlu0 %5837, %v710_v58   ;;  %v619_v51 = vld [vmem:[%s7275_s23 + $0x420] sm:$0xff] }
 0x3d9   : > { %vm5381_vm6 = vmpackc.low %vm3238_vm3, %vm3237_vm4  ;;  %v731_v58 = vld [vmem:[%s7275_s23 + $0x7a0] sm:$0xff] }
 0x3da   : > { %5619 = vmatprep.subr.msk.bf16.mxu1 %vm5381_vm6, %v10102_v48  ;;  %vm5369_vm4 = vmpackc.low %vm3226_vm2, %vm3225_vm14  ;;  %vm3244_vm6 = vcmp.eq.s32.totalorder %v7675_v54, %v7844_v35  ;;  %vm3230_vm14 = vcmp.eq.s32.totalorder %v7637_v24, %v7844_v35  ;;  %v729_v24 = vld [vmem:[%s7275_s23 + $0x790] sm:$0xff]  ;;  %vm3264_vm2 = vcmp.eq.s32.totalorder %v7727_v52, %v7844_v35 }
 0x3db   : > { %v2581_v11 = vpop.permute.xlu1 %2580  ;;  %5620 = vmatpush3.bf16.msk.msra.mxu1 %vm5365_vm7, %v10102_v48  ;;  %v8049_v29 = vpop.permute.xlu0 %2895  ;;  %v741_v52 = vld [vmem:[%s7275_s23 + $0x7f0] sm:$0xff] }
 0x3dc   : > { %10105 = vst [vmem:[#allocation218_spill] sm:$0xff] %v8049_v29  ;;  %vm3239_vm10 = vcmp.eq.s32.totalorder %v2581_v11, %v7844_v35  ;;  %2772 = vperm.xlu1 %5838, %v607_v26   ;;  %3087 = vperm.xlu0 %5837, %v712_v49   ;;  %v621_v49 = vld [vmem:[%s7275_s23 + $0x430] sm:$0xff] }
 0x3dd   : > { %vm5383_vm12 = vmpackc.low %vm3240_vm9, %vm3239_vm10  ;;  %v733_v11 = vld [vmem:[%s7275_s23 + $0x7b0] sm:$0xff] }
 0x3de   : > { %5621 = vmatprep.subr.msk.bf16.mxu1 %vm5383_vm12, %v10102_v48  ;;  %vm5371_vm10 = vmpackc.low %vm3228_vm8, %vm3227_vm5  ;;  %vm3246_vm12 = vcmp.eq.s32.totalorder %v7679_v40, %v7844_v35  ;;  %vm3296_vm5 = vcmp.eq.s32.totalorder %v7819_v60, %v7844_v35  ;;  %v10155_v60 = vld [vmem:[#allocation17_spill] sm:$0xff] }
 0x3df   : > { %v2587_v42 = vpop.permute.xlu1 %2586  ;;  %5622 = vmatpush3.bf16.msk.msra.mxu1 %vm5367_vm13, %v10102_v48  ;;  %v8062_v21 = vpop.permute.xlu0 %2901 }
 0x3e0   : > { %vm3241_vm1 = vcmp.eq.s32.totalorder %v2587_v42, %v7844_v35  ;;  %2778 = vperm.xlu1 %5838, %v609_v31   ;;  %3093 = vperm.xlu0 %5837, %v714_v33   ;;  %v623_v42 = vld [vmem:[%s7275_s23 + $0x440] sm:$0xff] }
 0x3e1   : > { %vm5385_vm3 = vmpackc.low %vm3242_vm15, %vm3241_vm1 }
 0x3e2   : > { %5623 = vmatprep.subr.msk.bf16.mxu1 %vm5385_vm3, %v10102_v48  ;;  %vm5373_vm1 = vmpackc.low %vm3230_vm14, %vm3229_vm11 }
 0x3e3   : > { %v2593_v37 = vpop.permute.xlu1 %2592  ;;  %5624 = vmatpush3.bf16.msk.msra.mxu1 %vm5369_vm4, %v10102_v48  ;;  %v8075_v27 = vpop.permute.xlu0 %2907 }
 0x3e4   : > { %10106 = vst [vmem:[#allocation219_spill] sm:$0xff] %v8075_v27  ;;  %vm3243_vm7 = vcmp.eq.s32.totalorder %v2593_v37, %v7844_v35  ;;  %2784 = vperm.xlu1 %5838, %v611_v39   ;;  %3099 = vperm.xlu0 %5837, %v716_v46   ;;  %v735_v39 = vld [vmem:[%s7275_s23 + $0x7c0] sm:$0xff] }
 0x3e5   : > { %vm5387_vm9 = vmpackc.low %vm3244_vm6, %vm3243_vm7 }
 0x3e6   : > { %5625 = vmatprep.subr.msk.bf16.mxu1 %vm5387_vm9, %v10102_v48 }
 0x3e7   : > { %v2599_v7 = vpop.permute.xlu1 %2598  ;;  %5626 = vmatpush3.bf16.msk.msra.mxu1 %vm5371_vm10, %v10102_v48  ;;  %v8088_v54 = vpop.permute.xlu0 %2913 }
 0x3e8   : > { %vm3245_vm13 = vcmp.eq.s32.totalorder %v2599_v7, %v7844_v35  ;;  %2790 = vperm.xlu1 %5838, %v613_v44   ;;  %3105 = vperm.xlu0 %5837, %v718_v34   ;;  %v625_v44 = vld [vmem:[%s7275_s23 + $0x450] sm:$0xff]  ;;  %v720_v34 = vld [vmem:[%s7275_s23 + $0x748] sm:$0xff] }
 0x3e9   : > { %vm5389_vm15 = vmpackc.low %vm3246_vm12, %vm3245_vm13 }
 0x3ea   : > { %5627 = vmatprep.subr.msk.bf16.mxu1 %vm5389_vm15, %v10102_v48 }
 0x3eb   : > { %v8098_v20 = vpop.permute.xlu1 %2604  ;;  %5628 = vmatpush3.bf16.msk.msra.mxu1 %vm5373_vm1, %v10102_v48  ;;  %v8101_v40 = vpop.permute.xlu0 %2919 }
 0x3ec   : > { %10107 = vst [vmem:[#allocation220_spill] sm:$0xff] %v8101_v40  ;;  %2796 = vperm.xlu1 %5838, %v615_v32   ;;  %3132 = vperm.xlu0 %5837, %v727_v22   ;;  %v627_v22 = vld [vmem:[%s7275_s23 + $0x460] sm:$0xff]  ;;  %vm3247_vm11 = vcmp.eq.s32.totalorder %v8098_v20, %v7844_v35  ;;  %v10240_v20 = vld [vmem:[#allocation72_spill] sm:$0xff] }
 0x3ed   : > { %v635_v40 = vld [vmem:[%s7275_s23 + $0x4a0] sm:$0xff] }
 0x3ef   : > { %v8105_v1 = vpop.permute.xlu1 %2610  ;;  %v8107_v6 = vpop.permute.xlu0 %2925 }
 0x3f0   : > { %2802 = vperm.xlu1 %5838, %v617_v17   ;;  %3138 = vperm.xlu0 %5837, %v729_v24   ;;  %v738_v17 = vld [vmem:[%s7275_s23 + $0x7d8] sm:$0xff] }
 0x3f3   : > { %v8111_v10 = vpop.permute.xlu1 %2616  ;;  %v8113_v26 = vpop.permute.xlu0 %2931 }
 0x3f4   : > { %10108 = vst [vmem:[#allocation221_spill] sm:$0xff] %v8113_v26  ;;  %2808 = vperm.xlu1 %5838, %v619_v51   ;;  %3144 = vperm.xlu0 %5837, %v731_v58   ;;  %v629_v58 = vld [vmem:[%s7275_s23 + $0x470] sm:$0xff] }
 0x3f7   : > { %v8117_v31 = vpop.permute.xlu1 %2622  ;;  %v8119_v33 = vpop.permute.xlu0 %2937 }
 0x3f8   : > { %2814 = vperm.xlu1 %5838, %v621_v49   ;;  %3150 = vperm.xlu0 %5837, %v733_v11   ;;  %v722_v49 = vld [vmem:[%s7275_s23 + $0x758] sm:$0xff] }
 0x3fb   : > { %v8123_v46 = vpop.permute.xlu1 %2628  ;;  %v8125_v37 = vpop.permute.xlu0 %2943 }
 0x3fc   : > { %10109 = vst [vmem:[#allocation222_spill] sm:$0xff] %v8125_v37  ;;  %2820 = vperm.xlu1 %5838, %v623_v42   ;;  %3156 = vperm.xlu0 %5837, %v735_v39   ;;  %v631_v39 = vld [vmem:[%s7275_s23 + $0x480] sm:$0xff] }
 0x3ff   : > { %v8129_v7 = vpop.permute.xlu1 %2634  ;;  %v8131_v32 = vpop.permute.xlu0 %2949 }
 0x400   : > { %10110 = vst [vmem:[#allocation223_spill] sm:$0xff] %v8131_v32  ;;  %2826 = vperm.xlu1 %5838, %v625_v44   ;;  %3111 = vperm.xlu0 %5837, %v720_v34   ;;  %v740_v44 = vld [vmem:[%s7275_s23 + $0x7e8] sm:$0xff] }
 0x403   : > { %v8135_v24 = vpop.permute.xlu1 %2640  ;;  %v8137_v51 = vpop.permute.xlu0 %2955 }
 0x404   : > { %10111 = vst [vmem:[#allocation224_spill] sm:$0xff] %v8137_v51  ;;  %2832 = vperm.xlu1 %5838, %v627_v22   ;;  %3165 = vperm.xlu0 %5837, %v738_v17   ;;  %v633_v22 = vld [vmem:[%s7275_s23 + $0x490] sm:$0xff]  ;;  %v724_v17 = vld [vmem:[%s7275_s23 + $0x768] sm:$0xff]  ;;  %v643_v51 = vld [vmem:[%s7275_s23 + $0x4e0] sm:$0xff] }
 0x407   : > { %v8141_v11 = vpop.permute.xlu1 %2646  ;;  %v8143_v42 = vpop.permute.xlu0 %2961 }
 0x408   : > { %10112 = vst [vmem:[#allocation225_spill] sm:$0xff] %v8143_v42  ;;  %2838 = vperm.xlu1 %5838, %v629_v58   ;;  %3117 = vperm.xlu0 %5837, %v722_v49  }
 0x40b   : > { %v2653_v34 = vpop.permute.xlu1 %2652  ;;  %v8147_v26 = vpop.permute.xlu0 %2967 }
 0x40c   : > { %10113 = vst [vmem:[#allocation226_spill] sm:$0xff] %v8147_v26  ;;  %vm3263_vm3 = vcmp.eq.s32.totalorder %v2653_v34, %v7844_v35  ;;  %2844 = vperm.xlu1 %5838, %v631_v39   ;;  %3171 = vperm.xlu0 %5837, %v740_v44   ;;  %v637_v44 = vld [vmem:[%s7275_s23 + $0x4b0] sm:$0xff]  ;;  %v742_v26 = vld [vmem:[%s7275_s23 + $0x7f8] sm:$0xff] }
 0x40d   : > { %vm5407_vm4 = vmpackc.low %vm3264_vm2, %vm3263_vm3 }
 0x40e   : > { %5641 = vmatprep.subr.msk.bf16.mxu0 %vm5407_vm4, %v10102_v48 }
 0x40f   : > { %v8155_v58 = vpop.permute.xlu1 %2658  ;;  %v8157_v49 = vpop.permute.xlu0 %2973 }
 0x410   : > { %10114 = vst [vmem:[#allocation227_spill] sm:$0xff] %v8157_v49  ;;  %2850 = vperm.xlu1 %5838, %v633_v22   ;;  %3123 = vperm.xlu0 %5837, %v724_v17   ;;  %v639_v22 = vld [vmem:[%s7275_s23 + $0x4c0] sm:$0xff] }
 0x413   : > { %v8161_v34 = vpop.permute.xlu1 %2664  ;;  %v8163_v39 = vpop.permute.xlu0 %2979 }
 0x414   : > { %10115 = vst [vmem:[#allocation228_spill] sm:$0xff] %v8163_v39  ;;  %2856 = vperm.xlu1 %5838, %v635_v40   ;;  %3174 = vperm.xlu0 %5837, %v741_v52   ;;  %v641_v39 = vld [vmem:[%s7275_s23 + $0x4d0] sm:$0xff] }
 0x417   : > { %v8167_v42 = vpop.permute.xlu1 %2670  ;;  %v8169_v27 = vpop.permute.xlu0 %2985 }
 0x418   : > { %10116 = vst [vmem:[#allocation229_spill] sm:$0xff] %v8169_v27  ;;  %2862 = vperm.xlu1 %5838, %v637_v44   ;;  %3177 = vperm.xlu0 %5837, %v742_v26   ;;  %v645_v26 = vld [vmem:[%s7275_s23 + $0x4f0] sm:$0xff] }
 0x41b   : > { %v8172_v17 = vpop.permute.xlu1 %2676  ;;  %v8174_v49 = vpop.permute.xlu0 %2991 }
 0x41c   : > { %10117 = vst [vmem:[#allocation230_spill] sm:$0xff] %v8174_v49  ;;  %2868 = vperm.xlu1 %5838, %v639_v22   ;;  %v647_v22 = vld [vmem:[%s7275_s23 + $0x500] sm:$0xff] }
 0x41f   : > { %v8177_v40 = vpop.permute.xlu1 %2682  ;;  %v8179_v52 = vpop.permute.xlu0 %2997 }
 0x420   : > { %10118 = vst [vmem:[#allocation231_spill] sm:$0xff] %v8179_v52  ;;  %2874 = vperm.xlu1 %5838, %v641_v39   ;;  %v649_v39 = vld [vmem:[%s7275_s23 + $0x510] sm:$0xff] }
 0x423   : > { %v8182_v32 = vpop.permute.xlu1 %2688  ;;  %v8184_v44 = vpop.permute.xlu0 %3003 }
 0x424   : > { %10119 = vst [vmem:[#allocation232_spill] sm:$0xff] %v8184_v44  ;;  %2880 = vperm.xlu1 %5838, %v643_v51   ;;  %v651_v51 = vld [vmem:[%s7275_s23 + $0x520] sm:$0xff] }
 0x427   : > { %v8187_v27 = vpop.permute.xlu1 %2694  ;;  %v8189_v49 = vpop.permute.xlu0 %3009 }
 0x428   : > { %10120 = vst [vmem:[#allocation233_spill] sm:$0xff] %v8189_v49  ;;  %2886 = vperm.xlu1 %5838, %v645_v26   ;;  %v653_v26 = vld [vmem:[%s7275_s23 + $0x530] sm:$0xff]  ;;  %v10124_v49 = vld [vmem:[#allocation3_spill] sm:$0xff] }
 0x429   : > { %v10126_v43 = vpack.c.bf16 %v10124_v49, %v10125_v23  ;;  %v10132_v23 = vld [vmem:[#allocation7_spill] sm:$0xff] }
 0x42b   : > { %v8192_v29 = vpop.permute.xlu1 %2700  ;;  %v8194_v52 = vpop.permute.xlu0 %3015 }
 0x42c   : > { %10121 = vst [vmem:[#allocation234_spill] sm:$0xff] %v8194_v52  ;;  %2892 = vperm.xlu1 %5838, %v647_v22  }
 0x42f   : > { %v8197_v19 = vpop.permute.xlu1 %2706  ;;  %v8199_v16 = vpop.permute.xlu0 %3021 }
 0x430   : > { %10122 = vst [vmem:[#allocation235_spill] sm:$0xff] %v8199_v16  ;;  %2898 = vperm.xlu1 %5838, %v649_v39   ;;  %v655_v16 = vld [vmem:[%s7275_s23 + $0x540] sm:$0xff]  ;;  %v10128_v39 = vld [vmem:[#allocation5_spill] sm:$0xff] }
 0x431   : > { %v10130_v15 = vpack.c.bf16 %v10128_v39, %v10129_v18  ;;  %v10138_v18 = vld [vmem:[#allocation10_spill] sm:$0xff] }
 0x433   : > { %v8202_v44 = vpop.permute.xlu1 %2712  ;;  %v8204_v25 = vpop.permute.xlu0 %3027 }
 0x434   : > { %10123 = vst [vmem:[#allocation236_spill] sm:$0xff] %v8204_v25  ;;  %2904 = vperm.xlu1 %5838, %v651_v51   ;;  %v657_v25 = vld [vmem:[%s7275_s23 + $0x550] sm:$0xff] }
 0x436   : > { %4098 = vxpose.xlu0.c.b16.start [1/8] (narrow) %v10126_v43, 32  ;;  %v10133_v43 = vld [vmem:[#allocation8_spill] sm:$0xff] }
 0x437   : > { %v8210_v22 = vpop.permute.xlu1 %2718  ;;  %v8212_v52 = vpop.permute.xlu0 %3033  ;;  %v10134_v49 = vpack.c.bf16 %v10132_v23, %v10133_v43  ;;  %v10143_v23 = vld [vmem:[#allocation12_spill] sm:$0xff] }
 0x438   : > { %10127 = vst [vmem:[#allocation3_spill] sm:$0xff] %v8212_v52  ;;  %2910 = vperm.xlu1 %5838, %v653_v26   ;;  %v659_v52 = vld [vmem:[%s7275_s23 + $0x560] sm:$0xff]  ;;  %v10144_v43 = vpack.c.bf16 %v10142_v5, %v10143_v23  ;;  %v665_v5 = vld [vmem:[%s7275_s23 + $0x590] sm:$0xff] }
 0x43a   : > { %4099 = vxpose.xlu0.c.b16.cont [2/8] (narrow) %v10130_v15, 32  ;;  %v10139_v15 = vpack.c.bf16 %v10137_v30, %v10138_v18  ;;  %v10147_v30 = vld [vmem:[#allocation13_spill] sm:$0xff]  ;;  %v10148_v18 = vld [vmem:[#allocation14_spill] sm:$0xff] }
 0x43b   : > { %v8218_v13 = vpop.permute.xlu1 %2724  ;;  %v8220_v51 = vpop.permute.xlu0 %3039 }
 0x43c   : > { %10131 = vst [vmem:[#allocation4_spill] sm:$0xff] %v8220_v51  ;;  %2916 = vperm.xlu1 %5838, %v655_v16   ;;  %v661_v51 = vld [vmem:[%s7275_s23 + $0x570] sm:$0xff] }
 0x43e   : > { %4100 = vxpose.xlu0.c.b16.cont [3/8] (narrow) %v10134_v49, 32 }
 0x43f   : > { %v8226_v4 = vpop.permute.xlu1 %2730  ;;  %v8228_v26 = vpop.permute.xlu0 %3045 }
 0x440   : > { %10135 = vst [vmem:[#allocation5_spill] sm:$0xff] %v8226_v4  ;;  %10136 = vst [vmem:[#allocation6_spill] sm:$0xff] %v8228_v26  ;;  %2922 = vperm.xlu1 %5838, %v657_v25   ;;  %v663_v25 = vld [vmem:[%s7275_s23 + $0x580] sm:$0xff]  ;;  %v10231_v4 = vld [vmem:[#allocation67_spill] sm:$0xff] }
 0x442   : > { %4101 = vxpose.xlu0.c.b16.cont [4/8] (narrow) %v10139_v15, 32  ;;  %v10149_v15 = vpack.c.bf16 %v10147_v30, %v10148_v18  ;;  %v667_v18 = vld [vmem:[%s7275_s23 + $0x5a0] sm:$0xff] }
 0x443   : > { %v8234_v39 = vpop.permute.xlu1 %2736  ;;  %v8236_v16 = vpop.permute.xlu0 %3051 }
 0x444   : > { %10140 = vst [vmem:[#allocation7_spill] sm:$0xff] %v8234_v39  ;;  %10141 = vst [vmem:[#allocation8_spill] sm:$0xff] %v8236_v16  ;;  %2928 = vperm.xlu1 %5838, %v659_v52   ;;  %v10151_v52 = vld [vmem:[#allocation15_spill] sm:$0xff] }
 0x446   : > { %4102 = vxpose.xlu0.c.b16.cont [5/8] (narrow) %v10144_v43, 32 }
 0x447   : > { %v8242_v49 = vpop.permute.xlu1 %2742  ;;  %v8244_v26 = vpop.permute.xlu0 %3057 }
 0x448   : > { %10145 = vst [vmem:[#allocation9_spill] sm:$0xff] %v8242_v49  ;;  %10146 = vst [vmem:[#allocation10_spill] sm:$0xff] %v8244_v26  ;;  %2934 = vperm.xlu1 %5838, %v661_v51   ;;  %v10152_v51 = vld [vmem:[#allocation16_spill] sm:$0xff] }
 0x449   : > { %v10153_v23 = vpack.c.bf16 %v10151_v52, %v10152_v51  ;;  %v669_v26 = vld [vmem:[%s7275_s23 + $0x5b0] sm:$0xff]  ;;  %v10159_v52 = vld [vmem:[#allocation19_spill] sm:$0xff] }
 0x44a   : > { %4103 = vxpose.xlu0.c.b16.cont [6/8] (narrow) %v10149_v15, 32  ;;  %v10156_v15 = vld [vmem:[#allocation18_spill] sm:$0xff]  ;;  %v10160_v51 = vld [vmem:[#allocation20_spill] sm:$0xff] }
 0x44b   : > { %v2749_v41 = vpop.permute.xlu1 %2748  ;;  %v8250_v50 = vpop.permute.xlu0 %3063 }
 0x44c   : > { %10150 = vst [vmem:[#allocation11_spill] sm:$0xff] %v8250_v50  ;;  %vm3295_vm6 = vcmp.eq.s32.totalorder %v2749_v41, %v7844_v35  ;;  %2940 = vperm.xlu1 %5838, %v663_v25   ;;  %v10157_v41 = vpack.c.bf16 %v10155_v60, %v10156_v15  ;;  %v10163_v60 = vld [vmem:[#allocation21_spill] sm:$0xff]  ;;  %v10164_v15 = vld [vmem:[#allocation22_spill] sm:$0xff] }
 0x44d   : > { %vm5439_vm7 = vmpackc.low %vm3296_vm5, %vm3295_vm6 }
 0x44e   : > { %5669 = vmatprep.subr.msk.bf16.mxu1 %vm5439_vm7, %v10102_v48  ;;  %4104 = vxpose.xlu0.c.b16.cont [7/8] (narrow) %v10153_v23, 32  ;;  %v10161_v23 = vpack.c.bf16 %v10159_v52, %v10160_v51  ;;  %v10167_v52 = vld [vmem:[#allocation23_spill] sm:$0xff]  ;;  %v10168_v51 = vld [vmem:[#allocation24_spill] sm:$0xff] }
 0x44f   : > { %v8260_v43 = vpop.permute.xlu1 %2754  ;;  %v8262_v30 = vpop.permute.xlu0 %3069 }
 0x450   : > { %10154 = vst [vmem:[#allocation12_spill] sm:$0xff] %v8262_v30  ;;  %2946 = vperm.xlu1 %5838, %v665_v5   ;;  %v671_v30 = vld [vmem:[%s7275_s23 + $0x5c0] sm:$0xff] }
 0x452   : > { %4105 = vxpose.xlu0.c.b16.end [8/8] (narrow) %v10157_v41, 32  ;;  %v10165_v41 = vpack.c.bf16 %v10163_v60, %v10164_v15  ;;  %v10171_v60 = vld [vmem:[#allocation25_spill] sm:$0xff]  ;;  %v10172_v15 = vld [vmem:[#allocation26_spill] sm:$0xff] }
 0x453   : > { %v8268_v25 = vpop.permute.xlu1 %2760  ;;  %v8270_v50 = vpop.permute.xlu0 %3075 }
 0x454   : > { %10158 = vst [vmem:[#allocation13_spill] sm:$0xff] %v8270_v50  ;;  %2952 = vperm.xlu1 %5838, %v667_v18   ;;  %v673_v50 = vld [vmem:[%s7275_s23 + $0x5d0] sm:$0xff] }
 0x456   : > { %4130 = vxpose.xlu0.c.b16.start [1/8] (narrow) %v10161_v23, 32  ;;  %v10169_v23 = vpack.c.bf16 %v10167_v52, %v10168_v51  ;;  %v10176_v52 = vld [vmem:[#allocation27_spill] sm:$0xff]  ;;  %v10177_v51 = vld [vmem:[#allocation28_spill] sm:$0xff] }
 0x457   : > { %v8276_v16 = vpop.permute.xlu1 %2766  ;;  %v8278_v5 = vpop.permute.xlu0 %3081 }
 0x458   : > { %10162 = vst [vmem:[#allocation14_spill] sm:$0xff] %v8278_v5  ;;  %2958 = vperm.xlu1 %5838, %v669_v26   ;;  %v675_v5 = vld [vmem:[%s7275_s23 + $0x5e0] sm:$0xff] }
 0x45a   : > { %4131 = vxpose.xlu0.c.b16.cont [2/8] (narrow) %v10165_v41, 32  ;;  %v10173_v41 = vpack.c.bf16 %v10171_v60, %v10172_v15  ;;  %v10181_v60 = vld [vmem:[#allocation29_spill] sm:$0xff]  ;;  %v10182_v15 = vld [vmem:[#allocation30_spill] sm:$0xff] }
 0x45b   : > { %v8284_v37 = vpop.permute.xlu1 %2772  ;;  %v8286_v18 = vpop.permute.xlu0 %3087 }
 0x45c   : > { %10166 = vst [vmem:[#allocation15_spill] sm:$0xff] %v8286_v18  ;;  %2964 = vperm.xlu1 %5838, %v671_v30   ;;  %v677_v18 = vld [vmem:[%s7275_s23 + $0x5f0] sm:$0xff] }
 0x45e   : > { %4132 = vxpose.xlu0.c.b16.cont [3/8] (narrow) %v10169_v23, 32  ;;  %v10178_v23 = vpack.c.bf16 %v10176_v52, %v10177_v51  ;;  %v10186_v52 = vld [vmem:[#allocation31_spill] sm:$0xff]  ;;  %v10187_v51 = vld [vmem:[#allocation32_spill] sm:$0xff] }
 0x45f   : > { %v8292_v49 = vpop.permute.xlu1 %2778  ;;  %v8294_v26 = vpop.permute.xlu0 %3093 }
 0x460   : > { %10170 = vst [vmem:[#allocation16_spill] sm:$0xff] %v8294_v26  ;;  %2970 = vperm.xlu1 %5838, %v673_v50   ;;  %v679_v26 = vld [vmem:[%s7275_s23 + $0x600] sm:$0xff] }
 0x462   : > { %4133 = vxpose.xlu0.c.b16.cont [4/8] (narrow) %v10173_v41, 32  ;;  %v10183_v41 = vpack.c.bf16 %v10181_v60, %v10182_v15  ;;  %v10191_v60 = vld [vmem:[#allocation33_spill] sm:$0xff]  ;;  %v10192_v15 = vld [vmem:[#allocation34_spill] sm:$0xff] }
 0x463   : > { %v8300_v38 = vpop.permute.xlu1 %2784  ;;  %v8302_v30 = vpop.permute.xlu0 %3099 }
 0x464   : > { %10174 = vst [vmem:[#allocation17_spill] sm:$0xff] %v8300_v38  ;;  %10175 = vst [vmem:[#allocation18_spill] sm:$0xff] %v8302_v30  ;;  %2976 = vperm.xlu1 %5838, %v675_v5   ;;  %v681_v30 = vld [vmem:[%s7275_s23 + $0x610] sm:$0xff]  ;;  %v10225_v38 = vld [vmem:[#allocation47_spill] sm:$0xff] }
 0x466   : > { %4134 = vxpose.xlu0.c.b16.cont [5/8] (narrow) %v10178_v23, 32  ;;  %v10188_v23 = vpack.c.bf16 %v10186_v52, %v10187_v51  ;;  %v10196_v52 = vld [vmem:[#allocation35_spill] sm:$0xff]  ;;  %v10197_v51 = vld [vmem:[#allocation36_spill] sm:$0xff] }
 0x467   : > { %v8308_v39 = vpop.permute.xlu1 %2790  ;;  %v8310_v50 = vpop.permute.xlu0 %3105 }
 0x468   : > { %10179 = vst [vmem:[#allocation19_spill] sm:$0xff] %v8308_v39  ;;  %10180 = vst [vmem:[#allocation20_spill] sm:$0xff] %v8310_v50  ;;  %2982 = vperm.xlu1 %5838, %v677_v18   ;;  %v683_v50 = vld [vmem:[%s7275_s23 + $0x620] sm:$0xff] }
 0x46a   : > { %4135 = vxpose.xlu0.c.b16.cont [6/8] (narrow) %v10183_v41, 32  ;;  %v10193_v41 = vpack.c.bf16 %v10191_v60, %v10192_v15  ;;  %v10201_v60 = vld [vmem:[#allocation37_spill] sm:$0xff]  ;;  %v10202_v15 = vld [vmem:[#allocation38_spill] sm:$0xff] }
 0x46b   : > { %v8316_v53 = vpop.permute.xlu1 %2796  ;;  %v8318_v5 = vpop.permute.xlu0 %3132 }
 0x46c   : > { %10184 = vst [vmem:[#allocation21_spill] sm:$0xff] %v8316_v53  ;;  %10185 = vst [vmem:[#allocation22_spill] sm:$0xff] %v8318_v5  ;;  %2988 = vperm.xlu1 %5838, %v679_v26   ;;  %v685_v5 = vld [vmem:[%s7275_s23 + $0x630] sm:$0xff] }
 0x46e   : > { %4136 = vxpose.xlu0.c.b16.cont [7/8] (narrow) %v10188_v23, 32  ;;  %v10198_v23 = vpack.c.bf16 %v10196_v52, %v10197_v51  ;;  %v10206_v52 = vld [vmem:[#allocation39_spill] sm:$0xff]  ;;  %v10207_v51 = vld [vmem:[#allocation40_spill] sm:$0xff] }
 0x46f   : > { %v8324_v39 = vpop.permute.xlu1 %2802  ;;  %v8326_v18 = vpop.permute.xlu0 %3138 }
 0x470   : > { %10189 = vst [vmem:[#allocation23_spill] sm:$0xff] %v8324_v39  ;;  %10190 = vst [vmem:[#allocation24_spill] sm:$0xff] %v8326_v18  ;;  %2994 = vperm.xlu1 %5838, %v681_v30   ;;  %v687_v18 = vld [vmem:[%s7275_s23 + $0x640] sm:$0xff] }
 0x472   : > { %4137 = vxpose.xlu0.c.b16.end [8/8] (narrow) %v10193_v41, 32  ;;  %v10203_v41 = vpack.c.bf16 %v10201_v60, %v10202_v15  ;;  %v10211_v60 = vld [vmem:[#allocation41_spill] sm:$0xff]  ;;  %v10212_v15 = vld [vmem:[#allocation42_spill] sm:$0xff] }
 0x473   : > { %v8332_v53 = vpop.permute.xlu1 %2808  ;;  %v8334_v26 = vpop.permute.xlu0 %3144 }
 0x474   : > { %10194 = vst [vmem:[#allocation25_spill] sm:$0xff] %v8332_v53  ;;  %10195 = vst [vmem:[#allocation26_spill] sm:$0xff] %v8334_v26  ;;  %3000 = vperm.xlu1 %5838, %v683_v50   ;;  %v689_v26 = vld [vmem:[%s7275_s23 + $0x650] sm:$0xff] }
 0x476   : > { %4162 = vxpose.xlu0.c.b16.start [1/8] (narrow) %v10198_v23, 32  ;;  %v10208_v23 = vpack.c.bf16 %v10206_v52, %v10207_v51  ;;  %v10216_v52 = vld [vmem:[#allocation43_spill] sm:$0xff]  ;;  %v10217_v51 = vld [vmem:[#allocation44_spill] sm:$0xff] }
 0x477   : > { %v8340_v39 = vpop.permute.xlu1 %2814  ;;  %v8342_v30 = vpop.permute.xlu0 %3150 }
 0x478   : > { %10199 = vst [vmem:[#allocation27_spill] sm:$0xff] %v8340_v39  ;;  %10200 = vst [vmem:[#allocation28_spill] sm:$0xff] %v8342_v30  ;;  %3006 = vperm.xlu1 %5838, %v685_v5   ;;  %v691_v30 = vld [vmem:[%s7275_s23 + $0x660] sm:$0xff] }
 0x47a   : > { %4163 = vxpose.xlu0.c.b16.cont [2/8] (narrow) %v10203_v41, 32  ;;  %v10213_v41 = vpack.c.bf16 %v10211_v60, %v10212_v15  ;;  %v10221_v60 = vld [vmem:[#allocation45_spill] sm:$0xff]  ;;  %v10222_v15 = vld [vmem:[#allocation46_spill] sm:$0xff] }
 0x47b   : > { %v8348_v53 = vpop.permute.xlu1 %2820  ;;  %v8350_v50 = vpop.permute.xlu0 %3156 }
 0x47c   : > { %10204 = vst [vmem:[#allocation29_spill] sm:$0xff] %v8348_v53  ;;  %10205 = vst [vmem:[#allocation30_spill] sm:$0xff] %v8350_v50  ;;  %3012 = vperm.xlu1 %5838, %v687_v18   ;;  %v693_v50 = vld [vmem:[%s7275_s23 + $0x670] sm:$0xff] }
 0x47e   : > { %4164 = vxpose.xlu0.c.b16.cont [3/8] (narrow) %v10208_v23, 32  ;;  %v10218_v23 = vpack.c.bf16 %v10216_v52, %v10217_v51  ;;  %v10226_v52 = vld [vmem:[#allocation48_spill] sm:$0xff] }
 0x47f   : > { %v8356_v39 = vpop.permute.xlu1 %2826  ;;  %v8358_v5 = vpop.permute.xlu0 %3111  ;;  %v10227_v51 = vpack.c.bf16 %v10225_v38, %v10226_v52  ;;  %v10233_v38 = vpack.c.bf16 %v10231_v4, %v10232_v3  ;;  %v8421_v4 = vld [vmem:[%s9611_s0] ss:$0 sm:$0xff] }
 0x480   : > { %10209 = vst [vmem:[#allocation31_spill] sm:$0xff] %v8356_v39  ;;  %10210 = vst [vmem:[#allocation32_spill] sm:$0xff] %v8358_v5  ;;  %3018 = vperm.xlu1 %5838, %v689_v26   ;;  %v695_v5 = vld [vmem:[%s7275_s23 + $0x680] sm:$0xff]  ;;  %vm3265_vm12 = vcmp.eq.s32.totalorder %v8155_v58, %v8421_v4  ;;  %vm3248_vm13 = vcmp.eq.s32.totalorder %v7685_v47, %v8421_v4  ;;  %vm3266_vm14 = vcmp.eq.s32.totalorder %v7733_v61, %v8421_v4 }
 0x481   : > { %vm5391_vm15 = vmpackc.low %vm3248_vm13, %vm3247_vm11  ;;  %vm3249_vm1 = vcmp.eq.s32.totalorder %v8105_v1, %v8421_v4  ;;  %vm3267_vm3 = vcmp.eq.s32.totalorder %v8161_v34, %v8421_v4  ;;  %vm3250_vm4 = vcmp.eq.s32.totalorder %v7691_v9, %v8421_v4  ;;  %vm3268_vm5 = vcmp.eq.s32.totalorder %v7739_v28, %v8421_v4  ;;  %v10242_v1 = vld [vmem:[#allocation73_spill] sm:$0xff]  ;;  %v10243_v58 = vld [vmem:[#allocation74_spill] sm:$0xff] }
 0x482   : > { %4165 = vxpose.xlu0.c.b16.cont [4/8] (narrow) %v10213_v41, 32  ;;  %v10223_v41 = vpack.c.bf16 %v10221_v60, %v10222_v15  ;;  %v10229_v60 = vld [vmem:[#allocation50_spill] sm:$0xff]  ;;  %vm5409_vm2 = vmpackc.low %vm3266_vm14, %vm3265_vm12  ;;  %vm3251_vm7 = vcmp.eq.s32.totalorder %v8111_v10, %v8421_v4  ;;  %vm3252_vm11 = vcmp.eq.s32.totalorder %v7695_v8, %v8421_v4  ;;  %v709_v9 = vld [vmem:[%s7275_s23 + $0x6f0] sm:$0xff]  ;;  %vm3270_vm12 = vcmp.eq.s32.totalorder %v7743_v45, %v8421_v4 }
 0x483   : > { %v8364_v53 = vpop.permute.xlu1 %2832  ;;  %v8366_v18 = vpop.permute.xlu0 %3165  ;;  %vm5393_vm6 = vmpackc.low %vm3250_vm4, %vm3249_vm1  ;;  %v10245_v28 = vld [vmem:[#allocation75_spill] sm:$0xff]  ;;  %v10246_v10 = vld [vmem:[#allocation76_spill] sm:$0xff]  ;;  %vm3253_vm14 = vcmp.eq.s32.totalorder %v8117_v31, %v8421_v4  ;;  %vm3342_vm1 = vcmp.eq.s32.totalorder %v8036_v14, %v8421_v4  ;;  %vm3254_vm4 = vcmp.eq.s32.totalorder %v7701_v0, %v8421_v4 }
 0x484   : > { %10214 = vst [vmem:[#allocation33_spill] sm:$0xff] %v8364_v53  ;;  %10215 = vst [vmem:[#allocation34_spill] sm:$0xff] %v8366_v18  ;;  %3024 = vperm.xlu1 %5838, %v691_v30   ;;  %v697_v18 = vld [vmem:[%s7275_s23 + $0x690] sm:$0xff]  ;;  %v10250_v8 = vld [vmem:[#allocation77_spill] sm:$0xff] }
 0x485   : > { %vm5395_vm13 = vmpackc.low %vm3252_vm11, %vm3251_vm7  ;;  %v10251_v14 = vld [vmem:[#allocation78_spill] sm:$0xff]  ;;  %vm3273_vm11 = vcmp.eq.s32.totalorder %v8177_v40, %v8421_v4 }
 0x486   : > { %4166 = vxpose.xlu0.c.b16.cont [5/8] (narrow) %v10218_v23, 32  ;;  %vm5397_vm7 = vmpackc.low %vm3254_vm4, %vm3253_vm14  ;;  %v10252_v31 = vpack.c.bf16 %v10250_v8, %v10251_v14  ;;  %v730_v14 = vld [vmem:[%s7275_s23 + $0x798] sm:$0xff] }
 0x487   : > { %v8372_v39 = vpop.permute.xlu1 %2838  ;;  %v8374_v26 = vpop.permute.xlu0 %3117 }
 0x488   : > { %10219 = vst [vmem:[#allocation35_spill] sm:$0xff] %v8372_v39  ;;  %10220 = vst [vmem:[#allocation36_spill] sm:$0xff] %v8374_v26  ;;  %3030 = vperm.xlu1 %5838, %v693_v50   ;;  %v699_v26 = vld [vmem:[%s7275_s23 + $0x6a0] sm:$0xff]  ;;  %v10228_v39 = vld [vmem:[#allocation49_spill] sm:$0xff] }
 0x489   : > { %v10230_v15 = vpack.c.bf16 %v10228_v39, %v10229_v60  ;;  %v703_v39 = vld [vmem:[%s7275_s23 + $0x6c0] sm:$0xff] }
 0x48a   : > { %4167 = vxpose.xlu0.c.b16.cont [6/8] (narrow) %v10223_v41, 32  ;;  %v10237_v60 = vld [vmem:[#allocation70_spill] sm:$0xff] }
 0x48b   : > { %v8380_v53 = vpop.permute.xlu1 %2844  ;;  %v8382_v30 = vpop.permute.xlu0 %3171 }
 0x48c   : > { %10224 = vst [vmem:[#allocation37_spill] sm:$0xff] %v8382_v30  ;;  %3036 = vperm.xlu1 %5838, %v695_v5   ;;  %v701_v5 = vld [vmem:[%s7275_s23 + $0x6b0] sm:$0xff] }
 0x48e   : > { %4168 = vxpose.xlu0.c.b16.cont [7/8] (narrow) %v10227_v51, 32 }
 0x48f   : > { %v8388_v23 = vpop.permute.xlu1 %2850  ;;  %v8390_v50 = vpop.permute.xlu0 %3123 }
 0x490   : > { %3042 = vperm.xlu1 %5838, %v697_v18  }
 0x492   : > { %4169 = vxpose.xlu0.c.b16.end [8/8] (narrow) %v10230_v15, 32 }
 0x493   : > { %v8396_v41 = vpop.permute.xlu1 %2856  ;;  %v3175_v30 = vpop.permute.xlu0 %3174 }
 0x494   : > { %3048 = vperm.xlu1 %5838, %v699_v26   ;;  %vm3437_vm9 = vcmp.eq.s32.totalorder %v3175_v30, %v7844_v35  ;;  %v10236_v26 = vld [vmem:[#allocation69_spill] sm:$0xff] }
 0x495   : > { %v10238_v15 = vpack.c.bf16 %v10236_v26, %v10237_v60 }
 0x496   : > { %4194 = vxpose.xlu0.c.b16.start [1/8] (narrow) %v10233_v38, 32 }
 0x497   : > { %v8402_v52 = vpop.permute.xlu1 %2862  ;;  %v3178_v51 = vpop.permute.xlu0 %3177 }
 0x498   : > { %vm3438_vm8 = vcmp.eq.s32.totalorder %v3178_v51, %v7844_v35  ;;  %3054 = vperm.xlu1 %5838, %v701_v5   ;;  %v705_v5 = vld [vmem:[%s7275_s23 + $0x6d0] sm:$0xff]  ;;  %v10239_v35 = vld [vmem:[#allocation71_spill] sm:$0xff]  ;;  %v10244_v51 = vpack.c.bf16 %v10242_v1, %v10243_v58 }
 0x499   : > { %vm8407_vm10 = vmpackc.low %vm3438_vm8, %vm3437_vm9  ;;  %v10241_v38 = vpack.c.bf16 %v10239_v35, %v10240_v20  ;;  %vm3269_vm9 = vcmp.eq.s32.totalorder %v8167_v42, %v8421_v4  ;;  %v10265_v35 = vld [vmem:[#allocation84_spill] sm:$0xff]  ;;  %v10273_v58 = vld [vmem:[#allocation191_spill] sm:$0xff] }
 0x49a   : > { %4195 = vxpose.xlu0.c.b16.cont [2/8] (narrow) %v10238_v15, 32  ;;  %vm5411_vm8 = vmpackc.low %vm3268_vm5, %vm3267_vm3  ;;  %v10262_v15 = vld [vmem:[#allocation107_spill] sm:$0xff] }
 0x49b   : > { %v8416_v3 = vpop.permute.xlu1 %2868 }
 0x49c   : > { %3060 = vperm.xlu1 %5838, %v703_v39   ;;  %v4106_v30 = vpop.trf.xlu0  ;;  %v10247_v39 = vpack.c.bf16 %v10245_v28, %v10246_v10  ;;  %v10276_v28 = vld [vmem:[#allocation88_spill] sm:$0xff] }
 0x49d   : > { %4370 = vmatprep.mubr.bf16.mxu0 %v4106_v30  ;;  %v717_v30 = vld [vmem:[%s7275_s23 + $0x730] sm:$0xff] }
 0x49e   : > { %4196 = vxpose.xlu0.c.b16.cont [3/8] (narrow) %v10241_v38, 32  ;;  %4371 = vmatmul.mubr.bf16.vlgmr.msra.gmra.mrb[0].mxu0 %v7697_v59  ;;  %v707_v59 = vld [vmem:[%s7275_s23 + $0x6e0] sm:$0xff]  ;;  %v10267_v38 = vld [vmem:[#allocation109_spill] sm:$0xff] }
 0x49f   : > { %5642 = vmatpush3.bf16.msk.msra.mxu0 %vm5391_vm15, %v10102_v48  ;;  %v8437_v47 = vpop.permute.xlu1 %2874  ;;  %vm5413_vm15 = vmpackc.low %vm3270_vm12, %vm3269_vm9  ;;  %vm3256_vm12 = vcmp.eq.s32.totalorder %v7707_v62, %v8421_v4  ;;  %v715_v62 = vld [vmem:[%s7275_s23 + $0x720] sm:$0xff] }
 0x4a0   : > { %5643 = vmatprep.subr.msk.bf16.mxu0 %vm5409_vm2, %v10102_v48  ;;  %3066 = vperm.xlu1 %5838, %v705_v5   ;;  %v4107_v61 = vpop.trf.xlu0  ;;  %vm3271_vm2 = vcmp.eq.s32.totalorder %v8172_v17, %v8421_v4  ;;  %v10254_v17 = vld [vmem:[#allocation80_spill] sm:$0xff]  ;;  %v10263_v5 = vld [vmem:[#allocation189_spill] sm:$0xff] }
 0x4a1   : > { %4378 = vmatprep.mubr.bf16.mxu0 %v4107_v61  ;;  %v719_v61 = vld [vmem:[%s7275_s23 + $0x740] sm:$0xff] }
 0x4a2   : > { %4197 = vxpose.xlu0.c.b16.cont [4/8] (narrow) %v10244_v51, 32  ;;  %v728_v51 = vld [vmem:[%s7275_s23 + $0x788] sm:$0xff] }
 0x4a3   : > { %5644 = vmatpush3.bf16.msk.msra.mxu0 %vm5393_vm6, %v10102_v48  ;;  %v8453_v34 = vpop.permute.xlu1 %2880  ;;  %vm3272_vm6 = vcmp.eq.s32.totalorder %v7749_v57, %v8421_v4  ;;  %v713_v57 = vld [vmem:[%s7275_s23 + $0x710] sm:$0xff] }
 0x4a4   : > { %5645 = vmatprep.subr.msk.bf16.mxu0 %vm5411_vm8, %v10102_v48  ;;  %3072 = vperm.xlu1 %5838, %v707_v59   ;;  %vm3255_vm8 = vcmp.eq.s32.totalorder %v8123_v46, %v8421_v4  ;;  %vm5415_vm9 = vmpackc.low %vm3272_vm6, %vm3271_vm2  ;;  %v10253_v46 = vld [vmem:[#allocation79_spill] sm:$0xff]  ;;  %vm3346_vm2 = vcmp.eq.s32.totalorder %v8062_v21, %v8421_v4  ;;  %vm3258_vm6 = vcmp.eq.s32.totalorder %v7711_v55, %v8421_v4  ;;  %v10259_v21 = vld [vmem:[#allocation81_spill] sm:$0xff] }
 0x4a5   : > { %vm5399_vm14 = vmpackc.low %vm3256_vm12, %vm3255_vm8  ;;  %v10255_v26 = vpack.c.bf16 %v10253_v46, %v10254_v17  ;;  %v10286_v46 = vld [vmem:[#allocation200_spill] sm:$0xff] }
 0x4a6   : > { %4198 = vxpose.xlu0.c.b16.cont [5/8] (narrow) %v10247_v39, 32  ;;  %4379 = vmatmul.mubr.bf16.gmra.mrb[4].mxu0 %v7705_v56  ;;  %v711_v56 = vld [vmem:[%s7275_s23 + $0x700] sm:$0xff]  ;;  %v10288_v17 = vld [vmem:[#allocation92_spill] sm:$0xff] }
 0x4a7   : > { %5646 = vmatpush3.bf16.msk.msra.mxu0 %vm5395_vm13, %v10102_v48  ;;  %v2887_v42 = vpop.permute.xlu1 %2886  ;;  %vm3274_vm13 = vcmp.eq.s32.totalorder %v7755_v36, %v8421_v4  ;;  %v10278_v39 = vld [vmem:[#allocation106_spill] sm:$0xff] }
 0x4a8   : > { %vm3341_vm3 = vcmp.eq.s32.totalorder %v2887_v42, %v8421_v4  ;;  %5647 = vmatprep.subr.msk.bf16.mxu0 %vm5413_vm15, %v10102_v48  ;;  %3078 = vperm.xlu1 %5838, %v709_v9   ;;  %vm3257_vm15 = vcmp.eq.s32.totalorder %v8129_v7, %v8421_v4  ;;  %v10258_v7 = vld [vmem:[#allocation187_spill] sm:$0xff] }
 0x4a9   : > { %vm8478_vm5 = vmpackc.low %vm3342_vm1, %vm3341_vm3  ;;  %vm3275_vm3 = vcmp.eq.s32.totalorder %v8182_v32, %v8421_v4  ;;  %vm3276_vm8 = vcmp.eq.s32.totalorder %v10258_v7, %v8421_v4  ;;  %v10260_v32 = vld [vmem:[#allocation82_spill] sm:$0xff]  ;;  %v10274_v9 = vld [vmem:[#allocation199_spill] sm:$0xff] }
 0x4aa   : > { %4199 = vxpose.xlu0.c.b16.cont [6/8] (narrow) %v10252_v31, 32  ;;  %vm5417_vm1 = vmpackc.low %vm3274_vm13, %vm3273_vm11  ;;  %v10261_v60 = vpack.c.bf16 %v10259_v21, %v10260_v32  ;;  %vm3259_vm11 = vcmp.eq.s32.totalorder %v8135_v24, %v8421_v4  ;;  %vm3277_vm13 = vcmp.eq.s32.totalorder %v8187_v27, %v8421_v4  ;;  %v10264_v24 = vld [vmem:[#allocation83_spill] sm:$0xff]  ;;  %v734_v7 = vld [vmem:[%s7275_s23 + $0x7b8] sm:$0xff] }
 0x4ab   : > { %5648 = vmatpush3.bf16.msk.msra.mxu0 %vm5397_vm7, %v10102_v48  ;;  %v8491_v0 = vpop.permute.xlu1 %2892  ;;  %vm5419_vm12 = vmpackc.low %vm3276_vm8, %vm3275_vm3  ;;  %v10266_v20 = vpack.c.bf16 %v10264_v24, %v10265_v35  ;;  %v10302_v24 = vld [vmem:[#allocation95_spill] sm:$0xff] }
 0x4ac   : > { %5649 = vmatprep.subr.msk.bf16.mxu0 %vm5415_vm9, %v10102_v48  ;;  %3084 = vperm.xlu1 %5838, %v711_v56   ;;  %vm5401_vm9 = vmpackc.low %vm3258_vm6, %vm3257_vm15  ;;  %vm3278_vm15 = vcmp.eq.s32.totalorder %v10263_v5, %v8421_v4  ;;  %vm3327_vm6 = vcmp.eq.s32.totalorder %v8380_v53, %v8421_v4  ;;  %v10271_v53 = vld [vmem:[#allocation86_spill] sm:$0xff]  ;;  %v10279_v56 = vld [vmem:[#allocation192_spill] sm:$0xff] }
 0x4ad   : > { %vm5421_vm3 = vmpackc.low %vm3278_vm15, %vm3277_vm13  ;;  %v10301_v5 = vld [vmem:[#allocation201_spill] sm:$0xff] }
 0x4ae   : > { %4200 = vxpose.xlu0.c.b16.cont [7/8] (narrow) %v10255_v26, 32 }
 0x4af   : > { %5650 = vmatpush3.bf16.msk.msra.mxu0 %vm5399_vm14, %v10102_v48  ;;  %v2899_v40 = vpop.permute.xlu1 %2898  ;;  %vm3260_vm14 = vcmp.eq.s32.totalorder %v10262_v15, %v8421_v4  ;;  %v10298_v15 = vld [vmem:[#allocation2_spill] sm:$0xff] }
 0x4b0   : > { %vm3345_vm4 = vcmp.eq.s32.totalorder %v2899_v40, %v8421_v4  ;;  %5651 = vmatprep.subr.msk.bf16.mxu0 %vm5417_vm1, %v10102_v48  ;;  %3090 = vperm.xlu1 %5838, %v713_v57   ;;  %vm5403_vm1 = vmpackc.low %vm3260_vm14, %vm3259_vm11  ;;  %vm3279_vm14 = vcmp.eq.s32.totalorder %v8192_v29, %v8421_v4  ;;  %v10275_v29 = vld [vmem:[#allocation87_spill] sm:$0xff]  ;;  %v10290_v40 = vld [vmem:[#allocation108_spill] sm:$0xff] }
 0x4b1   : > { %vm8515_vm7 = vmpackc.low %vm3346_vm2, %vm3345_vm4  ;;  %vm3261_vm2 = vcmp.eq.s32.totalorder %v8141_v11, %v8421_v4  ;;  %vm3350_vm4 = vcmp.eq.s32.totalorder %v8088_v54, %v8421_v4  ;;  %v10270_v54 = vld [vmem:[#allocation85_spill] sm:$0xff]  ;;  %v10277_v10 = vpack.c.bf16 %v10275_v29, %v10276_v28  ;;  %v10313_v28 = vld [vmem:[#allocation98_spill] sm:$0xff] }
 0x4b2   : > { %4201 = vxpose.xlu0.c.b16.end [8/8] (narrow) %v10261_v60, 32  ;;  %v10272_v59 = vpack.c.bf16 %v10270_v54, %v10271_v53  ;;  %v736_v60 = vld [vmem:[%s7275_s23 + $0x7c8] sm:$0xff]  ;;  %v10312_v29 = vld [vmem:[#allocation97_spill] sm:$0xff] }
 0x4b3   : > { %5652 = vmatpush3.bf16.msk.msra.mxu0 %vm5401_vm9, %v10102_v48  ;;  %v8528_v55 = vpop.permute.xlu1 %2904  ;;  %vm3262_vm9 = vcmp.eq.s32.totalorder %v10267_v38, %v8421_v4  ;;  %v10306_v38 = vld [vmem:[#allocation17_spill] sm:$0xff] }
 0x4b4   : > { %5653 = vmatprep.subr.msk.bf16.mxu0 %vm5419_vm12, %v10102_v48  ;;  %3096 = vperm.xlu1 %5838, %v715_v62   ;;  %vm3328_vm12 = vcmp.eq.s32.totalorder %v7974_v63, %v8421_v4  ;;  %vm5405_vm13 = vmpackc.low %vm3262_vm9, %vm3261_vm2  ;;  %vm3280_vm2 = vcmp.eq.s32.totalorder %v10273_v58, %v8421_v4  ;;  %vm3354_vm9 = vcmp.eq.s32.totalorder %v8107_v6, %v8421_v4  ;;  %v10282_v6 = vld [vmem:[#allocation89_spill] sm:$0xff]  ;;  %v10291_v62 = vld [vmem:[#allocation194_spill] sm:$0xff] }
 0x4b5   : > { %vm5471_vm15 = vmpackc.low %vm3328_vm12, %vm3327_vm6  ;;  %vm3281_vm6 = vcmp.eq.s32.totalorder %v8197_v19, %v8421_v4  ;;  %vm3299_vm12 = vcmp.eq.s32.totalorder %v8268_v25, %v8421_v4  ;;  %v10283_v25 = vld [vmem:[#allocation90_spill] sm:$0xff]  ;;  %v732_v19 = vld [vmem:[%s7275_s23 + $0x7a8] sm:$0xff]  ;;  %vm3307_vm0 = vcmp.eq.s32.totalorder %v10306_v38, %v8421_v4 }
 0x4b6   : > { %4210 = vxpose.xlu0.c.b16.start [1/8] (narrow) %v10266_v20, 32  ;;  %v10284_v31 = vpack.c.bf16 %v10282_v6, %v10283_v25  ;;  %v10305_v20 = vld [vmem:[#allocation5_spill] sm:$0xff]  ;;  %v10309_v58 = vld [vmem:[#allocation144_spill] sm:$0xff] }
 0x4b7   : > { %5654 = vmatpush3.bf16.msk.msra.mxu0 %vm5403_vm1, %v10102_v48  ;;  %v2911_v27 = vpop.permute.xlu1 %2910  ;;  %vm3297_vm1 = vcmp.eq.s32.totalorder %v8260_v43, %v8421_v4  ;;  %v10317_v25 = vld [vmem:[#allocation197_spill] sm:$0xff]  ;;  %v10330_v38 = vld [vmem:[#allocation212_spill] sm:$0xff] }
 0x4b8   : > { %vm3349_vm8 = vcmp.eq.s32.totalorder %v2911_v27, %v8421_v4  ;;  %5655 = vmatprep.subr.msk.bf16.mxu0 %vm5421_vm3, %v10102_v48  ;;  %3102 = vperm.xlu1 %5838, %v717_v30   ;;  %vm3298_vm3 = vcmp.eq.s32.totalorder %v10274_v9, %v8421_v4  ;;  %v10299_v30 = vld [vmem:[#allocation142_spill] sm:$0xff] }
 0x4b9   : > { %vm8552_vm11 = vmpackc.low %vm3350_vm4, %vm3349_vm8  ;;  %v10311_v9 = vld [vmem:[#allocation202_spill] sm:$0xff] }
 0x4ba   : > { %4211 = vxpose.xlu0.c.b16.cont [2/8] (narrow) %v10272_v59, 32  ;;  %vm5423_vm4 = vmpackc.low %vm3280_vm2, %vm3279_vm14  ;;  %vm3282_vm14 = vcmp.eq.s32.totalorder %v10279_v56, %v8421_v4  ;;  %v10308_v59 = vld [vmem:[#allocation196_spill] sm:$0xff]  ;;  %v10316_v56 = vld [vmem:[#allocation19_spill] sm:$0xff] }
 0x4bb   : > { %5656 = vmatpush3.bf16.msk.msra.mxu0 %vm5405_vm13, %v10102_v48  ;;  %v8565_v1 = vpop.permute.xlu1 %2916  ;;  %vm5441_vm8 = vmpackc.low %vm3298_vm3, %vm3297_vm1  ;;  %vm3300_vm1 = vcmp.eq.s32.totalorder %v7831_v2, %v8421_v4  ;;  %vm3283_vm3 = vcmp.eq.s32.totalorder %v8202_v44, %v8421_v4  ;;  %v10285_v2 = vld [vmem:[#allocation193_spill] sm:$0xff]  ;;  %v10287_v44 = vld [vmem:[#allocation91_spill] sm:$0xff] }
 0x4bc   : > { %5697 = vmatprep.subr.msk.bf16.mxu0 %vm5471_vm15, %v10102_v48  ;;  %3108 = vperm.xlu1 %5838, %v719_v61   ;;  %v4138_v63 = vpop.trf.xlu0  ;;  %vm5425_vm2 = vmpackc.low %vm3282_vm14, %vm3281_vm6  ;;  %vm3284_vm6 = vcmp.eq.s32.totalorder %v10285_v2, %v8421_v4  ;;  %v10289_v26 = vpack.c.bf16 %v10287_v44, %v10288_v17  ;;  %v10307_v61 = vmov 0.0   ;;  %v10318_v2 = vld [vmem:[#allocation147_spill] sm:$0xff]  ;;  %v10321_v44 = vld [vmem:[#allocation9_spill] sm:$0xff] }
 0x4bd   : > { %4418 = vmatprep.mubr.bf16.mxu1 %v4138_v63  ;;  %v737_v63 = vld [vmem:[%s7275_s23 + $0x7d0] sm:$0xff] }
 0x4be   : > { %4212 = vxpose.xlu0.c.b16.cont [3/8] (narrow) %v10277_v10, 32  ;;  %4419 = vmatmul.mubr.bf16.vlgmr.msra.gmra.mrb[0].mxu1 %v10278_v39  ;;  %v10314_v10 = vpack.c.bf16 %v10312_v29, %v10313_v28  ;;  %v10315_v39 = vld [vmem:[#allocation7_spill] sm:$0xff]  ;;  %v10333_v29 = vld [vmem:[#allocation205_spill] sm:$0xff]  ;;  %v10334_v28 = vld [vmem:[#allocation154_spill] sm:$0xff] }
 0x4bf   : > { %5670 = vmatpush3.bf16.msk.msra.mxu1 %vm5423_vm4, %v10102_v48  ;;  %v2923_v43 = vpop.permute.xlu1 %2922  ;;  %vm5443_vm4 = vmpackc.low %vm3300_vm1, %vm3299_vm12  ;;  %vm3285_vm12 = vcmp.eq.s32.totalorder %v8210_v22, %v8421_v4  ;;  %vm3358_vm1 = vcmp.eq.s32.totalorder %v8119_v33, %v8421_v4  ;;  %v10294_v33 = vld [vmem:[#allocation93_spill] sm:$0xff]  ;;  %v10412_v22 = vld [vmem:[#allocation139_spill] sm:$0xff] }
 0x4c0   : > { %vm3353_vm13 = vcmp.eq.s32.totalorder %v2923_v43, %v8421_v4  ;;  %5671 = vmatprep.subr.msk.bf16.mxu1 %vm5441_vm8, %v10102_v48  ;;  %3135 = vperm.xlu1 %5838, %v728_v51   ;;  %v4139_v42 = vpop.trf.xlu0  ;;  %vm3301_vm8 = vcmp.eq.s32.totalorder %v8276_v16, %v8421_v4  ;;  %v10310_v51 = vld [vmem:[#allocation123_spill] sm:$0xff] }
 0x4c1   : > { %vm8590_vm15 = vmpackc.low %vm3354_vm9, %vm3353_vm13  ;;  %4426 = vmatprep.mubr.bf16.mxu1 %v4139_v42  ;;  %vm3302_vm9 = vcmp.eq.s32.totalorder %v10286_v46, %v8421_v4  ;;  %v10320_v46 = vld [vmem:[#allocation203_spill] sm:$0xff] }
 0x4c2   : > { %4213 = vxpose.xlu0.c.b16.cont [4/8] (narrow) %v10284_v31, 32  ;;  %vm5427_vm13 = vmpackc.low %vm3284_vm6, %vm3283_vm3  ;;  %v721_v31 = vld [vmem:[%s7275_s23 + $0x750] sm:$0xff] }
 0x4c3   : > { %5672 = vmatpush3.bf16.msk.msra.mxu1 %vm5425_vm2, %v10102_v48  ;;  %v8606_v57 = vpop.permute.xlu1 %2928  ;;  %vm5445_vm14 = vmpackc.low %vm3302_vm9, %vm3301_vm8  ;;  %vm3303_vm2 = vcmp.eq.s32.totalorder %v8284_v37, %v8421_v4  ;;  %vm3304_vm8 = vcmp.eq.s32.totalorder %v7848_v12, %v8421_v4  ;;  %v10295_v37 = vld [vmem:[#allocation94_spill] sm:$0xff]  ;;  %v10297_v12 = vld [vmem:[#allocation195_spill] sm:$0xff] }
 0x4c4   : > { %5673 = vmatprep.subr.msk.bf16.mxu1 %vm5443_vm4, %v10102_v48  ;;  %3141 = vperm.xlu1 %5838, %v730_v14   ;;  %vm3286_vm4 = vcmp.eq.s32.totalorder %v10291_v62, %v8421_v4  ;;  %v10296_v21 = vpack.c.bf16 %v10294_v33, %v10295_v37  ;;  %v10322_v62 = vld [vmem:[#allocation198_spill] sm:$0xff]  ;;  %v10323_v33 = vld [vmem:[#allocation149_spill] sm:$0xff] }
 0x4c5   : > { %vm5429_vm9 = vmpackc.low %vm3286_vm4, %vm3285_vm12  ;;  %vm3288_vm12 = vcmp.eq.s32.totalorder %v10297_v12, %v8421_v4  ;;  %vm3306_vm4 = vcmp.eq.s32.totalorder %v10301_v5, %v8421_v4  ;;  %v10324_v37 = vld [vmem:[#allocation126_spill] sm:$0xff] }
 0x4c6   : > { %4214 = vxpose.xlu0.c.b16.cont [5/8] (narrow) %v10289_v26, 32  ;;  %4427 = vmatmul.mubr.bf16.gmra.mrb[4].mxu1 %v10290_v40 }
 0x4c7   : > { %5674 = vmatpush3.bf16.msk.msra.mxu1 %vm5427_vm13, %v10102_v48  ;;  %v2935_v16 = vpop.permute.xlu1 %2934  ;;  %vm3287_vm13 = vcmp.eq.s32.totalorder %v8218_v13, %v8421_v4  ;;  %v10300_v13 = vld [vmem:[#allocation121_spill] sm:$0xff] }
 0x4c8   : > { %vm3357_vm3 = vcmp.eq.s32.totalorder %v2935_v16, %v8421_v4  ;;  %5675 = vmatprep.subr.msk.bf16.mxu1 %vm5445_vm14, %v10102_v48  ;;  %3147 = vperm.xlu1 %5838, %v732_v19   ;;  %vm5447_vm14 = vmpackc.low %vm3304_vm8, %vm3303_vm2  ;;  %vm1691_vm2 = vcmp.eq.s32.totalorder %v10300_v13, %v10298_v15  ;;  %v10319_v19 = vld [vmem:[#allocation125_spill] sm:$0xff] }
 0x4c9   : > { %vm8631_vm6 = vmpackc.low %vm3358_vm1, %vm3357_vm3  ;;  %vm3305_vm1 = vcmp.eq.s32.totalorder %v8292_v49, %v8421_v4  ;;  %vm1692_vm3 = vcmp.eq.s32.totalorder %v10299_v30, %v10298_v15  ;;  %v10303_v49 = vld [vmem:[#allocation96_spill] sm:$0xff]  ;;  %v4990_v53 = vsel %vm1691_vm2, 1.0, %v10307_v61 }
 0x4ca   : > { %4215 = vxpose.xlu0.c.b16.cont [6/8] (narrow) %v10296_v21, 32  ;;  %vm5431_vm8 = vmpackc.low %vm3288_vm12, %vm3287_vm13  ;;  %v10304_v35 = vpack.c.bf16 %v10302_v24, %v10303_v49  ;;  %v4991_v54 = vsel %vm1692_vm3, 1.0, %v10307_v61  ;;  %vm3290_vm13 = vcmp.eq.s32.totalorder %v10308_v59, %v8421_v4  ;;  %vm1693_vm12 = vcmp.eq.s32.totalorder %v10310_v51, %v10298_v15  ;;  %v10325_v21 = vld [vmem:[#allocation222_spill] sm:$0xff]  ;;  %v10327_v24 = vld [vmem:[#allocation204_spill] sm:$0xff] }
 0x4cb   : > { %5676 = vmatpush3.bf16.msk.msra.mxu1 %vm5429_vm9, %v10102_v48  ;;  %v2941_v32 = vpop.permute.xlu1 %2940  ;;  %vm3289_vm9 = vcmp.eq.s32.totalorder %v10305_v20, %v8421_v4  ;;  %vm3291_vm3 = vcmp.eq.s32.totalorder %v10315_v39, %v8421_v4  ;;  %v2371_v42 = vpack.c.bf16 %v4991_v54, %v4990_v53  ;;  %v4992_v6 = vsel %vm1693_vm12, 1.0, %v10307_v61  ;;  %v723_v49 = vld [vmem:[%s7275_s23 + $0x760] sm:$0xff]  ;;  %v10329_v20 = vld [vmem:[#allocation128_spill] sm:$0xff]  ;;  %v10332_v53 = vld [vmem:[#allocation23_spill] sm:$0xff] }
 0x4cc   : > { %5677 = vmatprep.subr.msk.bf16.mxu1 %vm5447_vm14, %v10102_v48  ;;  %3153 = vperm.xlu1 %5838, %v734_v7   ;;  %vm5449_vm14 = vmpackc.low %vm3306_vm4, %vm3305_vm1  ;;  %vm1694_vm1 = vcmp.eq.s32.totalorder %v10309_v58, %v10298_v15  ;;  %vm3308_vm4 = vcmp.eq.s32.totalorder %v10311_v9, %v8421_v4  ;;  %vm3293_vm12 = vcmp.eq.s32.totalorder %v10321_v44, %v8421_v4  ;;  %v739_v7 = vld [vmem:[%s7275_s23 + $0x7e0] sm:$0xff]  ;;  %v10336_v39 = vld [vmem:[#allocation213_spill] sm:$0xff] }
 0x4cd   : > { %vm5451_vm2 = vmpackc.low %vm3308_vm4, %vm3307_vm0  ;;  %v4993_v14 = vsel %vm1694_vm1, 1.0, %v10307_v61  ;;  %vm1696_vm0 = vcmp.eq.s32.totalorder %v10318_v2, %v10298_v15  ;;  %vm3310_vm4 = vcmp.eq.s32.totalorder %v10320_v46, %v8421_v4  ;;  %v10331_v54 = vld [vmem:[#allocation110_spill] sm:$0xff]  ;;  %v10339_v2 = vld [vmem:[#allocation157_spill] sm:$0xff] }
 0x4ce   : > { %4216 = vxpose.xlu0.c.b16.cont [7/8] (narrow) %v10304_v35, 32  ;;  %v2372_v26 = vpack.c.bf16 %v4993_v14, %v4992_v6  ;;  %v4995_v40 = vsel %vm1696_vm0, 1.0, %v10307_v61  ;;  %v10328_v35 = vld [vmem:[#allocation152_spill] sm:$0xff]  ;;  %v10341_v46 = vld [vmem:[#allocation214_spill] sm:$0xff]  ;;  %v10343_v44 = vld [vmem:[#allocation27_spill] sm:$0xff] }
 0x4cf   : > { %5678 = vmatpush3.bf16.msk.msra.mxu1 %vm5431_vm8, %v10102_v48  ;;  %v8662_v27 = vpop.permute.xlu1 %2946  ;;  %vm5433_vm8 = vmpackc.low %vm3290_vm13, %vm3289_vm9  ;;  %vm3292_vm9 = vcmp.eq.s32.totalorder %v10317_v25, %v8421_v4  ;;  %vm1695_vm13 = vcmp.eq.s32.totalorder %v10319_v19, %v10298_v15  ;;  %v10340_v19 = vld [vmem:[#allocation131_spill] sm:$0xff] }
 0x4d0   : > { %5679 = vmatprep.subr.msk.bf16.mxu1 %vm5449_vm14, %v10102_v48  ;;  %3159 = vperm.xlu1 %5838, %v736_v60   ;;  %vm3309_vm14 = vcmp.eq.s32.totalorder %v10316_v56, %v8421_v4  ;;  %vm5435_vm1 = vmpackc.low %vm3292_vm9, %vm3291_vm3  ;;  %v4994_v16 = vsel %vm1695_vm13, 1.0, %v10307_v61  ;;  %vm3294_vm3 = vcmp.eq.s32.totalorder %v10322_v62, %v8421_v4  ;;  %vm1697_vm9 = vcmp.eq.s32.totalorder %v10324_v37, %v10298_v15  ;;  %v10346_v37 = vld [vmem:[#allocation159_spill] sm:$0xff] }
 0x4d1   : > { %vm5437_vm0 = vmpackc.low %vm3294_vm3, %vm3293_vm12  ;;  %v2373_v60 = vpack.c.bf16 %v4995_v40, %v4994_v16  ;;  %v4996_v5 = vsel %vm1697_vm9, 1.0, %v10307_v61  ;;  %vm3312_vm12 = vcmp.eq.s32.totalorder %v10327_v24, %v8421_v4  ;;  %vm1699_vm3 = vcmp.eq.s32.totalorder %v10329_v20, %v10298_v15  ;;  %v10344_v40 = vld [vmem:[#allocation188_spill] sm:$0xff] }
 0x4d2   : > { %4217 = vxpose.xlu0.c.b16.end [8/8] (narrow) %v10314_v10, 32  ;;  %vm3313_vm9 = vcmp.eq.s32.totalorder %v10332_v53, %v8421_v4  ;;  %v4998_v9 = vsel %vm1699_vm3, 1.0, %v10307_v61  ;;  %v10335_v10 = vld [vmem:[#allocation130_spill] sm:$0xff]  ;;  %v10350_v24 = vld [vmem:[#allocation208_spill] sm:$0xff] }
 0x4d3   : > { %5680 = vmatpush3.bf16.msk.msra.mxu1 %vm5433_vm8, %v10102_v48  ;;  %v8684_v43 = vpop.permute.xlu1 %2952  ;;  %vm5453_vm8 = vmpackc.low %vm3310_vm4, %vm3309_vm14  ;;  %vm1698_vm14 = vcmp.eq.s32.totalorder %v10323_v33, %v10298_v15  ;;  %vm3360_vm4 = vcmp.eq.s32.totalorder %v10325_v21, %v8421_v4  ;;  %v10345_v33 = vld [vmem:[#allocation207_spill] sm:$0xff]  ;;  %v10347_v21 = vld [vmem:[#allocation133_spill] sm:$0xff] }
 0x4d4   : > { %5681 = vmatprep.subr.msk.bf16.mxu1 %vm5451_vm2, %v10102_v48  ;;  %3162 = vperm.xlu1 %5838, %v737_v63   ;;  %vm3359_vm2 = vcmp.eq.s32.totalorder %v2941_v32, %v8421_v4  ;;  %v10326_v32 = vld [vmem:[#allocation21_spill] sm:$0xff]  ;;  %v4997_v13 = vsel %vm1698_vm14, 1.0, %v10307_v61  ;;  %v10353_v20 = vld [vmem:[#allocation216_spill] sm:$0xff] }
 0x4d5   : > { %vm3311_vm13 = vcmp.eq.s32.totalorder %v10326_v32, %v8421_v4  ;;  %v2374_v63 = vpack.c.bf16 %v4997_v13, %v4996_v5  ;;  %v10348_v32 = vld [vmem:[#allocation215_spill] sm:$0xff] }
 0x4d6   : > { %4258 = vxpose.xlu0.c.b16.start [1/8] (narrow) %v2371_v42, 32  ;;  %vm5455_vm14 = vmpackc.low %vm3312_vm12, %vm3311_vm13  ;;  %vm3314_vm13 = vcmp.eq.s32.totalorder %v10333_v29, %v8421_v4  ;;  %vm1701_vm12 = vcmp.eq.s32.totalorder %v10335_v10, %v10298_v15  ;;  %v10337_v42 = vld [vmem:[#allocation25_spill] sm:$0xff] }
 0x4d7   : > { %5682 = vmatpush3.bf16.msk.msra.mxu1 %vm5435_vm1, %v10102_v48  ;;  %v8706_v17 = vpop.permute.xlu1 %2958  ;;  %vm5503_vm1 = vmpackc.low %vm3360_vm4, %vm3359_vm2  ;;  %vm1700_vm2 = vcmp.eq.s32.totalorder %v10328_v35, %v10298_v15  ;;  %vm3330_vm4 = vcmp.eq.s32.totalorder %v10330_v38, %v8421_v4  ;;  %vm3315_vm3 = vcmp.eq.s32.totalorder %v10337_v42, %v8421_v4  ;;  %v5000_v25 = vsel %vm1701_vm12, 1.0, %v10307_v61  ;;  %v10352_v35 = vld [vmem:[#allocation148_spill] sm:$0xff]  ;;  %v10358_v29 = vld [vmem:[#allocation217_spill] sm:$0xff] }
 0x4d8   : > { %5683 = vmatprep.subr.msk.bf16.mxu1 %vm5453_vm8, %v10102_v48  ;;  %3114 = vperm.xlu1 %5838, %v721_v31   ;;  %vm3329_vm8 = vcmp.eq.s32.totalorder %v8388_v23, %v8421_v4  ;;  %v4999_v51 = vsel %vm1700_vm2, 1.0, %v10307_v61  ;;  %v725_v23 = vld [vmem:[%s7275_s23 + $0x770] sm:$0xff]  ;;  %vm5457_vm2 = vmpackc.low %vm3314_vm13, %vm3313_vm9  ;;  %v10338_v31 = vld [vmem:[#allocation206_spill] sm:$0xff]  ;;  %vm1703_vm13 = vcmp.eq.s32.totalorder %v10340_v19, %v10298_v15 }
 0x4d9   : > { %v2375_v14 = vpack.c.bf16 %v4999_v51, %v4998_v9  ;;  %vm3316_vm9 = vcmp.eq.s32.totalorder %v10338_v31, %v8421_v4  ;;  %v10356_v51 = vld [vmem:[#allocation184_spill] sm:$0xff]  ;;  %v10357_v9 = vld [vmem:[#allocation150_spill] sm:$0xff] }
 0x4da   : > { %4259 = vxpose.xlu0.c.b16.cont [2/8] (narrow) %v2372_v26, 32  ;;  %v10360_v42 = vld [vmem:[#allocation210_spill] sm:$0xff] }
 0x4db   : > { %5684 = vmatpush3.bf16.msk.msra.mxu1 %vm5437_vm0, %v10102_v48  ;;  %v8727_v12 = vpop.permute.xlu1 %2964  ;;  %vm5473_vm0 = vmpackc.low %vm3330_vm4, %vm3329_vm8  ;;  %vm1702_vm8 = vcmp.eq.s32.totalorder %v10334_v28, %v10298_v15  ;;  %vm3332_vm4 = vcmp.eq.s32.totalorder %v10336_v39, %v8421_v4 }
 0x4dc   : > { %5725 = vmatprep.subr.msk.bf16.mxu1 %vm5503_vm1, %v10102_v48  ;;  %3168 = vperm.xlu1 %5838, %v739_v7   ;;  %v4170_v30 = vpop.trf.xlu0  ;;  %vm3331_vm1 = vcmp.eq.s32.totalorder %v8396_v41, %v8421_v4  ;;  %v5001_v6 = vsel %vm1702_vm8, 1.0, %v10307_v61  ;;  %v726_v41 = vld [vmem:[%s7275_s23 + $0x778] sm:$0xff]  ;;  %vm3317_vm8 = vcmp.eq.s32.totalorder %v10343_v44, %v8421_v4  ;;  %v5002_v7 = vsel %vm1703_vm13, 1.0, %v10307_v61 }
 0x4dd   : > { %4466 = vmatprep.mubr.bf16.mxu0 %v4170_v30  ;;  %v2376_v16 = vpack.c.bf16 %v5001_v6, %v5000_v25  ;;  %v10362_v6 = vld [vmem:[#allocation151_spill] sm:$0xff]  ;;  %v10366_v44 = vld [vmem:[#allocation153_spill] sm:$0xff] }
 0x4de   : > { %4260 = vxpose.xlu0.c.b16.cont [3/8] (narrow) %v2373_v60, 32  ;;  %4467 = vmatmul.mubr.bf16.vlgmr.msra.gmra.mrb[8].mxu0 %v10331_v54  ;;  %v10363_v25 = vld [vmem:[#allocation35_spill] sm:$0xff] }
 0x4df   : > { %5698 = vmatpush3.bf16.msk.msra.mxu0 %vm5455_vm14, %v10102_v48  ;;  %v8753_v59 = vpop.permute.xlu1 %2970  ;;  %vm5475_vm14 = vmpackc.low %vm3332_vm4, %vm3331_vm1  ;;  %vm1704_vm1 = vcmp.eq.s32.totalorder %v10339_v2, %v10298_v15  ;;  %vm3334_vm4 = vcmp.eq.s32.totalorder %v10341_v46, %v8421_v4  ;;  %v10364_v46 = vld [vmem:[#allocation211_spill] sm:$0xff] }
 0x4e0   : > { %5699 = vmatprep.subr.msk.bf16.mxu0 %vm5473_vm0, %v10102_v48  ;;  %3120 = vperm.xlu1 %5838, %v723_v49   ;;  %v4171_v58 = vpop.trf.xlu0  ;;  %vm3333_vm0 = vcmp.eq.s32.totalorder %v8402_v52, %v8421_v4  ;;  %v10342_v52 = vld [vmem:[#allocation111_spill] sm:$0xff]  ;;  %v5003_v62 = vsel %vm1704_vm1, 1.0, %v10307_v61  ;;  %v10351_v49 = vld [vmem:[#allocation182_spill] sm:$0xff] }
 0x4e1   : > { %4474 = vmatprep.mubr.bf16.mxu0 %v4171_v58  ;;  %vm5477_vm12 = vmpackc.low %vm3334_vm4, %vm3333_vm0  ;;  %vm1706_vm0 = vcmp.eq.s32.totalorder %v10346_v37, %v10298_v15  ;;  %vm3336_vm4 = vcmp.eq.s32.totalorder %v10348_v32, %v8421_v4  ;;  %v2377_v30 = vpack.c.bf16 %v5003_v62, %v5002_v7  ;;  %v10355_v58 = vld [vmem:[#allocation209_spill] sm:$0xff]  ;;  %v10368_v37 = vld [vmem:[#allocation54_spill] sm:$0xff] }
 0x4e2   : > { %4261 = vxpose.xlu0.c.b16.cont [4/8] (narrow) %v2374_v63, 32  ;;  %v5005_v13 = vsel %vm1706_vm0, 1.0, %v10307_v61 }
 0x4e3   : > { %5700 = vmatpush3.bf16.msk.msra.mxu0 %vm5457_vm2, %v10102_v48  ;;  %v8778_v56 = vpop.permute.xlu1 %2976  ;;  %vm5459_vm2 = vmpackc.low %vm3316_vm9, %vm3315_vm3  ;;  %vm3318_vm3 = vcmp.eq.s32.totalorder %v10345_v33, %v8421_v4  ;;  %vm1705_vm9 = vcmp.eq.s32.totalorder %v10347_v21, %v10298_v15  ;;  %v10367_v33 = vld [vmem:[#allocation218_spill] sm:$0xff]  ;;  %v10370_v21 = vld [vmem:[#allocation223_spill] sm:$0xff] }
 0x4e4   : > { %5701 = vmatprep.subr.msk.bf16.mxu0 %vm5475_vm14, %v10102_v48  ;;  %3126 = vperm.xlu1 %5838, %v725_v23   ;;  %vm3335_vm14 = vcmp.eq.s32.totalorder %v8416_v3, %v8421_v4  ;;  %v10349_v3 = vld [vmem:[#allocation29_spill] sm:$0xff]  ;;  %v5004_v5 = vsel %vm1705_vm9, 1.0, %v10307_v61  ;;  %vm3339_vm9 = vcmp.eq.s32.totalorder %v8453_v34, %v8421_v4 }
 0x4e5   : > { %vm3319_vm1 = vcmp.eq.s32.totalorder %v10349_v3, %v8421_v4  ;;  %vm5479_vm13 = vmpackc.low %vm3336_vm4, %vm3335_vm14  ;;  %vm1724_vm14 = vcmp.eq.s32.totalorder %v10351_v49, %v10298_v15  ;;  %vm3338_vm4 = vcmp.eq.s32.totalorder %v10353_v20, %v8421_v4  ;;  %v2378_v54 = vpack.c.bf16 %v5005_v13, %v5004_v5  ;;  %v10359_v34 = vld [vmem:[#allocation33_spill] sm:$0xff]  ;;  %v10373_v49 = vld [vmem:[#allocation55_spill] sm:$0xff] }
 0x4e6   : > { %4262 = vxpose.xlu0.c.b16.cont [5/8] (narrow) %v2375_v14, 32  ;;  %4475 = vmatmul.mubr.bf16.gmra.mrb[12].mxu0 %v10342_v52  ;;  %v5023_v53 = vsel %vm1724_vm14, 1.0, %v10307_v61  ;;  %v10361_v14 = vld [vmem:[#allocation51_spill] sm:$0xff]  ;;  %v10365_v52 = vld [vmem:[#allocation53_spill] sm:$0xff]  ;;  %v10375_v20 = vld [vmem:[#allocation224_spill] sm:$0xff] }
 0x4e7   : > { %5702 = vmatpush3.bf16.msk.msra.mxu0 %vm5459_vm2, %v10102_v48  ;;  %v8801_v26 = vpop.permute.xlu1 %2982  ;;  %4562 = vmatprep.mubr.bf16.mxu0 %v10344_v40  ;;  %vm5461_vm2 = vmpackc.low %vm3318_vm3, %vm3317_vm8  ;;  %vm3320_vm8 = vcmp.eq.s32.totalorder %v10350_v24, %v8421_v4  ;;  %vm1723_vm3 = vcmp.eq.s32.totalorder %v10352_v35, %v10298_v15  ;;  %v10372_v24 = vld [vmem:[#allocation122_spill] sm:$0xff]  ;;  %v10374_v35 = vld [vmem:[#allocation156_spill] sm:$0xff] }
 0x4e8   : > { %5703 = vmatprep.subr.msk.bf16.mxu0 %vm5477_vm12, %v10102_v48  ;;  %3129 = vperm.xlu1 %5838, %v726_v41   ;;  %vm3337_vm12 = vcmp.eq.s32.totalorder %v8437_v47, %v8421_v4  ;;  %v10354_v47 = vld [vmem:[#allocation31_spill] sm:$0xff]  ;;  %v5022_v63 = vsel %vm1723_vm3, 1.0, %v10307_v61  ;;  %vm3324_vm3 = vcmp.eq.s32.totalorder %v10360_v42, %v8421_v4 }
 0x4e9   : > { %vm5481_vm0 = vmpackc.low %vm3338_vm4, %vm3337_vm12  ;;  %vm1726_vm12 = vcmp.eq.s32.totalorder %v10356_v51, %v10298_v15  ;;  %vm3340_vm4 = vcmp.eq.s32.totalorder %v10358_v29, %v8421_v4  ;;  %v2387_v28 = vpack.c.bf16 %v5023_v53, %v5022_v63  ;;  %v10378_v53 = vld [vmem:[#allocation114_spill] sm:$0xff] }
 0x4ea   : > { %4263 = vxpose.xlu0.c.b16.cont [6/8] (narrow) %v2376_v16, 32  ;;  %vm5483_vm14 = vmpackc.low %vm3340_vm4, %vm3339_vm9  ;;  %v5025_v10 = vsel %vm1726_vm12, 1.0, %v10307_v61  ;;  %vm1727_vm9 = vcmp.eq.s32.totalorder %v10362_v6, %v10298_v15  ;;  %vm3325_vm4 = vcmp.eq.s32.totalorder %v10363_v25, %v8421_v4  ;;  %vm3326_vm12 = vcmp.eq.s32.totalorder %v10364_v46, %v8421_v4  ;;  %v10384_v6 = vld [vmem:[#allocation127_spill] sm:$0xff]  ;;  %v10385_v46 = vld [vmem:[#allocation57_spill] sm:$0xff] }
 0x4eb   : > { %5704 = vmatpush3.bf16.msk.msra.mxu0 %vm5461_vm2, %v10102_v48  ;;  %v8823_v60 = vpop.permute.xlu1 %2988  ;;  %vm5463_vm2 = vmpackc.low %vm3320_vm8, %vm3319_vm1  ;;  %vm3322_vm1 = vcmp.eq.s32.totalorder %v10355_v58, %v8421_v4  ;;  %vm1725_vm8 = vcmp.eq.s32.totalorder %v10357_v9, %v10298_v15  ;;  %v5026_v19 = vsel %vm1727_vm9, 1.0, %v10307_v61  ;;  %v10379_v9 = vld [vmem:[#allocation219_spill] sm:$0xff] }
 0x4ec   : > { %5705 = vmatprep.subr.msk.bf16.mxu0 %vm5479_vm13, %v10102_v48  ;;  %vm3321_vm13 = vcmp.eq.s32.totalorder %v10354_v47, %v8421_v4  ;;  %v5024_v39 = vsel %vm1725_vm8, 1.0, %v10307_v61  ;;  %vm1730_vm8 = vcmp.eq.s32.totalorder %v10365_v52, %v10298_v15  ;;  %v10386_v52 = vld [vmem:[#allocation160_spill] sm:$0xff] }
 0x4ed   : > { %v2388_v41 = vpack.c.bf16 %v5025_v10, %v5024_v39  ;;  %v5029_v62 = vsel %vm1730_vm8, 1.0, %v10307_v61  ;;  %vm3363_vm8 = vcmp.eq.s32.totalorder %v8684_v43, %v8421_v4  ;;  %v10376_v43 = vld [vmem:[#allocation113_spill] sm:$0xff]  ;;  %v10383_v39 = vld [vmem:[#allocation186_spill] sm:$0xff] }
 0x4ee   : > { %4264 = vxpose.xlu0.c.b16.cont [7/8] (narrow) %v2377_v30, 32  ;;  %v10382_v10 = vld [vmem:[#allocation225_spill] sm:$0xff] }
 0x4ef   : > { %5706 = vmatpush3.bf16.msk.msra.mxu0 %vm5463_vm2, %v10102_v48  ;;  %v8841_v38 = vpop.permute.xlu1 %2994  ;;  %vm5465_vm2 = vmpackc.low %vm3322_vm1, %vm3321_vm13  ;;  %vm1728_vm13 = vcmp.eq.s32.totalorder %v10361_v14, %v10298_v15 }
 0x4f0   : > { %5707 = vmatprep.subr.msk.bf16.mxu0 %vm5481_vm0, %v10102_v48  ;;  %vm3323_vm0 = vcmp.eq.s32.totalorder %v10359_v34, %v8421_v4  ;;  %v5027_v2 = vsel %vm1728_vm13, 1.0, %v10307_v61  ;;  %vm1732_vm13 = vcmp.eq.s32.totalorder %v10368_v37, %v10298_v15  ;;  %v10380_v34 = vld [vmem:[#allocation56_spill] sm:$0xff] }
 0x4f1   : > { %vm5467_vm1 = vmpackc.low %vm3324_vm3, %vm3323_vm0  ;;  %v2389_v40 = vpack.c.bf16 %v5027_v2, %v5026_v19  ;;  %vm3344_vm3 = vcmp.eq.s32.totalorder %v10367_v33, %v8421_v4  ;;  %v5031_v13 = vsel %vm1732_vm13, 1.0, %v10307_v61  ;;  %vm3347_vm13 = vcmp.eq.s32.totalorder %v8528_v55, %v8421_v4  ;;  %v10390_v33 = vld [vmem:[#allocation4_spill] sm:$0xff] }
 0x4f2   : > { %4265 = vxpose.xlu0.c.b16.end [8/8] (narrow) %v2378_v54, 32  ;;  %vm5469_vm0 = vmpackc.low %vm3326_vm12, %vm3325_vm4  ;;  %v10377_v54 = vld [vmem:[#allocation124_spill] sm:$0xff] }
 0x4f3   : > { %5708 = vmatpush3.bf16.msk.msra.mxu0 %vm5465_vm2, %v10102_v48  ;;  %v8859_v23 = vpop.permute.xlu1 %3000  ;;  %vm1729_vm2 = vcmp.eq.s32.totalorder %v10366_v44, %v10298_v15  ;;  %v10391_v37 = vld [vmem:[#allocation116_spill] sm:$0xff] }
 0x4f4   : > { %5709 = vmatprep.subr.msk.bf16.mxu0 %vm5483_vm14, %v10102_v48  ;;  %vm3343_vm14 = vcmp.eq.s32.totalorder %v8491_v0, %v8421_v4  ;;  %v5028_v7 = vsel %vm1729_vm2, 1.0, %v10307_v61  ;;  %v10369_v0 = vld [vmem:[#allocation155_spill] sm:$0xff]  ;;  %vm1676_vm2 = vcmp.eq.s32.totalorder %v10372_v24, %v10298_v15 }
 0x4f5   : > { %vm1731_vm9 = vcmp.eq.s32.totalorder %v10369_v0, %v10298_v15  ;;  %vm5487_vm4 = vmpackc.low %vm3344_vm3, %vm3343_vm14  ;;  %v2390_v3 = vpack.c.bf16 %v5029_v62, %v5028_v7  ;;  %vm1733_vm14 = vcmp.eq.s32.totalorder %v10374_v35, %v10298_v15  ;;  %vm1675_vm3 = vcmp.eq.s32.totalorder %v10376_v43, %v10298_v15 }
 0x4f6   : > { %4290 = vxpose.xlu0.c.b16.start [1/8] (narrow) %v2387_v28, 32  ;;  %v5030_v5 = vsel %vm1731_vm9, 1.0, %v10307_v61  ;;  %v4975_v58 = vsel %vm1676_vm2, 1.0, %v10307_v61  ;;  %v5032_v36 = vsel %vm1733_vm14, 1.0, %v10307_v61  ;;  %v4974_v29 = vsel %vm1675_vm3, 1.0, %v10307_v61  ;;  %v10381_v28 = vld [vmem:[#allocation158_spill] sm:$0xff] }
 0x4f7   : > { %5710 = vmatpush3.bf16.msk.msra.mxu0 %vm5467_vm1, %v10102_v48  ;;  %v8873_v31 = vpop.permute.xlu1 %3006  ;;  %vm3362_vm1 = vcmp.eq.s32.totalorder %v10370_v21, %v8421_v4  ;;  %v2391_v63 = vpack.c.bf16 %v5031_v13, %v5030_v5  ;;  %vm1680_vm14 = vcmp.eq.s32.totalorder %v10384_v6, %v10298_v15  ;;  %vm3367_vm3 = vcmp.eq.s32.totalorder %v8727_v12, %v8421_v4  ;;  %v10387_v12 = vld [vmem:[#allocation226_spill] sm:$0xff]  ;;  %v10392_v21 = vld [vmem:[#allocation220_spill] sm:$0xff]  ;;  %v10395_v13 = vld [vmem:[#allocation227_spill] sm:$0xff] }
 0x4f8   : > { %5711 = vmatprep.subr.msk.bf16.mxu0 %vm8478_vm5, %v10102_v48  ;;  %vm3361_vm5 = vcmp.eq.s32.totalorder %v8662_v27, %v8421_v4  ;;  %v10371_v27 = vld [vmem:[#allocation112_spill] sm:$0xff]  ;;  %v4979_v44 = vsel %vm1680_vm14, 1.0, %v10307_v61  ;;  %vm1681_vm14 = vcmp.eq.s32.totalorder %v10391_v37, %v10298_v15  ;;  %v9136_v37 = vld [vmem:[%s9611_s0] ss:$0 sm:$0xff] }
 0x4f9   : > { %vm5505_vm12 = vmpackc.low %vm3362_vm1, %vm3361_vm5  ;;  %vm3364_vm5 = vcmp.eq.s32.totalorder %v10375_v20, %v8421_v4  ;;  %vm1678_vm1 = vcmp.eq.s32.totalorder %v10377_v54, %v10298_v15  ;;  %v10397_v20 = vld [vmem:[#allocation117_spill] sm:$0xff] }
 0x4fa   : > { %4291 = vxpose.xlu0.c.b16.cont [2/8] (narrow) %v2388_v41, 32  ;;  %vm5507_vm9 = vmpackc.low %vm3364_vm5, %vm3363_vm8  ;;  %vm1736_vm8 = vcmp.eq.s32.totalorder %v10380_v34, %v10298_v15  ;;  %vm1735_vm5 = vcmp.eq.s32.totalorder %v10381_v28, %v10298_v15  ;;  %v4977_v42 = vsel %vm1678_vm1, 1.0, %v10307_v61  ;;  %v2363_v41 = vpack.c.bf16 %v4975_v58, %v4974_v29  ;;  %v10401_v29 = vld [vmem:[#allocation134_spill] sm:$0xff] }
 0x4fb   : > { %5712 = vmatpush3.bf16.msk.msra.mxu0 %vm5469_vm0, %v10102_v48  ;;  %v8889_v45 = vpop.permute.xlu1 %3012  ;;  %vm1734_vm0 = vcmp.eq.s32.totalorder %v10373_v49, %v10298_v15  ;;  %v5034_v2 = vsel %vm1735_vm5, 1.0, %v10307_v61  ;;  %vm1737_vm1 = vcmp.eq.s32.totalorder %v10386_v52, %v10298_v15  ;;  %v10396_v49 = vld [vmem:[#allocation132_spill] sm:$0xff]  ;;  %v10402_v28 = vld [vmem:[#allocation118_spill] sm:$0xff] }
 0x4fc   : > { %v4202_v16 = vpop.trf.xlu0  ;;  %v5033_v51 = vsel %vm1734_vm0, 1.0, %v10307_v61  ;;  %v5036_v0 = vsel %vm1737_vm1, 1.0, %v10307_v61 }
 0x4fd   : > { %4514 = vmatprep.mubr.bf16.mxu1 %v4202_v16  ;;  %v2392_v25 = vpack.c.bf16 %v5033_v51, %v5032_v36  ;;  %v10389_v16 = vld [vmem:[#allocation129_spill] sm:$0xff] }
 0x4fe   : > { %4292 = vxpose.xlu0.c.b16.cont [3/8] (narrow) %v2389_v40, 32  ;;  %4515 = vmatmul.mubr.bf16.vlgmr.msra.gmra.mrb[8].mxu1 %v10371_v27  ;;  %v10388_v40 = vld [vmem:[#allocation115_spill] sm:$0xff] }
 0x4ff   : > { %5726 = vmatpush3.bf16.msk.msra.mxu1 %vm5487_vm4, %v10102_v48  ;;  %v8905_v32 = vpop.permute.xlu1 %3018  ;;  %vm1677_vm4 = vcmp.eq.s32.totalorder %v10378_v53, %v10298_v15  ;;  %v10398_v53 = vld [vmem:[#allocation164_spill] sm:$0xff] }
 0x500   : > { %5727 = vmatprep.subr.msk.bf16.mxu1 %vm5505_vm12, %v10102_v48  ;;  %v4203_v30 = vpop.trf.xlu0  ;;  %vm3365_vm12 = vcmp.eq.s32.totalorder %v8706_v17, %v8421_v4  ;;  %v4976_v14 = vsel %vm1677_vm4, 1.0, %v10307_v61  ;;  %v5035_v17 = vsel %vm1736_vm8, 1.0, %v10307_v61  ;;  %vm3368_vm4 = vcmp.eq.s32.totalorder %v10387_v12, %v8421_v4  ;;  %v10409_v12 = vld [vmem:[#allocation169_spill] sm:$0xff] }
 0x501   : > { %4522 = vmatprep.mubr.bf16.mxu1 %v4203_v30  ;;  %v2364_v19 = vpack.c.bf16 %v4977_v42, %v4976_v14  ;;  %vm3351_vm8 = vcmp.eq.s32.totalorder %v8565_v1, %v8421_v4  ;;  %vm5511_vm5 = vmpackc.low %vm3368_vm4, %vm3367_vm3  ;;  %v2393_v7 = vpack.c.bf16 %v5035_v17, %v5034_v2  ;;  %v10394_v30 = vld [vmem:[#allocation135_spill] sm:$0xff]  ;;  %v4980_v1 = vsel %vm1681_vm14, 1.0, %v10307_v61  ;;  %v10405_v42 = vld [vmem:[#allocation138_spill] sm:$0xff] }
 0x502   : > { %4293 = vxpose.xlu0.c.b16.cont [4/8] (narrow) %v2390_v3, 32  ;;  %v10393_v3 = vld [vmem:[#allocation162_spill] sm:$0xff]  ;;  %v10406_v14 = vld [vmem:[#allocation229_spill] sm:$0xff] }
 0x503   : > { %5728 = vmatpush3.bf16.msk.msra.mxu1 %vm8515_vm7, %v10102_v48  ;;  %v8927_v47 = vpop.permute.xlu1 %3024  ;;  %vm3348_vm7 = vcmp.eq.s32.totalorder %v10379_v9, %v8421_v4  ;;  %vm1708_vm4 = vcmp.eq.s32.totalorder %v10393_v3, %v10298_v15  ;;  %v10413_v3 = vld [vmem:[#allocation6_spill] sm:$0xff] }
 0x504   : > { %5729 = vmatprep.subr.msk.bf16.mxu1 %vm5507_vm9, %v10102_v48  ;;  %vm3366_vm9 = vcmp.eq.s32.totalorder %v10382_v10, %v8421_v4  ;;  %vm5491_vm2 = vmpackc.low %vm3348_vm7, %vm3347_vm13  ;;  %vm1738_vm13 = vcmp.eq.s32.totalorder %v10385_v46, %v10298_v15  ;;  %vm1682_vm7 = vcmp.eq.s32.totalorder %v10389_v16, %v10298_v15  ;;  %v5007_v43 = vsel %vm1708_vm4, 1.0, %v10307_v61 }
 0x505   : > { %vm5509_vm0 = vmpackc.low %vm3366_vm9, %vm3365_vm12  ;;  %vm1679_vm12 = vcmp.eq.s32.totalorder %v10388_v40, %v10298_v15  ;;  %vm3392_vm9 = vcmp.eq.s32.totalorder %v10390_v33, %v8421_v4  ;;  %v5037_v11 = vsel %vm1738_vm13, 1.0, %v10307_v61  ;;  %vm1707_vm13 = vcmp.eq.s32.totalorder %v10394_v30, %v10298_v15  ;;  %v10414_v30 = vld [vmem:[#allocation172_spill] sm:$0xff] }
 0x506   : > { %4294 = vxpose.xlu0.c.b16.cont [5/8] (narrow) %v2391_v63, 32  ;;  %4523 = vmatmul.mubr.bf16.gmra.mrb[12].mxu1 %v10383_v39  ;;  %v4978_v27 = vsel %vm1679_vm12, 1.0, %v10307_v61  ;;  %v4981_v5 = vsel %vm1682_vm7, 1.0, %v10307_v61  ;;  %v2394_v35 = vpack.c.bf16 %v5037_v11, %v5036_v0  ;;  %vm3371_vm7 = vcmp.eq.s32.totalorder %v8778_v56, %v8421_v4  ;;  %v10399_v56 = vld [vmem:[#allocation136_spill] sm:$0xff]  ;;  %v10403_v39 = vld [vmem:[#allocation221_spill] sm:$0xff]  ;;  %v10411_v11 = vld [vmem:[#allocation230_spill] sm:$0xff] }
 0x507   : > { %5730 = vmatpush3.bf16.msk.msra.mxu1 %vm5491_vm2, %v10102_v48  ;;  %v8964_v55 = vpop.permute.xlu1 %3030  ;;  %vm3369_vm2 = vcmp.eq.s32.totalorder %v8753_v59, %v8421_v4  ;;  %v2365_v59 = vpack.c.bf16 %v4979_v44, %v4978_v27  ;;  %v5006_v54 = vsel %vm1707_vm13, 1.0, %v10307_v61  ;;  %v10400_v63 = vld [vmem:[#allocation228_spill] sm:$0xff]  ;;  %v2366_v58 = vpack.c.bf16 %v4981_v5, %v4980_v1  ;;  %v10417_v5 = vld [vmem:[#allocation190_spill] sm:$0xff] }
 0x508   : > { %5731 = vmatprep.subr.msk.bf16.mxu1 %vm5509_vm0, %v10102_v48  ;;  %vm3372_vm14 = vcmp.eq.s32.totalorder %v10400_v63, %v8421_v4  ;;  %vm1686_vm4 = vcmp.eq.s32.totalorder %v10401_v29, %v10298_v15  ;;  %v2379_v34 = vpack.c.bf16 %v5007_v43, %v5006_v54  ;;  %vm3373_vm13 = vcmp.eq.s32.totalorder %v8801_v26, %v8421_v4  ;;  %v10404_v26 = vld [vmem:[#allocation167_spill] sm:$0xff]  ;;  %v10410_v44 = vld [vmem:[#allocation140_spill] sm:$0xff]  ;;  %v10422_v63 = vld [vmem:[#allocation177_spill] sm:$0xff] }
 0x509   : > { %v10419_v43 = vld [vmem:[#allocation8_spill] sm:$0xff]  ;;  %v10425_v29 = vld [vmem:[#allocation175_spill] sm:$0xff] }
 0x50a   : > { %4295 = vxpose.xlu0.c.b16.cont [6/8] (narrow) %v2392_v25, 32 }
 0x50b   : > { %5732 = vmatpush3.bf16.msk.msra.mxu1 %vm8552_vm11, %v10102_v48  ;;  %v3037_v62 = vpop.permute.xlu1 %3036  ;;  %4242 = vxpose.xlu1.c.b16.start [1/8] (narrow) %v2363_v41, 32  ;;  %vm3352_vm11 = vcmp.eq.s32.totalorder %v10392_v21, %v8421_v4  ;;  %v4985_v41 = vsel %vm1686_vm4, 1.0, %v10307_v61 }
 0x50c   : > { %vm3391_vm0 = vcmp.eq.s32.totalorder %v3037_v62, %v8421_v4  ;;  %5733 = vmatprep.subr.msk.bf16.mxu1 %vm5511_vm5, %v10102_v48  ;;  %vm3370_vm5 = vcmp.eq.s32.totalorder %v10395_v13, %v8421_v4  ;;  %vm5495_vm1 = vmpackc.low %vm3352_vm11, %vm3351_vm8  ;;  %vm1684_vm8 = vcmp.eq.s32.totalorder %v10396_v49, %v10298_v15  ;;  %vm3355_vm11 = vcmp.eq.s32.totalorder %v8606_v57, %v8421_v4  ;;  %v10407_v57 = vld [vmem:[#allocation137_spill] sm:$0xff] }
 0x50d   : > { %vm5535_vm3 = vmpackc.low %vm3392_vm9, %vm3391_vm0  ;;  %vm1683_vm9 = vcmp.eq.s32.totalorder %v10397_v20, %v10298_v15  ;;  %vm1709_vm0 = vcmp.eq.s32.totalorder %v10399_v56, %v10298_v15  ;;  %v4983_v51 = vsel %vm1684_vm8, 1.0, %v10307_v61  ;;  %vm3374_vm8 = vcmp.eq.s32.totalorder %v10406_v14, %v8421_v4  ;;  %v10415_v13 = vld [vmem:[#allocation141_spill] sm:$0xff]  ;;  %v10421_v56 = vld [vmem:[#allocation143_spill] sm:$0xff] }
 0x50e   : > { %4296 = vxpose.xlu0.c.b16.cont [7/8] (narrow) %v2393_v7, 32  ;;  %5753 = vmatprep.subr.msk.bf16.mxu0 %vm5535_vm3, %v10102_v48  ;;  %vm5513_vm12 = vmpackc.low %vm3370_vm5, %vm3369_vm2  ;;  %vm1710_vm2 = vcmp.eq.s32.totalorder %v10398_v53, %v10298_v15  ;;  %v4982_v9 = vsel %vm1683_vm9, 1.0, %v10307_v61  ;;  %vm1685_vm5 = vcmp.eq.s32.totalorder %v10402_v28, %v10298_v15  ;;  %v5008_v10 = vsel %vm1709_vm0, 1.0, %v10307_v61  ;;  %v10420_v53 = vld [vmem:[#allocation174_spill] sm:$0xff]  ;;  %v10428_v14 = vld [vmem:[#allocation179_spill] sm:$0xff] }
 0x50f   : > { %5734 = vmatpush3.bf16.msk.msra.mxu1 %vm5495_vm1, %v10102_v48  ;;  %v9035_v24 = vpop.permute.xlu1 %3042  ;;  %4243 = vxpose.xlu1.c.b16.cont [2/8] (narrow) %v2364_v19, 32  ;;  %vm5515_vm3 = vmpackc.low %vm3372_vm14, %vm3371_vm7  ;;  %v5009_v8 = vsel %vm1710_vm2, 1.0, %v10307_v61  ;;  %vm1712_vm1 = vcmp.eq.s32.totalorder %v10404_v26, %v10298_v15  ;;  %v2367_v25 = vpack.c.bf16 %v4983_v51, %v4982_v9  ;;  %v4984_v17 = vsel %vm1685_vm5, 1.0, %v10307_v61  ;;  %v10408_v19 = vld [vmem:[#allocation119_spill] sm:$0xff] }
 0x510   : > { %5735 = vmatprep.subr.msk.bf16.mxu1 %vm5513_vm12, %v10102_v48  ;;  %vm1711_vm12 = vcmp.eq.s32.totalorder %v10405_v42, %v10298_v15  ;;  %vm5517_vm9 = vmpackc.low %vm3374_vm8, %vm3373_vm13  ;;  %v2380_v2 = vpack.c.bf16 %v5009_v8, %v5008_v10  ;;  %vm1688_vm2 = vcmp.eq.s32.totalorder %v10407_v57, %v10298_v15  ;;  %vm1687_vm0 = vcmp.eq.s32.totalorder %v10408_v19, %v10298_v15  ;;  %v10431_v57 = vld [vmem:[#allocation176_spill] sm:$0xff]  ;;  %v10432_v19 = vld [vmem:[#allocation233_spill] sm:$0xff] }
 0x511   : > { %v5011_v46 = vsel %vm1712_vm1, 1.0, %v10307_v61  ;;  %v5010_v52 = vsel %vm1711_vm12, 1.0, %v10307_v61  ;;  %vm1714_vm14 = vcmp.eq.s32.totalorder %v10409_v12, %v10298_v15  ;;  %v2368_v40 = vpack.c.bf16 %v4985_v41, %v4984_v17  ;;  %v10433_v12 = vld [vmem:[#allocation11_spill] sm:$0xff] }
 0x512   : > { %4297 = vxpose.xlu0.c.b16.end [8/8] (narrow) %v2394_v35, 32  ;;  %vm3393_vm4 = vcmp.eq.s32.totalorder %v9035_v24, %v8421_v4  ;;  %v4987_v62 = vsel %vm1688_vm2, 1.0, %v10307_v61  ;;  %v4986_v7 = vsel %vm1687_vm0, 1.0, %v10307_v61  ;;  %v2381_v33 = vpack.c.bf16 %v5011_v46, %v5010_v52 }
 0x513   : > { %5736 = vmatpush3.bf16.msk.msra.mxu1 %vm8590_vm15, %v10102_v48  ;;  %v9068_v36 = vpop.permute.xlu1 %3048  ;;  %4244 = vxpose.xlu1.c.b16.cont [3/8] (narrow) %v2365_v59, 32  ;;  %vm3356_vm15 = vcmp.eq.s32.totalorder %v10403_v39, %v8421_v4  ;;  %vm3376_vm13 = vcmp.eq.s32.totalorder %v10411_v11, %v9136_v37  ;;  %v5013_v21 = vsel %vm1714_vm14, 1.0, %v10307_v61  ;;  %vm3394_vm5 = vcmp.eq.s32.totalorder %v10413_v3, %v9136_v37  ;;  %v10427_v39 = vld [vmem:[#allocation10_spill] sm:$0xff] }
 0x514   : > { %5737 = vmatprep.subr.msk.bf16.mxu1 %vm5515_vm3, %v10102_v48  ;;  %vm5499_vm7 = vmpackc.low %vm3356_vm15, %vm3355_vm11  ;;  %vm1713_vm11 = vcmp.eq.s32.totalorder %v10410_v44, %v10298_v15  ;;  %vm3375_vm3 = vcmp.eq.s32.totalorder %v8823_v60, %v8421_v4  ;;  %vm1716_vm1 = vcmp.eq.s32.totalorder %v10414_v30, %v10298_v15  ;;  %vm1715_vm12 = vcmp.eq.s32.totalorder %v10415_v13, %v10298_v15  ;;  %v10416_v60 = vld [vmem:[#allocation120_spill] sm:$0xff]  ;;  %v10418_v4 = vld [vmem:[#allocation231_spill] sm:$0xff] }
 0x515   : > { %v5012_v27 = vsel %vm1713_vm11, 1.0, %v10307_v61  ;;  %vm5519_vm15 = vmpackc.low %vm3376_vm13, %vm3375_vm3  ;;  %vm3377_vm8 = vcmp.eq.s32.totalorder %v8841_v38, %v9136_v37  ;;  %vm3395_vm2 = vcmp.eq.s32.totalorder %v9068_v36, %v9136_v37  ;;  %v2369_v49 = vpack.c.bf16 %v4987_v62, %v4986_v7  ;;  %v10424_v36 = vld [vmem:[#allocation66_spill] sm:$0xff]  ;;  %v10435_v62 = vld [vmem:[#allocation161_spill] sm:$0xff] }
 0x516   : > { %4274 = vxpose.xlu0.c.b16.start [1/8] (narrow) %v2379_v34, 32  ;;  %v2382_v35 = vpack.c.bf16 %v5013_v21, %v5012_v27  ;;  %vm3378_vm0 = vcmp.eq.s32.totalorder %v10418_v4, %v9136_v37  ;;  %v5015_v59 = vsel %vm1716_vm1, 1.0, %v10307_v61  ;;  %v5014_v20 = vsel %vm1715_vm12, 1.0, %v10307_v61  ;;  %v10426_v34 = vld [vmem:[#allocation232_spill] sm:$0xff]  ;;  %v10436_v11 = vld [vmem:[#allocation234_spill] sm:$0xff]  ;;  %v10439_v21 = vld [vmem:[#allocation15_spill] sm:$0xff] }
 0x517   : > { %5738 = vmatpush3.bf16.msk.msra.mxu1 %vm5499_vm7, %v10102_v48  ;;  %v9098_v6 = vpop.permute.xlu1 %3054  ;;  %4245 = vxpose.xlu1.c.b16.cont [4/8] (narrow) %v2366_v58, 32  ;;  %vm5537_vm7 = vmpackc.low %vm3394_vm5, %vm3393_vm4  ;;  %vm3396_vm14 = vcmp.eq.s32.totalorder %v10419_v43, %v9136_v37  ;;  %vm1718_vm3 = vcmp.eq.s32.totalorder %v10420_v53, %v10298_v15  ;;  %vm1717_vm4 = vcmp.eq.s32.totalorder %v10421_v56, %v10298_v15  ;;  %v10423_v58 = vld [vmem:[#allocation145_spill] sm:$0xff]  ;;  %v10440_v30 = vld [vmem:[#allocation12_spill] sm:$0xff] }
 0x518   : > { %5739 = vmatprep.subr.msk.bf16.mxu1 %vm5517_vm9, %v10102_v48  ;;  %vm1689_vm9 = vcmp.eq.s32.totalorder %v10416_v60, %v10298_v15  ;;  %vm5521_vm11 = vmpackc.low %vm3378_vm0, %vm3377_vm8  ;;  %vm3379_vm13 = vcmp.eq.s32.totalorder %v8859_v23, %v9136_v37  ;;  %vm1720_vm5 = vcmp.eq.s32.totalorder %v10422_v63, %v10298_v15  ;;  %vm3397_vm1 = vcmp.eq.s32.totalorder %v9098_v6, %v9136_v37  ;;  %v10429_v23 = vld [vmem:[#allocation146_spill] sm:$0xff]  ;;  %v10443_v60 = vld [vmem:[#allocation59_spill] sm:$0xff] }
 0x519   : > { %v4988_v54 = vsel %vm1689_vm9, 1.0, %v10307_v61  ;;  %v2383_v9 = vpack.c.bf16 %v5015_v59, %v5014_v20  ;;  %vm1756_vm12 = vcmp.eq.s32.totalorder %v10424_v36, %v10298_v15  ;;  %vm1755_vm8 = vcmp.eq.s32.totalorder %v10425_v29, %v10298_v15  ;;  %v10446_v59 = vld [vmem:[#allocation101_spill] sm:$0xff]  ;;  %v10447_v20 = vld [vmem:[#allocation180_spill] sm:$0xff] }
 0x51a   : > { %4275 = vxpose.xlu0.c.b16.cont [2/8] (narrow) %v2380_v2, 32  ;;  %v5017_v8 = vsel %vm1718_vm3, 1.0, %v10307_v61  ;;  %v5016_v10 = vsel %vm1717_vm4, 1.0, %v10307_v61  ;;  %vm3398_vm9 = vcmp.eq.s32.totalorder %v10427_v39, %v9136_v37  ;;  %v5019_v26 = vsel %vm1720_vm5, 1.0, %v10307_v61  ;;  %v10430_v2 = vld [vmem:[#allocation99_spill] sm:$0xff]  ;;  %v10448_v43 = vld [vmem:[#allocation16_spill] sm:$0xff] }
 0x51b   : > { %5740 = vmatpush3.bf16.msk.msra.mxu1 %vm8631_vm6, %v10102_v48  ;;  %v9129_v16 = vpop.permute.xlu1 %3060  ;;  %4246 = vxpose.xlu1.c.b16.cont [5/8] (narrow) %v2367_v25, 32  ;;  %vm1690_vm6 = vcmp.eq.s32.totalorder %v10412_v22, %v10298_v15  ;;  %vm1722_vm0 = vcmp.eq.s32.totalorder %v10428_v14, %v10298_v15  ;;  %vm1721_vm3 = vcmp.eq.s32.totalorder %v10429_v23, %v10298_v15  ;;  %v5055_v25 = vsel %vm1756_vm12, 1.0, %v10307_v61  ;;  %v10438_v22 = vld [vmem:[#allocation178_spill] sm:$0xff]  ;;  %v10449_v56 = vld [vmem:[#allocation13_spill] sm:$0xff]  ;;  %v10452_v63 = vld [vmem:[#allocation60_spill] sm:$0xff] }
 0x51c   : > { %v4218_v0 = vpop.trf.xlu0  ;;  %v4989_v24 = vsel %vm1690_vm6, 1.0, %v10307_v61  ;;  %vm5539_vm6 = vmpackc.low %vm3396_vm14, %vm3395_vm2  ;;  %vm3381_vm14 = vcmp.eq.s32.totalorder %v8873_v31, %v9136_v37  ;;  %v5054_v41 = vsel %vm1755_vm8, 1.0, %v10307_v61  ;;  %vm3399_vm4 = vcmp.eq.s32.totalorder %v9129_v16, %v9136_v37  ;;  %v10461_v23 = vld [vmem:[#allocation61_spill] sm:$0xff] }
 0x51d   : > { %4563 = vmatmul.mubr.bf16.vlgmr.msra.gmra.mrb[16].mxu0 %v4218_v0  ;;  %v2370_v28 = vpack.c.bf16 %v4989_v24, %v4988_v54  ;;  %v2384_v17 = vpack.c.bf16 %v5017_v8, %v5016_v10  ;;  %vm3382_vm5 = vcmp.eq.s32.totalorder %v10432_v19, %v9136_v37  ;;  %v5021_v52 = vsel %vm1722_vm0, 1.0, %v10307_v61  ;;  %v10437_v0 = vld [vmem:[#allocation100_spill] sm:$0xff]  ;;  %v10445_v24 = vld [vmem:[#allocation235_spill] sm:$0xff]  ;;  %v10456_v8 = vld [vmem:[#allocation181_spill] sm:$0xff] }
 0x51e   : > { %5754 = vmatpush3.bf16.msk.msra.mxu0 %vm5519_vm15, %v10102_v48  ;;  %4276 = vxpose.xlu0.c.b16.cont [3/8] (narrow) %v2381_v33, 32  ;;  %vm1719_vm15 = vcmp.eq.s32.totalorder %v10423_v58, %v10298_v15  ;;  %vm3383_vm12 = vcmp.eq.s32.totalorder %v8889_v45, %v9136_v37  ;;  %v5020_v44 = vsel %vm1721_vm3, 1.0, %v10307_v61  ;;  %v2403_v7 = vpack.c.bf16 %v5055_v25, %v5054_v41  ;;  %v10453_v58 = vld [vmem:[#allocation165_spill] sm:$0xff]  ;;  %v10457_v10 = vld [vmem:[#allocation18_spill] sm:$0xff]  ;;  %v10464_v19 = vld [vmem:[#allocation103_spill] sm:$0xff] }
 0x51f   : > { %4570 = vmatprep.mubr.bf16.mxu0 %v10417_v5  ;;  %5755 = vmatprep.subr.msk.bf16.mxu0 %vm5537_vm7, %v10102_v48  ;;  %v9171_v1 = vpop.permute.xlu1 %3066  ;;  %vm3380_vm7 = vcmp.eq.s32.totalorder %v10426_v34, %v9136_v37  ;;  %v5018_v42 = vsel %vm1719_vm15, 1.0, %v10307_v61  ;;  %vm3400_vm15 = vcmp.eq.s32.totalorder %v10433_v12, %v9136_v37  ;;  %vm3408_vm3 = vcmp.eq.s32.totalorder %v10439_v21, %v9136_v37  ;;  %v10444_v5 = vld [vmem:[#allocation163_spill] sm:$0xff]  ;;  %v10454_v34 = vld [vmem:[#allocation236_spill] sm:$0xff]  ;;  %v10462_v41 = vld [vmem:[#allocation166_spill] sm:$0xff] }
 0x520   : > { %4247 = vxpose.xlu1.c.b16.cont [6/8] (narrow) %v2368_v40, 32  ;;  %v4219_v38 = vpop.trf.xlu0  ;;  %vm5523_vm2 = vmpackc.low %vm3380_vm7, %vm3379_vm13  ;;  %vm1758_vm13 = vcmp.eq.s32.totalorder %v10430_v2, %v10298_v15  ;;  %v2385_v46 = vpack.c.bf16 %v5019_v26, %v5018_v42  ;;  %v10434_v40 = vld [vmem:[#allocation58_spill] sm:$0xff]  ;;  %vm1739_vm7 = vcmp.eq.s32.totalorder %v10435_v62, %v10298_v15  ;;  %vm3401_vm0 = vcmp.eq.s32.totalorder %v9171_v1, %v9136_v37  ;;  %v10490_v12 = vld [vmem:[#allocation36_spill] sm:$0xff] }
 0x521   : > { %vm1740_vm8 = vcmp.eq.s32.totalorder %v10434_v40, %v10298_v15  ;;  %v5057_v31 = vsel %vm1758_vm13, 1.0, %v10307_v61  ;;  %v2386_v27 = vpack.c.bf16 %v5021_v52, %v5020_v44  ;;  %v5038_v45 = vsel %vm1739_vm7, 1.0, %v10307_v61  ;;  %v10458_v26 = vld [vmem:[#allocation14_spill] sm:$0xff]  ;;  %v10466_v52 = vld [vmem:[#allocation20_spill] sm:$0xff] }
 0x522   : > { %5756 = vmatpush3.bf16.msk.msra.mxu0 %vm5521_vm11, %v10102_v48  ;;  %4277 = vxpose.xlu0.c.b16.cont [4/8] (narrow) %v2382_v35, 32  ;;  %vm5541_vm11 = vmpackc.low %vm3398_vm9, %vm3397_vm1  ;;  %v5039_v3 = vsel %vm1740_vm8, 1.0, %v10307_v61  ;;  %vm3386_vm7 = vcmp.eq.s32.totalorder %v10445_v24, %v9136_v37  ;;  %v10478_v24 = vld [vmem:[#allocation22_spill] sm:$0xff] }
 0x523   : > { %5757 = vmatprep.subr.msk.bf16.mxu0 %vm5539_vm6, %v10102_v48  ;;  %v9210_v51 = vpop.permute.xlu1 %3072  ;;  %vm1757_vm6 = vcmp.eq.s32.totalorder %v10431_v57, %v10298_v15  ;;  %vm5525_vm1 = vmpackc.low %vm3382_vm5, %vm3381_vm14  ;;  %vm1760_vm14 = vcmp.eq.s32.totalorder %v10437_v0, %v10298_v15  ;;  %vm3385_vm5 = vcmp.eq.s32.totalorder %v8905_v32, %v9136_v37  ;;  %v2395_v54 = vpack.c.bf16 %v5039_v3, %v5038_v45  ;;  %v10463_v57 = vld [vmem:[#allocation3_spill] sm:$0xff]  ;;  %v10471_v0 = vld [vmem:[#allocation32_spill] sm:$0xff] }
 0x524   : > { %4248 = vxpose.xlu1.c.b16.cont [7/8] (narrow) %v2369_v49, 32  ;;  %vm5543_vm9 = vmpackc.low %vm3400_vm15, %vm3399_vm4  ;;  %v5056_v33 = vsel %vm1757_vm6, 1.0, %v10307_v61  ;;  %vm3402_vm6 = vcmp.eq.s32.totalorder %v10440_v30, %v9136_v37  ;;  %v5059_v35 = vsel %vm1760_vm14, 1.0, %v10307_v61  ;;  %vm3410_vm14 = vcmp.eq.s32.totalorder %v10448_v43, %v9136_v37  ;;  %v10475_v3 = vld [vmem:[#allocation168_spill] sm:$0xff]  ;;  %v10480_v43 = vld [vmem:[#allocation170_spill] sm:$0xff] }
 0x525   : > { %4571 = vmatmul.mubr.bf16.gmra.mrb[20].mxu0 %v4219_v38  ;;  %v2404_v49 = vpack.c.bf16 %v5057_v31, %v5056_v33  ;;  %vm5545_vm8 = vmpackc.low %vm3402_vm6, %vm3401_vm0  ;;  %vm1761_vm0 = vcmp.eq.s32.totalorder %v10447_v20, %v10298_v15  ;;  %v10479_v20 = vld [vmem:[#allocation63_spill] sm:$0xff] }
 0x526   : > { %5758 = vmatpush3.bf16.msk.msra.mxu0 %vm5523_vm2, %v10102_v48  ;;  %4278 = vxpose.xlu0.c.b16.cont [5/8] (narrow) %v2383_v9, 32  ;;  %vm3384_vm2 = vcmp.eq.s32.totalorder %v10436_v11, %v9136_v37  ;;  %v5060_v29 = vsel %vm1761_vm0, 1.0, %v10307_v61  ;;  %v10469_v11 = vld [vmem:[#allocation104_spill] sm:$0xff] }
 0x527   : > { %5759 = vmatprep.subr.msk.bf16.mxu0 %vm5541_vm11, %v10102_v48  ;;  %v9260_v6 = vpop.permute.xlu1 %3078  ;;  %vm1759_vm11 = vcmp.eq.s32.totalorder %v10438_v22, %v10298_v15  ;;  %vm5527_vm4 = vmpackc.low %vm3384_vm2, %vm3383_vm12  ;;  %vm1741_vm12 = vcmp.eq.s32.totalorder %v10444_v5, %v10298_v15  ;;  %vm1762_vm2 = vcmp.eq.s32.totalorder %v10446_v59, %v10298_v15 }
 0x528   : > { %4249 = vxpose.xlu1.c.b16.end [8/8] (narrow) %v2370_v28, 32  ;;  %v5058_v4 = vsel %vm1759_vm11, 1.0, %v10307_v61  ;;  %vm5529_vm11 = vmpackc.low %vm3386_vm7, %vm3385_vm5  ;;  %v5040_v32 = vsel %vm1741_vm12, 1.0, %v10307_v61  ;;  %vm1744_vm5 = vcmp.eq.s32.totalorder %v10452_v63, %v10298_v15  ;;  %v5061_v36 = vsel %vm1762_vm2, 1.0, %v10307_v61  ;;  %v10455_v28 = vld [vmem:[#allocation102_spill] sm:$0xff] }
 0x529   : > { %v2405_v9 = vpack.c.bf16 %v5059_v35, %v5058_v4  ;;  %vm3388_vm12 = vcmp.eq.s32.totalorder %v10454_v34, %v9136_v37  ;;  %vm3405_vm7 = vcmp.eq.s32.totalorder %v9260_v6, %v9136_v37  ;;  %vm1763_vm2 = vcmp.eq.s32.totalorder %v10456_v8, %v10298_v15  ;;  %v10476_v35 = vld [vmem:[#allocation105_spill] sm:$0xff]  ;;  %v10477_v4 = vld [vmem:[#allocation52_spill] sm:$0xff] }
 0x52a   : > { %5760 = vmatpush3.bf16.msk.msra.mxu0 %vm5525_vm1, %v10102_v48  ;;  %4279 = vxpose.xlu0.c.b16.cont [6/8] (narrow) %v2384_v17, 32  ;;  %vm1742_vm1 = vcmp.eq.s32.totalorder %v10443_v60, %v10298_v15  ;;  %v2406_v25 = vpack.c.bf16 %v5061_v36, %v5060_v29  ;;  %v5062_v2 = vsel %vm1763_vm2, 1.0, %v10307_v61  ;;  %v10481_v36 = vld [vmem:[#allocation64_spill] sm:$0xff]  ;;  %v10482_v29 = vld [vmem:[#allocation171_spill] sm:$0xff] }
 0x52b   : > { %5761 = vmatprep.subr.msk.bf16.mxu0 %vm5543_vm9, %v10102_v48  ;;  %v3085_v16 = vpop.permute.xlu1 %3084  ;;  %vm3403_vm9 = vcmp.eq.s32.totalorder %v9210_v51, %v9136_v37  ;;  %v5041_v53 = vsel %vm1742_vm1, 1.0, %v10307_v61  ;;  %vm1743_vm1 = vcmp.eq.s32.totalorder %v10453_v58, %v10298_v15 }
 0x52c   : > { %vm3407_vm13 = vcmp.eq.s32.totalorder %v3085_v16, %v9136_v37  ;;  %4322 = vxpose.xlu1.c.b16.start [1/8] (narrow) %v2403_v7, 32  ;;  %v2396_v39 = vpack.c.bf16 %v5041_v53, %v5040_v32  ;;  %v5042_v14 = vsel %vm1743_vm1, 1.0, %v10307_v61  ;;  %vm1766_vm1 = vcmp.eq.s32.totalorder %v10464_v19, %v10298_v15  ;;  %v10470_v16 = vld [vmem:[#allocation185_spill] sm:$0xff] }
 0x52d   : > { %vm9322_vm15 = vmpackc.low %vm3408_vm3, %vm3407_vm13  ;;  %vm3387_vm13 = vcmp.eq.s32.totalorder %v8927_v47, %v9136_v37  ;;  %v5043_v47 = vsel %vm1744_vm5, 1.0, %v10307_v61  ;;  %vm3390_vm5 = vcmp.eq.s32.totalorder %v10463_v57, %v9136_v37  ;;  %v5065_v7 = vsel %vm1766_vm1, 1.0, %v10307_v61 }
 0x52e   : > { %5762 = vmatpush3.bf16.msk.msra.mxu0 %vm5527_vm4, %v10102_v48  ;;  %4280 = vxpose.xlu0.c.b16.cont [7/8] (narrow) %v2385_v46, 32  ;;  %vm3404_vm4 = vcmp.eq.s32.totalorder %v10449_v56, %v9136_v37  ;;  %vm5531_vm0 = vmpackc.low %vm3388_vm12, %vm3387_vm13  ;;  %vm1746_vm13 = vcmp.eq.s32.totalorder %v10461_v23, %v10298_v15  ;;  %v10465_v46 = vld [vmem:[#allocation183_spill] sm:$0xff]  ;;  %v2397_v44 = vpack.c.bf16 %v5043_v47, %v5042_v14 }
 0x52f   : > { %5763 = vmatprep.subr.msk.bf16.mxu0 %vm5545_vm8, %v10102_v48  ;;  %v3091_v1 = vpop.permute.xlu1 %3090  ;;  %vm5547_vm8 = vmpackc.low %vm3404_vm4, %vm3403_vm9  ;;  %vm1764_vm9 = vcmp.eq.s32.totalorder %v10455_v28, %v10298_v15  ;;  %vm3389_vm4 = vcmp.eq.s32.totalorder %v8964_v55, %v9136_v37  ;;  %v5045_v62 = vsel %vm1746_vm13, 1.0, %v10307_v61  ;;  %vm1747_vm1 = vcmp.eq.s32.totalorder %v10475_v3, %v10298_v15 }
 0x530   : > { %vm3409_vm3 = vcmp.eq.s32.totalorder %v3091_v1, %v9136_v37  ;;  %4323 = vxpose.xlu1.c.b16.cont [2/8] (narrow) %v2404_v49, 32  ;;  %v5063_v17 = vsel %vm1764_vm9, 1.0, %v10307_v61  ;;  %vm3414_vm9 = vcmp.eq.s32.totalorder %v10466_v52, %v9136_v37  ;;  %v5046_v59 = vsel %vm1747_vm1, 1.0, %v10307_v61 }
 0x531   : > { %vm9369_vm6 = vmpackc.low %vm3410_vm14, %vm3409_vm3  ;;  %vm3412_vm14 = vcmp.eq.s32.totalorder %v10457_v10, %v9136_v37  ;;  %vm3406_vm3 = vcmp.eq.s32.totalorder %v10458_v26, %v9136_v37  ;;  %v2407_v40 = vpack.c.bf16 %v5063_v17, %v5062_v2  ;;  %v10484_v26 = vld [vmem:[#allocation173_spill] sm:$0xff] }
 0x532   : > { %5764 = vmatpush3.bf16.msk.msra.mxu0 %vm5529_vm11, %v10102_v48  ;;  %4281 = vxpose.xlu0.c.b16.end [8/8] (narrow) %v2386_v27, 32  ;;  %vm5549_vm12 = vmpackc.low %vm3406_vm3, %vm3405_vm7  ;;  %vm1765_vm7 = vcmp.eq.s32.totalorder %v10465_v46, %v10298_v15  ;;  %vm1768_vm3 = vcmp.eq.s32.totalorder %v10469_v11, %v10298_v15  ;;  %v10474_v27 = vld [vmem:[#allocation62_spill] sm:$0xff] }
 0x533   : > { %5765 = vmatprep.subr.msk.bf16.mxu0 %vm5547_vm8, %v10102_v48  ;;  %v3097_v51 = vpop.permute.xlu1 %3096  ;;  %v5064_v31 = vsel %vm1765_vm7, 1.0, %v10307_v61  ;;  %v5067_v60 = vsel %vm1768_vm3, 1.0, %v10307_v61  ;;  %vm1770_vm7 = vcmp.eq.s32.totalorder %v10476_v35, %v10298_v15  ;;  %v10489_v35 = vld [vmem:[#allocation34_spill] sm:$0xff] }
 0x534   : > { %vm3411_vm11 = vcmp.eq.s32.totalorder %v3097_v51, %v9136_v37  ;;  %4324 = vxpose.xlu1.c.b16.cont [3/8] (narrow) %v2405_v9, 32  ;;  %v2408_v30 = vpack.c.bf16 %v5065_v7, %v5064_v31  ;;  %v5069_v53 = vsel %vm1770_vm7, 1.0, %v10307_v61  ;;  %vm1753_vm7 = vcmp.eq.s32.totalorder %v10484_v26, %v10298_v15  ;;  %v10485_v7 = vld [vmem:[#allocation24_spill] sm:$0xff] }
 0x535   : > { %vm9412_vm8 = vmpackc.low %vm3412_vm14, %vm3411_vm11  ;;  %vm1745_vm14 = vcmp.eq.s32.totalorder %v10462_v41, %v10298_v15 }
 0x536   : > { %5766 = vmatpush3.bf16.msk.msra.mxu0 %vm5531_vm0, %v10102_v48  ;;  %4306 = vxpose.xlu0.c.b16.start [1/8] (narrow) %v2395_v54, 32  ;;  %vm5533_vm0 = vmpackc.low %vm3390_vm5, %vm3389_vm4  ;;  %v5044_v55 = vsel %vm1745_vm14, 1.0, %v10307_v61  ;;  %vm1767_vm4 = vcmp.eq.s32.totalorder %v10470_v16, %v10298_v15  ;;  %vm1748_vm14 = vcmp.eq.s32.totalorder %v10474_v27, %v10298_v15 }
 0x537   : > { %5767 = vmatprep.subr.msk.bf16.mxu0 %vm5549_vm12, %v10102_v48  ;;  %v3103_v6 = vpop.permute.xlu1 %3102  ;;  %vm3416_vm12 = vcmp.eq.s32.totalorder %v10471_v0, %v9136_v37  ;;  %v2398_v45 = vpack.c.bf16 %v5045_v62, %v5044_v55  ;;  %v5066_v5 = vsel %vm1767_vm4, 1.0, %v10307_v61  ;;  %v5047_v1 = vsel %vm1748_vm14, 1.0, %v10307_v61 }
 0x538   : > { %vm3413_vm2 = vcmp.eq.s32.totalorder %v3103_v6, %v9136_v37  ;;  %4325 = vxpose.xlu1.c.b16.cont [4/8] (narrow) %v2406_v25, 32  ;;  %vm1750_vm4 = vcmp.eq.s32.totalorder %v10479_v20, %v10298_v15  ;;  %v2409_v54 = vpack.c.bf16 %v5067_v60, %v5066_v5  ;;  %v2399_v63 = vpack.c.bf16 %v5047_v1, %v5046_v59 }
 0x539   : > { %vm9453_vm11 = vmpackc.low %vm3414_vm9, %vm3413_vm2  ;;  %vm1769_vm9 = vcmp.eq.s32.totalorder %v10477_v4, %v10298_v15  ;;  %v5049_v58 = vsel %vm1750_vm4, 1.0, %v10307_v61  ;;  %vm1751_vm14 = vcmp.eq.s32.totalorder %v10482_v29, %v10298_v15  ;;  %v5052_v25 = vsel %vm1753_vm7, 1.0, %v10307_v61  ;;  %v10491_v4 = vld [vmem:[#allocation37_spill] sm:$0xff] }
 0x53a   : > { %5768 = vmatpush3.bf16.msk.msra.mxu0 %vm5533_vm0, %v10102_v48  ;;  %4307 = vxpose.xlu0.c.b16.cont [2/8] (narrow) %v2396_v39, 32  ;;  %vm3423_vm0 = vcmp.eq.s32.totalorder %v10478_v24, %v9136_v37  ;;  %v5068_v56 = vsel %vm1769_vm9, 1.0, %v10307_v61  ;;  %v5050_v10 = vsel %vm1751_vm14, 1.0, %v10307_v61  ;;  %v10483_v39 = vld [vmem:[#allocation65_spill] sm:$0xff] }
 0x53b   : > { %v3109_v33 = vpop.permute.xlu1 %3108  ;;  %v2410_v34 = vpack.c.bf16 %v5069_v53, %v5068_v56  ;;  %vm1754_vm1 = vcmp.eq.s32.totalorder %v10483_v39, %v10298_v15 }
 0x53c   : > { %vm3415_vm13 = vcmp.eq.s32.totalorder %v3109_v33, %v9136_v37  ;;  %4326 = vxpose.xlu1.c.b16.cont [5/8] (narrow) %v2407_v40, 32  ;;  %v4266_v22 = vpop.trf.xlu0  ;;  %v5053_v23 = vsel %vm1754_vm1, 1.0, %v10307_v61 }
 0x53d   : > { %vm9475_vm5 = vmpackc.low %vm3416_vm12, %vm3415_vm13  ;;  %4610 = vmatprep.mubr.bf16.mxu1 %v4266_v22  ;;  %vm1749_vm12 = vcmp.eq.s32.totalorder %v10480_v43, %v10298_v15  ;;  %vm1752_vm13 = vcmp.eq.s32.totalorder %v10481_v36, %v10298_v15  ;;  %v2402_v17 = vpack.c.bf16 %v5053_v23, %v5052_v25  ;;  %v10486_v22 = vld [vmem:[#allocation26_spill] sm:$0xff] }
 0x53e   : > { %4308 = vxpose.xlu0.c.b16.cont [3/8] (narrow) %v2397_v44, 32  ;;  %v5048_v9 = vsel %vm1749_vm12, 1.0, %v10307_v61  ;;  %v5051_v8 = vsel %vm1752_vm13, 1.0, %v10307_v61  ;;  %vm3427_vm4 = vcmp.eq.s32.totalorder %v10486_v22, %v9136_v37 }
 0x53f   : > { %v3136_v49 = vpop.permute.xlu1 %3135  ;;  %v2400_v28 = vpack.c.bf16 %v5049_v58, %v5048_v9  ;;  %v2401_v14 = vpack.c.bf16 %v5051_v8, %v5050_v10 }
 0x540   : > { %vm3424_vm2 = vcmp.eq.s32.totalorder %v3136_v49, %v9136_v37  ;;  %4327 = vxpose.xlu1.c.b16.cont [6/8] (narrow) %v2408_v30, 32  ;;  %v4267_v57 = vpop.trf.xlu0  ;;  %v10487_v30 = vld [vmem:[#allocation28_spill] sm:$0xff]  ;;  %v10488_v49 = vld [vmem:[#allocation30_spill] sm:$0xff] }
 0x541   : > { %vm5567_vm3 = vmpackc.low %vm3424_vm2, %vm3423_vm0  ;;  %vm3425_vm0 = vcmp.eq.s32.totalorder %v10485_v7, %v9136_v37  ;;  %vm3431_vm1 = vcmp.eq.s32.totalorder %v10488_v49, %v9136_v37 }
 0x542   : > { %4309 = vxpose.xlu0.c.b16.cont [4/8] (narrow) %v2398_v45, 32  ;;  %5781 = vmatprep.subr.msk.bf16.mxu1 %vm5567_vm3, %v10102_v48 }
 0x543   : > { %v3142_v32 = vpop.permute.xlu1 %3141 }
 0x544   : > { %4328 = vxpose.xlu1.c.b16.cont [7/8] (narrow) %v2409_v54, 32  ;;  %vm3426_vm9 = vcmp.eq.s32.totalorder %v3142_v32, %v9136_v37 }
 0x545   : > { %vm5569_vm2 = vmpackc.low %vm3426_vm9, %vm3425_vm0 }
 0x546   : > { %4310 = vxpose.xlu0.c.b16.cont [5/8] (narrow) %v2399_v63, 32 }
 0x547   : > { %v3148_v51 = vpop.permute.xlu1 %3147 }
 0x548   : > { %4329 = vxpose.xlu1.c.b16.end [8/8] (narrow) %v2410_v34, 32  ;;  %vm3428_vm3 = vcmp.eq.s32.totalorder %v3148_v51, %v9136_v37 }
 0x549   : > { %vm5571_vm12 = vmpackc.low %vm3428_vm3, %vm3427_vm4  ;;  %vm3436_vm4 = vcmp.eq.s32.totalorder %v10491_v4, %v9136_v37 }
 0x54a   : > { %4311 = vxpose.xlu0.c.b16.cont [6/8] (narrow) %v2400_v28, 32 }
 0x54b   : > { %v3154_v47 = vpop.permute.xlu1 %3153 }
 0x54c   : > { %vm3430_vm13 = vcmp.eq.s32.totalorder %v3154_v47, %v9136_v37 }
 0x54e   : > { %4312 = vxpose.xlu0.c.b16.cont [7/8] (narrow) %v2401_v14, 32 }
 0x54f   : > { %v3160_v41 = vpop.permute.xlu1 %3159 }
 0x552   : > { %4313 = vxpose.xlu0.c.b16.end [8/8] (narrow) %v2402_v17, 32 }
 0x553   : > { %v3163_v2 = vpop.permute.xlu1 %3162 }
 0x554   : > { %vm3433_vm9 = vcmp.eq.s32.totalorder %v3163_v2, %v9136_v37 }
 0x557   : > { %v3115_v6 = vpop.permute.xlu1 %3114 }
 0x55b   : > { %v3169_v19 = vpop.permute.xlu1 %3168 }
 0x55c   : > { %v4298_v46 = vpop.trf.xlu0  ;;  %vm3435_vm3 = vcmp.eq.s32.totalorder %v3169_v19, %v9136_v37 }
 0x55d   : > { %4658 = vmatprep.mubr.bf16.mxu0 %v4298_v46 }
 0x55f   : > { %v3121_v52 = vpop.permute.xlu1 %3120 }
 0x560   : > { %v4299_v0 = vpop.trf.xlu0 }
 0x563   : > { %v9515_v44 = vpop.permute.xlu1 %3126 }
 0x567   : > { %v9517_v15 = vpop.permute.xlu1 %3129 }
 0x571   : > { %v5601_v40 = vpop.f32.mrb[0].mxu0 }
 0x572   : > { %v4250_v62 = vpop.trf.xlu1  ;;  %v5602_v55 = vpop.f32.mrb[1].mxu0 }
 0x573   : > { %v9522_v31 = vadd.f32 %v5602_v55, %v5601_v40  ;;  %4611 = vmatmul.mubr.bf16.vlgmr.msra.gmra.mrb[16].mxu1 %v4250_v62  ;;  %v5604_v33 = vpop.f32.mrb[2].mxu0 }
 0x574   : > { %5782 = vmatpush3.bf16.msk.msra.mxu1 %vm9322_vm15, %v10102_v48  ;;  %v5605_v11 = vpop.f32.mrb[3].mxu0  ;;  %4618 = vmatprep.mubr.bf16.mxu1 %v4267_v57  ;;  %vm3429_vm15 = vcmp.eq.s32.totalorder %v10487_v30, %v9136_v37 }
 0x575   : > { %5783 = vmatprep.subr.msk.bf16.mxu1 %vm5569_vm2, %v10102_v48  ;;  %v5606_v16 = vadd.f32 %v5605_v11, %v5604_v33  ;;  %vm5573_vm14 = vmpackc.low %vm3430_vm13, %vm3429_vm15  ;;  %vm3417_vm2 = vcmp.eq.s32.totalorder %v3115_v6, %v9136_v37  ;;  %vm3419_vm15 = vcmp.eq.s32.totalorder %v3121_v52, %v9136_v37 }
 0x576   : > { %v4251_v27 = vpop.trf.xlu1  ;;  %vm5579_vm13 = vmpackc.low %vm3436_vm4, %vm3435_vm3 }
 0x578   : > { %5784 = vmatpush3.bf16.msk.msra.mxu1 %vm9369_vm6, %v10102_v48  ;;  %vm3432_vm6 = vcmp.eq.s32.totalorder %v3160_v41, %v9136_v37 }
 0x579   : > { %5785 = vmatprep.subr.msk.bf16.mxu1 %vm5571_vm12, %v10102_v48  ;;  %v5607_v13 = vpop.f32.mrb[4].mxu0  ;;  %vm5575_vm7 = vmpackc.low %vm3432_vm6, %vm3431_vm1  ;;  %vm3422_vm6 = vcmp.eq.s32.totalorder %v9517_v15, %v9136_v37  ;;  %vm3421_vm1 = vcmp.eq.s32.totalorder %v9515_v44, %v9136_v37 }
 0x57a   : > { %v5608_v3 = vpop.f32.mrb[5].mxu0 }
 0x57b   : > { %v5609_v45 = vadd.f32 %v5608_v3, %v5607_v13  ;;  %4619 = vmatmul.mubr.bf16.gmra.mrb[20].mxu1 %v4251_v27  ;;  %v5610_v60 = vpop.f32.mrb[6].mxu0 }
 0x57c   : > { %5786 = vmatpush3.bf16.msk.msra.mxu1 %vm9412_vm8, %v10102_v48  ;;  %v5611_v38 = vpop.f32.mrb[7].mxu0  ;;  %v4282_v5 = vpop.trf.xlu0  ;;  %vm3434_vm8 = vcmp.eq.s32.totalorder %v10489_v35, %v9136_v37 }
 0x57d   : > { %5787 = vmatprep.subr.msk.bf16.mxu1 %vm5573_vm14, %v10102_v48  ;;  %4659 = vmatmul.mubr.bf16.vlgmr.msra.gmra.mrb[24].mxu0 %v4282_v5  ;;  %vm5577_vm0 = vmpackc.low %vm3434_vm8, %vm3433_vm9  ;;  %vm229_vm8 = vcmask 149504  }
 0x57e   : > { %4666 = vmatprep.mubr.bf16.mxu0 %v4299_v0  ;;  %230 = vst.msk [vmem:[%s9582_s6 + $0x10] sm:$0x7] %vm229_vm8, %v10307_v61 }
 0x580   : > { %5788 = vmatpush3.bf16.msk.msra.mxu1 %vm9453_vm11, %v10102_v48  ;;  %v4283_v42 = vpop.trf.xlu0  ;;  %vm3418_vm11 = vcmp.eq.s32.totalorder %v10490_v12, %v9136_v37 }
 0x581   : > { %5789 = vmatprep.subr.msk.bf16.mxu1 %vm5575_vm7, %v10102_v48  ;;  %vm5561_vm12 = vmpackc.low %vm3418_vm11, %vm3417_vm2 }
 0x582   : > { %vm5565_vm7 = vmpackc.low %vm3422_vm6, %vm3421_vm1 }
 0x584   : > { %5790 = vmatpush3.bf16.msk.msra.mxu1 %vm9475_vm5, %v10102_v48  ;;  %vm3420_vm5 = vcmp.eq.s32.totalorder %v8390_v50, %v9136_v37 }
 0x585   : > { %5791 = vmatprep.subr.msk.bf16.mxu1 %vm5577_vm0, %v10102_v48  ;;  %4667 = vmatmul.mubr.bf16.gmra.mrb[28].mxu0 %v4283_v42  ;;  %vm5563_vm14 = vmpackc.low %vm3420_vm5, %vm3419_vm15 }
 0x588   : > { %5792 = vmatpush3.bf16.msk.msra.mxu1 %vm5561_vm12, %v10102_v48 }
 0x589   : > { %5793 = vmatprep.subr.msk.bf16.mxu1 %vm5579_vm13, %v10102_v48 }
 0x58c   : > { %5794 = vmatpush3.bf16.msk.msra.mxu1 %vm5563_vm14, %v10102_v48 }
 0x58d   : > { %5795 = vmatprep.subr.msk.bf16.mxu1 %vm8407_vm10, %v10102_v48  ;;  %vm10492_vm10 = vcmask 154624  }
 0x58e   : > { %227 = vst.msk [vmem:[%s9582_s6] sm:$0xff] %vm10492_vm10, %v10307_v61  ;;  %vm10493_vm9 = vmmov %vm10492_vm10 }
 0x58f   : > { %228 = vst.msk [vmem:[%s9582_s6 + $0x8] sm:$0xff] %vm10493_vm9, %v10307_v61  ;;  %vm10494_vm0 = vmmov %vm10493_vm9 }
 0x590   : > { %5796 = vmatpush3.bf16.msk.msra.mxu1 %vm5565_vm7, %v10102_v48  ;;  %vm10495_vm2 = vmmov %vm10494_vm0 }
 0x591   : > { %v5629_v21 = vpop.f32.mrb[0].mxu1 }
 0x592   : > { %v5630_v24 = vpop.f32.mrb[1].mxu1  ;;  %v4330_v1 = vpop.trf.xlu1 }
 0x593   : > { %v5631_v50 = vadd.f32 %v5630_v24, %v5629_v21  ;;  %v5632_v59 = vpop.f32.mrb[2].mxu1  ;;  %4706 = vmatprep.mubr.bf16.mxu1 %v4330_v1 }
 0x594   : > { %v5633_v20 = vpop.f32.mrb[3].mxu1 }
 0x595   : > { %v4421_v43 = vadd.f32 %v5631_v50, %v9522_v31  ;;  %v5634_v54 = vadd.f32 %v5633_v20, %v5632_v59 }
 0x596   : > { %v4331_v58 = vpop.trf.xlu1 }
 0x597   : > { %v4424_v53 = vadd.f32 %v5634_v54, %v5606_v16 }
 0x599   : > { %v5635_v56 = vpop.f32.mrb[4].mxu1 }
 0x59a   : > { %v5636_v18 = vpop.f32.mrb[5].mxu1 }
 0x59b   : > { %v5637_v32 = vadd.f32 %v5636_v18, %v5635_v56  ;;  %v5638_v63 = vpop.f32.mrb[6].mxu1 }
 0x59c   : > { %v5639_v37 = vpop.f32.mrb[7].mxu1  ;;  %v4314_v9 = vpop.trf.xlu0 }
 0x59d   : > { %v4429_v36 = vadd.f32 %v5637_v32, %v5609_v45  ;;  %4707 = vmatmul.mubr.bf16.vlgmr.msra.gmra.mrb[24].mxu1 %v4314_v9 }
 0x59e   : > { %4714 = vmatprep.mubr.bf16.mxu1 %v4331_v58 }
 0x5a0   : > { %v4315_v48 = vpop.trf.xlu0 }
 0x5a5   : > { %4715 = vmatmul.mubr.bf16.gmra.mrb[28].mxu1 %v4315_v48 }
 0x5b1   : > { %v5657_v29 = vpop.f32.mrb[8].mxu0 }
 0x5b2   : > { %v5658_v34 = vpop.f32.mrb[9].mxu0 }
 0x5b3   : > { %v5659_v51 = vadd.f32 %v5658_v34, %v5657_v29  ;;  %v5660_v28 = vpop.f32.mrb[10].mxu0 }
 0x5b4   : > { %v5661_v8 = vpop.f32.mrb[11].mxu0 }
 0x5b5   : > { %v4469_v10 = vadd.f32 %v5659_v51, %v4421_v43  ;;  %v5662_v39 = vadd.f32 %v5661_v8, %v5660_v28 }
 0x5b7   : > { %v4472_v26 = vadd.f32 %v5662_v39, %v4424_v53 }
 0x5b9   : > { %v5663_v47 = vpop.f32.mrb[12].mxu0 }
 0x5ba   : > { %v5664_v14 = vpop.f32.mrb[13].mxu0 }
 0x5bb   : > { %v5665_v23 = vadd.f32 %v5664_v14, %v5663_v47  ;;  %v5666_v25 = vpop.f32.mrb[14].mxu0 }
 0x5bc   : > { %v5667_v41 = vpop.f32.mrb[15].mxu0 }
 0x5bd   : > { %v4477_v17 = vadd.f32 %v5665_v23, %v4429_v36  ;;  %v4079_v23 = vld [vmem:[%s9582_s6] sm:$0xff] }
 0x5d1   : > { %v5685_v2 = vpop.f32.mrb[8].mxu1 }
 0x5d2   : > { %v5686_v57 = vpop.f32.mrb[9].mxu1 }
 0x5d3   : > { %v5687_v6 = vadd.f32 %v5686_v57, %v5685_v2  ;;  %v5688_v19 = vpop.f32.mrb[10].mxu1  ;;  %v4080_v2 = vld [vmem:[%s9582_s6 + $0x8] sm:$0xff] }
 0x5d4   : > { %v5689_v46 = vpop.f32.mrb[11].mxu1 }
 0x5d5   : > { %v4517_v52 = vadd.f32 %v5687_v6, %v4469_v10  ;;  %v5690_v44 = vadd.f32 %v5689_v46, %v5688_v19 }
 0x5d7   : > { %v4520_v15 = vadd.f32 %v5690_v44, %v4472_v26 }
 0x5d9   : > { %v5691_v40 = vpop.f32.mrb[12].mxu1 }
 0x5da   : > { %v5692_v62 = vpop.f32.mrb[13].mxu1 }
 0x5db   : > { %v5693_v55 = vadd.f32 %v5692_v62, %v5691_v40  ;;  %v5694_v7 = vpop.f32.mrb[14].mxu1  ;;  %v4081_v40 = vld [vmem:[%s9582_s6 + $0x10] sm:$0x7] }
 0x5dc   : > { %v5695_v31 = vpop.f32.mrb[15].mxu1 }
 0x5dd   : > { %v4525_v33 = vadd.f32 %v5693_v55, %v4477_v17 }
 0x5f0   : > { %v5713_v11 = vpop.f32.mrb[16].mxu0 }
 0x5f1   : > { %v5714_v16 = vpop.f32.mrb[17].mxu0 }
 0x5f2   : > { %v5715_v0 = vadd.f32 %v5714_v16, %v5713_v11  ;;  %v5716_v22 = vpop.f32.mrb[18].mxu0 }
 0x5f3   : > { %v5717_v27 = vpop.f32.mrb[19].mxu0 }
 0x5f4   : > { %v4565_v13 = vadd.f32 %v5715_v0, %v4517_v52  ;;  %v5718_v3 = vadd.f32 %v5717_v27, %v5716_v22 }
 0x5f6   : > { %v4568_v30 = vadd.f32 %v5718_v3, %v4520_v15 }
 0x5f8   : > { %v5719_v45 = vpop.f32.mrb[20].mxu0 }
 0x5f9   : > { %v5720_v60 = vpop.f32.mrb[21].mxu0 }
 0x5fa   : > { %v5721_v38 = vadd.f32 %v5720_v60, %v5719_v45  ;;  %v5722_v5 = vpop.f32.mrb[22].mxu0 }
 0x5fb   : > { %v5723_v49 = vpop.f32.mrb[23].mxu0 }
 0x5fc   : > { %v4573_v42 = vadd.f32 %v5721_v38, %v4525_v33 }
 0x646   : > { %v5741_v35 = vpop.f32.mrb[16].mxu1 }
 0x647   : > { %v5742_v12 = vpop.f32.mrb[17].mxu1 }
 0x648   : > { %v5743_v4 = vadd.f32 %v5742_v12, %v5741_v35  ;;  %v5744_v21 = vpop.f32.mrb[18].mxu1 }
 0x649   : > { %v5745_v24 = vpop.f32.mrb[19].mxu1 }
 0x64a   : > { %v4613_v1 = vadd.f32 %v5743_v4, %v4565_v13  ;;  %v5746_v50 = vadd.f32 %v5745_v24, %v5744_v21 }
 0x64c   : > { %v4616_v59 = vadd.f32 %v5746_v50, %v4568_v30 }
 0x64e   : > { %v5747_v20 = vpop.f32.mrb[20].mxu1 }
 0x64f   : > { %v5748_v43 = vpop.f32.mrb[21].mxu1 }
 0x650   : > { %v5749_v54 = vadd.f32 %v5748_v43, %v5747_v20  ;;  %v5769_v53 = vpop.f32.mrb[24].mxu0  ;;  %v5750_v56 = vpop.f32.mrb[22].mxu1 }
 0x651   : > { %v5770_v18 = vpop.f32.mrb[25].mxu0  ;;  %v5751_v61 = vpop.f32.mrb[23].mxu1 }
 0x652   : > { %v4621_v32 = vadd.f32 %v5749_v54, %v4573_v42  ;;  %v5771_v63 = vadd.f32 %v5770_v18, %v5769_v53  ;;  %v5772_v58 = vpop.f32.mrb[26].mxu0 }
 0x653   : > { %v5773_v37 = vpop.f32.mrb[27].mxu0 }
 0x654   : > { %v4661_v9 = vadd.f32 %v5771_v63, %v4613_v1  ;;  %v5774_v36 = vadd.f32 %v5773_v37, %v5772_v58 }
 0x656   : > { %v4664_v48 = vadd.f32 %v5774_v36, %v4616_v59 }
 0x658   : > { %v5775_v29 = vpop.f32.mrb[28].mxu0 }
 0x659   : > { %v5776_v34 = vpop.f32.mrb[29].mxu0 }
 0x65a   : > { %v5777_v51 = vadd.f32 %v5776_v34, %v5775_v29  ;;  %v5778_v28 = vpop.f32.mrb[30].mxu0 }
 0x65b   : > { %v5779_v8 = vpop.f32.mrb[31].mxu0 }
 0x65c   : > { %v4669_v10 = vadd.f32 %v5777_v51, %v4621_v32 }
 0x670   : > { %v5797_v39 = vpop.f32.mrb[24].mxu1 }
 0x671   : > { %v5798_v26 = vpop.f32.mrb[25].mxu1 }
 0x672   : > { %v5799_v47 = vadd.f32 %v5798_v26, %v5797_v39  ;;  %v5800_v14 = vpop.f32.mrb[26].mxu1 }
 0x673   : > { %v5801_v25 = vpop.f32.mrb[27].mxu1 }
 0x674   : > { %v4709_v41 = vadd.f32 %v5799_v47, %v4661_v9  ;;  %v5802_v17 = vadd.f32 %v5801_v25, %v5800_v14 }
 0x676   : > { %v4722_v57 = vadd.f32 %v4709_v41, %v4079_v23  ;;  %v4712_v6 = vadd.f32 %v5802_v17, %v4664_v48 }
 0x678   : > { %4725 = vst.msk [vmem:[%s9582_s6] sm:$0xff] %vm10494_vm0, %v4722_v57  ;;  %v4723_v19 = vadd.f32 %v4712_v6, %v4080_v2  ;;  %v5803_v46 = vpop.f32.mrb[28].mxu1 }
 0x679   : > { %v5804_v52 = vpop.f32.mrb[29].mxu1 }
 0x67a   : > { %4726 = vst.msk [vmem:[%s9582_s6 + $0x8] sm:$0xff] %vm10495_vm2, %v4723_v19  ;;  %v5805_v44 = vadd.f32 %v5804_v52, %v5803_v46  ;;  %v5806_v15 = vpop.f32.mrb[30].mxu1 }
 0x67b   : > { %v5807_v62 = vpop.f32.mrb[31].mxu1 }
 0x67c   : > { %v4717_v55 = vadd.f32 %v5805_v44, %v4669_v10 }
 0x67e   : > { %v4724_v7 = vadd.f32 %v4717_v55, %v4081_v40 }
 0x680   : > { %4728 = vst.msk [vmem:[%s9582_s6 + $0x10] sm:$0x7] %vm229_vm8, %v4724_v7 }
 0x681 PF: > { %s13_s14 = sadd.s32 1, %s5863_s14   ;;  %s10496_s12 = smov %s5859_s13 }
 0x682   : > { %p10_p6 = scmp.ge.s32.totalorder %s13_s14, 4   ;;  %s10497_s13 = smov %s10499_s15 }
 0x684   :  { %12 = sbr.rel (!%p10_p6) target bundleno = 2 (0x2), region = 69 }

</bundles_post_ra>
